<compile_context>
chip_gen: v7x
topology: tpu7x:2x2x1
jax: 0.10.0
libtpu: 0.0.40
codegen_flags: <defaults>
</compile_context>

<pallas_src>
import jax
import jax.numpy as jnp
from jax import lax
from jax.experimental import pallas as pl
from jax.experimental.pallas import tpu as pltpu


D_IN = 28 * 28          # 784
D1, D2, D3, D4 = 1024, 512, 256, 1


def _round_up(n, m):
    return ((n + m - 1) // m) * m


def _leaky_relu(x, slope=0.2):
    return jnp.where(x > 0, x, slope * x)


def _pick_batch_tile(b):
    # TM=256 fills the 256-wide MXU (v6e/v7x) once the batch is big enough to
    # still leave >= 2 grid steps; for 256 <= b < 512 prefer TM=128 so the
    # parallel batch axis shards across both v7x TensorCores; tiny batches
    # round up to 16 rows to keep bf16 (16,128) sublane packing native.
    if b >= 512:
        return 256
    if b >= 256:
        return 128
    return min(128, _round_up(b, 16))


def discriminator_kernel(x_ref,
                         w1_ref, b1_ref,
                         w2_ref, b2_ref,
                         w3_ref, b3_ref,
                         w4_ref, b4_ref,
                         out_ref):
    # x tile arrives as f32 straight from HBM; cast to bf16 on the VPU
    # (plenty of slack under the MXU), accumulate in f32.
    x_bf = x_ref[...].astype(jnp.bfloat16)

    h = jnp.dot(x_bf, w1_ref[...],
                preferred_element_type=jnp.float32) + b1_ref[...]
    h = _leaky_relu(h)

    h = jnp.dot(h.astype(jnp.bfloat16), w2_ref[...],
                preferred_element_type=jnp.float32) + b2_ref[...]
    h = _leaky_relu(h)

    h = jnp.dot(h.astype(jnp.bfloat16), w3_ref[...],
                preferred_element_type=jnp.float32) + b3_ref[...]
    h = _leaky_relu(h)

    # Final 256 -> 1 layer emitted lane-dense: contract the feature dim of
    # w4 (1, 256) against h (tm, 256) -> logits (1, tm), so the output store
    # is a full-lane vst instead of masked 1-lane (tm, 1) strided stores.
    logits = lax.dot_general(
        w4_ref[...], h.astype(jnp.bfloat16),
        dimension_numbers=(((1,), (1,)), ((), ())),
        preferred_element_type=jnp.float32) + b4_ref[...]

    # sigmoid = 1 / (1 + exp(-x)): exp + approx reciprocal both run on the EUP.
    out_ref[...] = pl.reciprocal(1.0 + jnp.exp(-logits), approx=True)


@jax.jit
def discriminator_forward(x_nchw, params):
    """x_nchw: (B, 1, 28, 28) float32 -> (B, 1) probabilities."""
    b = x_nchw.shape[0]
    x_flat = x_nchw.reshape(b, -1).astype(jnp.float32)          # (B, 784)

    (w1, b1), (w2, b2), (w3, b3), (w4, b4) = params

    tm = _pick_batch_tile(b)
    bp = _round_up(b, tm)
    n_steps = bp // tm

    if bp != b:                                                  # row pad only
        x_flat = jnp.pad(x_flat, ((0, bp - b), (0, 0)))

    w1_b = w1.astype(jnp.bfloat16)
    w2_b = w2.astype(jnp.bfloat16)
    w3_b = w3.astype(jnp.bfloat16)
    w4_row = w4.reshape(1, D3).astype(jnp.bfloat16)              # (1, 256)
    b4_r = b4.reshape(1, 1).astype(jnp.float32)

    # Constant-index (resident) operands: single buffer, no pointless
    # double-buffering of the ~3 MiB of bf16 weights.
    resident = dict(pipeline_mode=pl.Buffered(1))

    in_specs = [
        pl.BlockSpec((tm, D_IN), lambda i: (i, 0)),                 # x (streamed f32)
        pl.BlockSpec((D_IN, D1), lambda i: (0, 0), **resident),     # w1
        pl.BlockSpec((1, D1), lambda i: (0, 0), **resident),        # b1
        pl.BlockSpec((D1, D2), lambda i: (0, 0), **resident),       # w2
        pl.BlockSpec((1, D2), lambda i: (0, 0), **resident),        # b2
        pl.BlockSpec((D2, D3), lambda i: (0, 0), **resident),       # w3
        pl.BlockSpec((1, D3), lambda i: (0, 0), **resident),        # b3
        pl.BlockSpec((1, D3), lambda i: (0, 0), **resident),        # w4 as a row
        pl.BlockSpec((1, 1), lambda i: (0, 0), **resident),         # b4
    ]
    out_specs = pl.BlockSpec((1, tm), lambda i: (0, i))             # lane-dense row

    flops = 2 * bp * (D_IN * D1 + D1 * D2 + D2 * D3 + D3 * D4)
    weight_bytes = 2 * (D_IN * D1 + D1 * D2 + D2 * D3 + D3)         # bf16
    bias_bytes = 4 * (D1 + D2 + D3 + 1)
    bytes_accessed = weight_bytes + bias_bytes + 4 * bp * D_IN + 4 * bp

    out_row = pl.pallas_call(
        discriminator_kernel,
        out_shape=jax.ShapeDtypeStruct((1, bp), jnp.float32),
        grid=(n_steps,),
        in_specs=in_specs,
        out_specs=out_specs,
        compiler_params=pltpu.CompilerParams(
            dimension_semantics=("parallel",),
            vmem_limit_bytes=32 * 1024 * 1024,   # fits v7x's 64 MiB physical VMEM
        ),
        cost_estimate=pl.CostEstimate(
            flops=flops,
            transcendentals=bp,
            bytes_accessed=bytes_accessed,
        ),
    )(x_flat, w1_b, b1, w2_b, b2, w3_b, b3, w4_row, b4_r)

    return out_row.reshape(bp, 1)[:b]


def init_params(key):
    """Deterministic init matching the nn.Linear shapes (stored as (in, out))."""
    dims = [(D_IN, D1), (D1, D2), (D2, D3), (D3, D4)]
    params = []
    for d_in, d_out in dims:
        kw, kb, key = jax.random.split(key, 3)
        bound = 1.0 / (d_in ** 0.5)  # PyTorch default Linear init range
        w = jax.random.uniform(kw, (d_in, d_out), jnp.float32, -bound, bound)
        bvec = jax.random.uniform(kb, (1, d_out), jnp.float32, -bound, bound)
        params.append((w, bvec))
    return params


def _reference(xn, ps):
    """Plain-JAX reference mirroring the kernel's bf16-operand numerics."""
    (w1, b1), (w2, b2), (w3, b3), (w4, b4) = ps
    h = xn.reshape(xn.shape[0], -1).astype(jnp.float32)
    for w, bvec in ((w1, b1), (w2, b2), (w3, b3)):
        h = jnp.dot(h.astype(jnp.bfloat16), w.astype(jnp.bfloat16),
                    preferred_element_type=jnp.float32) + bvec
        h = jnp.where(h > 0, h, 0.2 * h)
    logits = jnp.dot(h.astype(jnp.bfloat16), w4.astype(jnp.bfloat16),
                     preferred_element_type=jnp.float32) + b4.reshape(1, 1)
    return 1.0 / (1.0 + jnp.exp(-logits))


if __name__ == "__main__":
    key = jax.random.PRNGKey(0)
    k_x, k_p = jax.random.split(key)

    batch = 8
    x = jax.random.normal(k_x, (batch, 1, 28, 28), jnp.float32)  # NCHW MNIST-like
    params = init_params(k_p)

    out = discriminator_forward(x, params)
    jax.block_until_ready(out)

    ref_out = _reference(x, params)
    assert out.shape == (batch, 1)
    # Tolerance covers bf16 accumulation-order differences + approx reciprocal
    # in the sigmoid (EUP vrcp, ~2^-12 relative error).
    assert jnp.allclose(out, ref_out, atol=2e-3, rtol=2e-3), (
        f"max abs diff {jnp.max(jnp.abs(out - ref_out))}")
    print("KERNEL_OK")
</pallas_src>

<mosaic_0001>
module attributes {stable_mosaic.version = 11 : i64} {
  func.func @discriminator_kernel(%arg0: i32, %arg1: memref<16x784xf32, #tpu.memory_space<vmem>>, %arg2: memref<784x1024xbf16, #tpu.memory_space<vmem>>, %arg3: memref<1x1024xf32, #tpu.memory_space<vmem>>, %arg4: memref<1024x512xbf16, #tpu.memory_space<vmem>>, %arg5: memref<1x512xf32, #tpu.memory_space<vmem>>, %arg6: memref<512x256xbf16, #tpu.memory_space<vmem>>, %arg7: memref<1x256xf32, #tpu.memory_space<vmem>>, %arg8: memref<1x256xbf16, #tpu.memory_space<vmem>>, %arg9: memref<1x1xf32, #tpu.memory_space<vmem>>, %arg10: memref<1x16xf32, #tpu.memory_space<vmem>>) attributes {dimension_semantics = [#tpu.dimension_semantics<parallel>], iteration_bounds = array<i64: 1>, scalar_prefetch = 0 : i64, scratch_operands = 0 : i64, tpu.core_type = #tpu.core_type<tc>, window_params = [{transform_indices = @transform_0, window_bounds = array<i64: 16, 784>}, {pipeline_mode = #tpu.pipeline_mode<synchronous>, transform_indices = @transform_1, window_bounds = array<i64: 784, 1024>}, {pipeline_mode = #tpu.pipeline_mode<synchronous>, transform_indices = @transform_2, window_bounds = array<i64: 1, 1024>}, {pipeline_mode = #tpu.pipeline_mode<synchronous>, transform_indices = @transform_3, window_bounds = array<i64: 1024, 512>}, {pipeline_mode = #tpu.pipeline_mode<synchronous>, transform_indices = @transform_4, window_bounds = array<i64: 1, 512>}, {pipeline_mode = #tpu.pipeline_mode<synchronous>, transform_indices = @transform_5, window_bounds = array<i64: 512, 256>}, {pipeline_mode = #tpu.pipeline_mode<synchronous>, transform_indices = @transform_6, window_bounds = array<i64: 1, 256>}, {pipeline_mode = #tpu.pipeline_mode<synchronous>, transform_indices = @transform_7, window_bounds = array<i64: 1, 256>}, {pipeline_mode = #tpu.pipeline_mode<synchronous>, transform_indices = @transform_8, window_bounds = array<i64: 1, 1>}, {transform_indices = @transform_9, window_bounds = array<i64: 1, 16>}]} {
    %c0 = arith.constant 0 : index
    %c0_0 = arith.constant 0 : index
    %0 = vector.load %arg1[%c0, %c0_0] : memref<16x784xf32, #tpu.memory_space<vmem>>, vector<16x784xf32>
    %1 = arith.truncf %0 : vector<16x784xf32> to vector<16x784xbf16>
    %c0_1 = arith.constant 0 : index
    %c0_2 = arith.constant 0 : index
    %2 = vector.load %arg2[%c0_1, %c0_2] : memref<784x1024xbf16, #tpu.memory_space<vmem>>, vector<784x1024xbf16>
    %cst = arith.constant dense<0.000000e+00> : vector<16x1024xf32>
    %3 = tpu.matmul %1, %2, %cst {dimension_numbers = #tpu.dot_dimension_numbers<[1], [0], [0], [1], [0, 0, 1, 1], [], []>} : vector<16x784xbf16>, vector<784x1024xbf16>, vector<16x1024xf32> -> vector<16x1024xf32>
    %c0_3 = arith.constant 0 : index
    %c0_4 = arith.constant 0 : index
    %4 = vector.load %arg3[%c0_3, %c0_4] : memref<1x1024xf32, #tpu.memory_space<vmem>>, vector<1x1024xf32>
    %5 = vector.broadcast %4 : vector<1x1024xf32> to vector<16x1024xf32>
    %6 = arith.addf %3, %5 : vector<16x1024xf32>
    %cst_5 = arith.constant 0.000000e+00 : f32
    %7 = vector.broadcast %cst_5 : f32 to vector<16x1024xf32>
    %8 = arith.cmpf ogt, %6, %7 : vector<16x1024xf32>
    %cst_6 = arith.constant 2.000000e-01 : f32
    %9 = vector.broadcast %cst_6 : f32 to vector<16x1024xf32>
    %10 = arith.mulf %9, %6 : vector<16x1024xf32>
    %11 = arith.select %8, %6, %10 : vector<16x1024xi1>, vector<16x1024xf32>
    %12 = arith.truncf %11 : vector<16x1024xf32> to vector<16x1024xbf16>
    %c0_7 = arith.constant 0 : index
    %c0_8 = arith.constant 0 : index
    %13 = vector.load %arg4[%c0_7, %c0_8] : memref<1024x512xbf16, #tpu.memory_space<vmem>>, vector<1024x512xbf16>
    %cst_9 = arith.constant dense<0.000000e+00> : vector<16x512xf32>
    %14 = tpu.matmul %12, %13, %cst_9 {dimension_numbers = #tpu.dot_dimension_numbers<[1], [0], [0], [1], [0, 0, 1, 1], [], []>} : vector<16x1024xbf16>, vector<1024x512xbf16>, vector<16x512xf32> -> vector<16x512xf32>
    %c0_10 = arith.constant 0 : index
    %c0_11 = arith.constant 0 : index
    %15 = vector.load %arg5[%c0_10, %c0_11] : memref<1x512xf32, #tpu.memory_space<vmem>>, vector<1x512xf32>
    %16 = vector.broadcast %15 : vector<1x512xf32> to vector<16x512xf32>
    %17 = arith.addf %14, %16 : vector<16x512xf32>
    %cst_12 = arith.constant 0.000000e+00 : f32
    %18 = vector.broadcast %cst_12 : f32 to vector<16x512xf32>
    %19 = arith.cmpf ogt, %17, %18 : vector<16x512xf32>
    %cst_13 = arith.constant 2.000000e-01 : f32
    %20 = vector.broadcast %cst_13 : f32 to vector<16x512xf32>
    %21 = arith.mulf %20, %17 : vector<16x512xf32>
    %22 = arith.select %19, %17, %21 : vector<16x512xi1>, vector<16x512xf32>
    %23 = arith.truncf %22 : vector<16x512xf32> to vector<16x512xbf16>
    %c0_14 = arith.constant 0 : index
    %c0_15 = arith.constant 0 : index
    %24 = vector.load %arg6[%c0_14, %c0_15] : memref<512x256xbf16, #tpu.memory_space<vmem>>, vector<512x256xbf16>
    %cst_16 = arith.constant dense<0.000000e+00> : vector<16x256xf32>
    %25 = tpu.matmul %23, %24, %cst_16 {dimension_numbers = #tpu.dot_dimension_numbers<[1], [0], [0], [1], [0, 0, 1, 1], [], []>} : vector<16x512xbf16>, vector<512x256xbf16>, vector<16x256xf32> -> vector<16x256xf32>
    %c0_17 = arith.constant 0 : index
    %c0_18 = arith.constant 0 : index
    %26 = vector.load %arg7[%c0_17, %c0_18] : memref<1x256xf32, #tpu.memory_space<vmem>>, vector<1x256xf32>
    %27 = vector.broadcast %26 : vector<1x256xf32> to vector<16x256xf32>
    %28 = arith.addf %25, %27 : vector<16x256xf32>
    %cst_19 = arith.constant 0.000000e+00 : f32
    %29 = vector.broadcast %cst_19 : f32 to vector<16x256xf32>
    %30 = arith.cmpf ogt, %28, %29 : vector<16x256xf32>
    %cst_20 = arith.constant 2.000000e-01 : f32
    %31 = vector.broadcast %cst_20 : f32 to vector<16x256xf32>
    %32 = arith.mulf %31, %28 : vector<16x256xf32>
    %33 = arith.select %30, %28, %32 : vector<16x256xi1>, vector<16x256xf32>
    %c0_21 = arith.constant 0 : index
    %c0_22 = arith.constant 0 : index
    %34 = vector.load %arg8[%c0_21, %c0_22] : memref<1x256xbf16, #tpu.memory_space<vmem>>, vector<1x256xbf16>
    %35 = arith.truncf %33 : vector<16x256xf32> to vector<16x256xbf16>
    %cst_23 = arith.constant dense<0.000000e+00> : vector<1x16xf32>
    %36 = tpu.matmul %34, %35, %cst_23 {dimension_numbers = #tpu.dot_dimension_numbers<[1], [1], [0], [0], [0, 0, 1, 0], [], []>} : vector<1x256xbf16>, vector<16x256xbf16>, vector<1x16xf32> -> vector<1x16xf32>
    %c0_24 = arith.constant 0 : index
    %c0_25 = arith.constant 0 : index
    %37 = vector.load %arg9[%c0_24, %c0_25] : memref<1x1xf32, #tpu.memory_space<vmem>>, vector<1x1xf32>
    %38 = vector.broadcast %37 : vector<1x1xf32> to vector<1x16xf32>
    %39 = arith.addf %36, %38 : vector<1x16xf32>
    %cst_26 = arith.constant 0.000000e+00 : f32
    %40 = vector.broadcast %cst_26 : f32 to vector<1x16xf32>
    %41 = arith.subf %40, %39 : vector<1x16xf32>
    %42 = math.exp %41 : vector<1x16xf32>
    %cst_27 = arith.constant 1.000000e+00 : f32
    %43 = vector.broadcast %cst_27 : f32 to vector<1x16xf32>
    %44 = arith.addf %43, %42 : vector<1x16xf32>
    %45 = tpu.reciprocal %44 {approx = true} : vector<1x16xf32> -> vector<1x16xf32>
    %c0_28 = arith.constant 0 : index
    %c0_29 = arith.constant 0 : index
    %46 = vector.load %arg10[%c0_28, %c0_29] : memref<1x16xf32, #tpu.memory_space<vmem>>, vector<1x16xf32>
    tpu.vector_store %arg10[%c0_28, %c0_29], %45 {strides = array<i32>} : memref<1x16xf32, #tpu.memory_space<vmem>>, vector<1x16xf32>,
    return
  }
  func.func @transform_0(%arg0: i32) -> (i32, i32) {
    %c0_i32 = arith.constant 0 : i32
    %c0_i32_0 = arith.constant 0 : i32
    return %arg0, %c0_i32 : i32, i32
  }
  func.func @transform_1(%arg0: i32) -> (i32, i32) {
    %c0_i32 = arith.constant 0 : i32
    %c0_i32_0 = arith.constant 0 : i32
    %c0_i32_1 = arith.constant 0 : i32
    return %c0_i32, %c0_i32_0 : i32, i32
  }
  func.func @transform_2(%arg0: i32) -> (i32, i32) {
    %c0_i32 = arith.constant 0 : i32
    %c0_i32_0 = arith.constant 0 : i32
    %c0_i32_1 = arith.constant 0 : i32
    return %c0_i32, %c0_i32_0 : i32, i32
  }
  func.func @transform_3(%arg0: i32) -> (i32, i32) {
    %c0_i32 = arith.constant 0 : i32
    %c0_i32_0 = arith.constant 0 : i32
    %c0_i32_1 = arith.constant 0 : i32
    return %c0_i32, %c0_i32_0 : i32, i32
  }
  func.func @transform_4(%arg0: i32) -> (i32, i32) {
    %c0_i32 = arith.constant 0 : i32
    %c0_i32_0 = arith.constant 0 : i32
    %c0_i32_1 = arith.constant 0 : i32
    return %c0_i32, %c0_i32_0 : i32, i32
  }
  func.func @transform_5(%arg0: i32) -> (i32, i32) {
    %c0_i32 = arith.constant 0 : i32
    %c0_i32_0 = arith.constant 0 : i32
    %c0_i32_1 = arith.constant 0 : i32
    return %c0_i32, %c0_i32_0 : i32, i32
  }
  func.func @transform_6(%arg0: i32) -> (i32, i32) {
    %c0_i32 = arith.constant 0 : i32
    %c0_i32_0 = arith.constant 0 : i32
    %c0_i32_1 = arith.constant 0 : i32
    return %c0_i32, %c0_i32_0 : i32, i32
  }
  func.func @transform_7(%arg0: i32) -> (i32, i32) {
    %c0_i32 = arith.constant 0 : i32
    %c0_i32_0 = arith.constant 0 : i32
    %c0_i32_1 = arith.constant 0 : i32
    return %c0_i32, %c0_i32_0 : i32, i32
  }
  func.func @transform_8(%arg0: i32) -> (i32, i32) {
    %c0_i32 = arith.constant 0 : i32
    %c0_i32_0 = arith.constant 0 : i32
    %c0_i32_1 = arith.constant 0 : i32
    return %c0_i32, %c0_i32_0 : i32, i32
  }
  func.func @transform_9(%arg0: i32) -> (i32, i32) {
    %c0_i32 = arith.constant 0 : i32
    %c0_i32_0 = arith.constant 0 : i32
    return %c0_i32, %arg0 : i32, i32
  }
}

</mosaic_0001>

<bundles_post_ra>
// kernel: discriminator_forward.1
= control target key start
LH: loop header
LB: loop body
LE: loop exit
PB: predicated region body
PF: predicated region fallthrough
CT: control target
= control target key end

     0   :  { %v7020_v42 = vmov 0   ;;  %vm2450_vm0 = vcmask 130048   ;;  %s9405_s1 = inlined_call_operand.vmem [shape: bf16[784,1024], index: 1, kind: input, shape index: {}]   ;;  %s9406_s0 = inlined_call_operand.vmem [shape: f32[16,784], index: 0, kind: input, shape index: {}]   ;;  %s9407_s3 = inlined_call_operand.vmem [shape: bf16[1024,512], index: 3, kind: input, shape index: {}]   ;;  %s9408_s2 = inlined_call_operand.vmem [shape: f32[1,1024], index: 2, kind: input, shape index: {}]   ;;  %s9409_s5 = inlined_call_operand.vmem [shape: bf16[512,256], index: 5, kind: input, shape index: {}]   ;;  %s9410_s4 = inlined_call_operand.vmem [shape: f32[1,512], index: 4, kind: input, shape index: {}]   ;;  %s9411_s7 = inlined_call_operand.vmem [shape: bf16[1,256], index: 7, kind: input, shape index: {}]   ;;  %s9412_s8 = inlined_call_operand.<no memory space> [shape: f32[1,1], index: 8, kind: input, shape index: {}]   ;;  %s9413_s6 = inlined_call_operand.vmem [shape: f32[1,256], index: 6, kind: input, shape index: {}]   ;;  %s9414_s9 = inlined_call_operand.vmem [shape: f32[1,16], index: 9, kind: output, shape index: {}]  }
   0x1   :  { %v56_v0 = vld [vmem:[%s9405_s1] sm:$0xff]  ;;  %6534 = vset.pattern.permute.xlu0 %v7020_v42  ;;  %v36_v54 = vld [vmem:[%s9406_s0 + $0x8] sm:$0xff]  ;;  %v38_v60 = vld [vmem:[%s9406_s0 + $0x18] sm:$0xff] }
   0x2   :  { %v60_v1 = vld [vmem:[%s9405_s1 + $0x20] sm:$0xff]  ;;  %v45_v63 = vld [vmem:[%s9406_s0 + $0x50] sm:$0xff] }
   0x3   :  { %v184_v2 = vld [vmem:[%s9405_s1 + $0x400] sm:$0xff]  ;;  %v5712_v3 = vcombine.high %v56_v0, %v60_v1  ;;  %v5711_v5 = vcombine.low %v56_v0, %v60_v1  ;;  %v7184_v1 = vpack.c.bf16 %v45_v63, %v38_v60 }
   0x4   :  { %v188_v4 = vld [vmem:[%s9405_s1 + $0x420] sm:$0xff] }
   0x5   :  { %v64_v6 = vld [vmem:[%s9405_s1 + $0x40] sm:$0xff]  ;;  %v5840_v8 = vcombine.high %v184_v2, %v188_v4  ;;  %v5839_v9 = vcombine.low %v184_v2, %v188_v4  ;;  %2454 = vmatprep.subr.bf16.mxu1 %v5712_v3  ;;  %2529 = vmatprep.mubr.bf16.mxu0 %v7184_v1 }
   0x6   :  { %v68_v7 = vld [vmem:[%s9405_s1 + $0x60] sm:$0xff]  ;;  %2455 = vmatpush1.bf16.msra.mxu1 %v5711_v5 }
   0x7   :  { %v5720_v10 = vcombine.high %v64_v6, %v68_v7  ;;  %v192_v11 = vld [vmem:[%s9405_s1 + $0x440] sm:$0xff]  ;;  %2497 = vmatprep.subr.bf16.mxu0 %v5840_v8  ;;  %v5719_v18 = vcombine.low %v64_v6, %v68_v7 }
   0x8   :  { %v196_v12 = vld [vmem:[%s9405_s1 + $0x460] sm:$0xff]  ;;  %2498 = vmatpush1.bf16.msra.mxu0 %v5839_v9 }
   0x9   :  { %v72_v13 = vld [vmem:[%s9405_s1 + $0x80] sm:$0xff]  ;;  %v5848_v14 = vcombine.high %v192_v11, %v196_v12  ;;  %2456 = vmatprep.subr.bf16.mxu1 %v5720_v10  ;;  %v5847_v19 = vcombine.low %v192_v11, %v196_v12 }
   0xa   :  { %v76_v15 = vld [vmem:[%s9405_s1 + $0xa0] sm:$0xff]  ;;  %2457 = vmatpush1.bf16.msra.mxu1 %v5719_v18 }
   0xb   :  { %v200_v16 = vld [vmem:[%s9405_s1 + $0x480] sm:$0xff]  ;;  %v5728_v20 = vcombine.high %v72_v13, %v76_v15  ;;  %2499 = vmatprep.subr.bf16.mxu0 %v5848_v14  ;;  %v5727_v26 = vcombine.low %v72_v13, %v76_v15 }
   0xc   :  { %v204_v17 = vld [vmem:[%s9405_s1 + $0x4a0] sm:$0xff]  ;;  %2500 = vmatpush1.bf16.msra.mxu0 %v5847_v19 }
   0xd   :  { %v5856_v21 = vcombine.high %v200_v16, %v204_v17  ;;  %v80_v22 = vld [vmem:[%s9405_s1 + $0xc0] sm:$0xff]  ;;  %2458 = vmatprep.subr.bf16.mxu1 %v5728_v20  ;;  %v5855_v27 = vcombine.low %v200_v16, %v204_v17 }
   0xe   :  { %v84_v23 = vld [vmem:[%s9405_s1 + $0xe0] sm:$0xff]  ;;  %2459 = vmatpush1.bf16.msra.mxu1 %v5727_v26 }
   0xf   :  { %v208_v24 = vld [vmem:[%s9405_s1 + $0x4c0] sm:$0xff]  ;;  %v5736_v28 = vcombine.high %v80_v22, %v84_v23  ;;  %2501 = vmatprep.subr.bf16.mxu0 %v5856_v21  ;;  %v5735_v34 = vcombine.low %v80_v22, %v84_v23 }
  0x10   :  { %v212_v25 = vld [vmem:[%s9405_s1 + $0x4e0] sm:$0xff]  ;;  %2502 = vmatpush1.bf16.msra.mxu0 %v5855_v27 }
  0x11   :  { %v5864_v29 = vcombine.high %v208_v24, %v212_v25  ;;  %v88_v30 = vld [vmem:[%s9405_s1 + $0x100] sm:$0xff]  ;;  %2460 = vmatprep.subr.bf16.mxu1 %v5736_v28  ;;  %v5863_v35 = vcombine.low %v208_v24, %v212_v25 }
  0x12   :  { %v92_v31 = vld [vmem:[%s9405_s1 + $0x120] sm:$0xff]  ;;  %2461 = vmatpush1.bf16.msra.mxu1 %v5735_v34 }
  0x13   :  { %v216_v32 = vld [vmem:[%s9405_s1 + $0x500] sm:$0xff]  ;;  %v5744_v36 = vcombine.high %v88_v30, %v92_v31  ;;  %2503 = vmatprep.subr.bf16.mxu0 %v5864_v29  ;;  %v5743_v43 = vcombine.low %v88_v30, %v92_v31 }
  0x14   :  { %v220_v33 = vld [vmem:[%s9405_s1 + $0x520] sm:$0xff]  ;;  %2504 = vmatpush1.bf16.msra.mxu0 %v5863_v35 }
  0x15   :  { %v5872_v37 = vcombine.high %v216_v32, %v220_v33  ;;  %v96_v38 = vld [vmem:[%s9405_s1 + $0x140] sm:$0xff]  ;;  %2462 = vmatprep.subr.bf16.mxu1 %v5744_v36  ;;  %v5871_v44 = vcombine.low %v216_v32, %v220_v33 }
  0x16   :  { %v100_v39 = vld [vmem:[%s9405_s1 + $0x160] sm:$0xff]  ;;  %2463 = vmatpush1.bf16.msra.mxu1 %v5743_v43 }
  0x17   :  { %v224_v40 = vld [vmem:[%s9405_s1 + $0x540] sm:$0xff]  ;;  %v5752_v45 = vcombine.high %v96_v38, %v100_v39  ;;  %2505 = vmatprep.subr.bf16.mxu0 %v5872_v37  ;;  %v5751_v51 = vcombine.low %v96_v38, %v100_v39 }
  0x18   :  { %v228_v41 = vld [vmem:[%s9405_s1 + $0x560] sm:$0xff]  ;;  %2506 = vmatpush1.bf16.msra.mxu0 %v5871_v44 }
  0x19   :  { %v5880_v46 = vcombine.high %v224_v40, %v228_v41  ;;  %v104_v47 = vld [vmem:[%s9405_s1 + $0x180] sm:$0xff]  ;;  %2464 = vmatprep.subr.bf16.mxu1 %v5752_v45  ;;  %v5879_v52 = vcombine.low %v224_v40, %v228_v41 }
  0x1a   :  { %v108_v48 = vld [vmem:[%s9405_s1 + $0x1a0] sm:$0xff]  ;;  %2465 = vmatpush1.bf16.msra.mxu1 %v5751_v51 }
  0x1b   :  { %v232_v49 = vld [vmem:[%s9405_s1 + $0x580] sm:$0xff]  ;;  %v5760_v53 = vcombine.high %v104_v47, %v108_v48  ;;  %2507 = vmatprep.subr.bf16.mxu0 %v5880_v46  ;;  %v5759_v0 = vcombine.low %v104_v47, %v108_v48 }
  0x1c   :  { %v236_v50 = vld [vmem:[%s9405_s1 + $0x5a0] sm:$0xff]  ;;  %2508 = vmatpush1.bf16.msra.mxu0 %v5879_v52 }
  0x1d   :  { %v43_v55 = vld [vmem:[%s9406_s0 + $0x40] sm:$0xff]  ;;  %v5888_v56 = vcombine.high %v232_v49, %v236_v50  ;;  %2466 = vmatprep.subr.bf16.mxu1 %v5760_v53  ;;  %v5887_v2 = vcombine.low %v232_v49, %v236_v50 }
  0x1e   :  { %v112_v57 = vld [vmem:[%s9405_s1 + $0x1c0] sm:$0xff]  ;;  %v7169_v59 = vpack.c.bf16 %v43_v55, %v36_v54  ;;  %2467 = vmatpush1.bf16.msra.mxu1 %v5759_v0 }
  0x1f   :  { %v116_v58 = vld [vmem:[%s9405_s1 + $0x1e0] sm:$0xff]  ;;  %2509 = vmatprep.subr.bf16.mxu0 %v5888_v56 }
  0x20   :  { %v240_v61 = vld [vmem:[%s9405_s1 + $0x5c0] sm:$0xff]  ;;  %2486 = vmatprep.mubr.bf16.mxu1 %v7169_v59  ;;  %v5768_v3 = vcombine.high %v112_v57, %v116_v58  ;;  %v5767_v9 = vcombine.low %v112_v57, %v116_v58  ;;  %2510 = vmatpush1.bf16.msra.mxu0 %v5887_v2 }
  0x21   :  { %v244_v62 = vld [vmem:[%s9405_s1 + $0x5e0] sm:$0xff] }
  0x22   :  { %v5896_v4 = vcombine.high %v240_v61, %v244_v62  ;;  %v120_v5 = vld [vmem:[%s9405_s1 + $0x200] sm:$0xff]  ;;  %2468 = vmatprep.subr.bf16.mxu1 %v5768_v3  ;;  %v5895_v10 = vcombine.low %v240_v61, %v244_v62 }
  0x23   :  { %v124_v6 = vld [vmem:[%s9405_s1 + $0x220] sm:$0xff]  ;;  %2469 = vmatpush1.bf16.msra.mxu1 %v5767_v9  ;;  %v61_v9 = vld [vmem:[%s9405_s1 + $0x28] sm:$0xff] }
  0x24   :  { %v248_v7 = vld [vmem:[%s9405_s1 + $0x600] sm:$0xff]  ;;  %v5776_v11 = vcombine.high %v120_v5, %v124_v6  ;;  %2511 = vmatprep.subr.bf16.mxu0 %v5896_v4  ;;  %v5775_v17 = vcombine.low %v120_v5, %v124_v6 }
  0x25   :  { %v252_v8 = vld [vmem:[%s9405_s1 + $0x620] sm:$0xff]  ;;  %2512 = vmatpush1.bf16.msra.mxu0 %v5895_v10 }
  0x26   :  { %v5904_v12 = vcombine.high %v248_v7, %v252_v8  ;;  %v128_v13 = vld [vmem:[%s9405_s1 + $0x240] sm:$0xff]  ;;  %2470 = vmatprep.subr.bf16.mxu1 %v5776_v11  ;;  %v5903_v18 = vcombine.low %v248_v7, %v252_v8  ;;  %v57_v8 = vld [vmem:[%s9405_s1 + $0x8] sm:$0xff] }
  0x27   :  { %v132_v14 = vld [vmem:[%s9405_s1 + $0x260] sm:$0xff]  ;;  %2471 = vmatpush1.bf16.msra.mxu1 %v5775_v17  ;;  %v37_v17 = vld [vmem:[%s9406_s0 + $0x10] sm:$0xff] }
  0x28   :  { %v256_v15 = vld [vmem:[%s9405_s1 + $0x640] sm:$0xff]  ;;  %v5784_v19 = vcombine.high %v128_v13, %v132_v14  ;;  %2513 = vmatprep.subr.bf16.mxu0 %v5904_v12  ;;  %v5783_v25 = vcombine.low %v128_v13, %v132_v14  ;;  %v42_v14 = vld [vmem:[%s9406_s0 + $0x38] sm:$0xff] }
  0x29   :  { %v260_v16 = vld [vmem:[%s9405_s1 + $0x660] sm:$0xff]  ;;  %2514 = vmatpush1.bf16.msra.mxu0 %v5903_v18  ;;  %v44_v18 = vld [vmem:[%s9406_s0 + $0x48] sm:$0xff] }
  0x2a   :  { %v5912_v20 = vcombine.high %v256_v15, %v260_v16  ;;  %v136_v21 = vld [vmem:[%s9405_s1 + $0x280] sm:$0xff]  ;;  %2472 = vmatprep.subr.bf16.mxu1 %v5784_v19  ;;  %v5911_v26 = vcombine.low %v256_v15, %v260_v16  ;;  %v5714_v16 = vcombine.high %v57_v8, %v61_v9 }
  0x2b   :  { %v140_v22 = vld [vmem:[%s9405_s1 + $0x2a0] sm:$0xff]  ;;  %2473 = vmatpush1.bf16.msra.mxu1 %v5783_v25  ;;  %v40_v25 = vld [vmem:[%s9406_s0 + $0x28] sm:$0xff] }
  0x2c   :  { %v264_v23 = vld [vmem:[%s9405_s1 + $0x680] sm:$0xff]  ;;  %v5792_v27 = vcombine.high %v136_v21, %v140_v22  ;;  %2515 = vmatprep.subr.bf16.mxu0 %v5912_v20  ;;  %v5791_v33 = vcombine.low %v136_v21, %v140_v22  ;;  %v65_v21 = vld [vmem:[%s9405_s1 + $0x48] sm:$0xff] }
  0x2d   :  { %v268_v24 = vld [vmem:[%s9405_s1 + $0x6a0] sm:$0xff]  ;;  %2516 = vmatpush1.bf16.msra.mxu0 %v5911_v26  ;;  %v69_v22 = vld [vmem:[%s9405_s1 + $0x68] sm:$0xff] }
  0x2e   :  { %v5920_v28 = vcombine.high %v264_v23, %v268_v24  ;;  %v144_v29 = vld [vmem:[%s9405_s1 + $0x2c0] sm:$0xff]  ;;  %2474 = vmatprep.subr.bf16.mxu1 %v5792_v27  ;;  %v5919_v34 = vcombine.low %v264_v23, %v268_v24  ;;  %v5713_v27 = vcombine.low %v57_v8, %v61_v9 }
  0x2f   :  { %v148_v30 = vld [vmem:[%s9405_s1 + $0x2e0] sm:$0xff]  ;;  %2475 = vmatpush1.bf16.msra.mxu1 %v5791_v33  ;;  %v77_v33 = vld [vmem:[%s9405_s1 + $0xa8] sm:$0xff] }
  0x30   :  { %v272_v31 = vld [vmem:[%s9405_s1 + $0x6c0] sm:$0xff]  ;;  %v5800_v35 = vcombine.high %v144_v29, %v148_v30  ;;  %2517 = vmatprep.subr.bf16.mxu0 %v5920_v28  ;;  %v5799_v41 = vcombine.low %v144_v29, %v148_v30  ;;  %v7327_v28 = vpack.c.bf16 %v44_v18, %v37_v17  ;;  %v5722_v30 = vcombine.high %v65_v21, %v69_v22 }
  0x31   :  { %v276_v32 = vld [vmem:[%s9405_s1 + $0x6e0] sm:$0xff]  ;;  %2518 = vmatpush1.bf16.msra.mxu0 %v5919_v34 }
  0x32   :  { %v5928_v36 = vcombine.high %v272_v31, %v276_v32  ;;  %v152_v37 = vld [vmem:[%s9405_s1 + $0x300] sm:$0xff]  ;;  %2476 = vmatprep.subr.bf16.mxu1 %v5800_v35  ;;  %v5927_v43 = vcombine.low %v272_v31, %v276_v32  ;;  %v73_v32 = vld [vmem:[%s9405_s1 + $0x88] sm:$0xff] }
  0x33   :  { %v156_v38 = vld [vmem:[%s9405_s1 + $0x320] sm:$0xff]  ;;  %2477 = vmatpush1.bf16.msra.mxu1 %v5799_v41  ;;  %v81_v41 = vld [vmem:[%s9405_s1 + $0xc8] sm:$0xff] }
  0x34   :  { %v280_v39 = vld [vmem:[%s9405_s1 + $0x700] sm:$0xff]  ;;  %v5808_v44 = vcombine.high %v152_v37, %v156_v38  ;;  %2519 = vmatprep.subr.bf16.mxu0 %v5928_v36  ;;  %v5807_v50 = vcombine.low %v152_v37, %v156_v38  ;;  %v5721_v37 = vcombine.low %v65_v21, %v69_v22  ;;  %v125_v21 = vld [vmem:[%s9405_s1 + $0x228] sm:$0xff] }
  0x35   :  { %v284_v40 = vld [vmem:[%s9405_s1 + $0x720] sm:$0xff]  ;;  %2520 = vmatpush1.bf16.msra.mxu0 %v5927_v43  ;;  %v85_v43 = vld [vmem:[%s9405_s1 + $0xe8] sm:$0xff] }
  0x36   :  { %v5936_v45 = vcombine.high %v280_v39, %v284_v40  ;;  %v160_v46 = vld [vmem:[%s9405_s1 + $0x340] sm:$0xff]  ;;  %2478 = vmatprep.subr.bf16.mxu1 %v5808_v44  ;;  %v5935_v51 = vcombine.low %v280_v39, %v284_v40  ;;  %v5730_v39 = vcombine.high %v73_v32, %v77_v33 }
  0x37   :  { %v164_v47 = vld [vmem:[%s9405_s1 + $0x360] sm:$0xff]  ;;  %2479 = vmatpush1.bf16.msra.mxu1 %v5807_v50  ;;  %v89_v50 = vld [vmem:[%s9405_s1 + $0x108] sm:$0xff] }
  0x38   :  { %v288_v48 = vld [vmem:[%s9405_s1 + $0x740] sm:$0xff]  ;;  %v5816_v52 = vcombine.high %v160_v46, %v164_v47  ;;  %2521 = vmatprep.subr.bf16.mxu0 %v5936_v45  ;;  %v5815_v58 = vcombine.low %v160_v46, %v164_v47  ;;  %v5729_v46 = vcombine.low %v73_v32, %v77_v33 }
  0x39   :  { %v292_v49 = vld [vmem:[%s9405_s1 + $0x760] sm:$0xff]  ;;  %2522 = vmatpush1.bf16.msra.mxu0 %v5935_v51  ;;  %v93_v51 = vld [vmem:[%s9405_s1 + $0x128] sm:$0xff] }
  0x3a   :  { %v5944_v53 = vcombine.high %v288_v48, %v292_v49  ;;  %v168_v54 = vld [vmem:[%s9405_s1 + $0x380] sm:$0xff]  ;;  %2480 = vmatprep.subr.bf16.mxu1 %v5816_v52  ;;  %v5943_v60 = vcombine.low %v288_v48, %v292_v49  ;;  %v5738_v48 = vcombine.high %v81_v41, %v85_v43 }
  0x3b   :  { %v172_v55 = vld [vmem:[%s9405_s1 + $0x3a0] sm:$0xff]  ;;  %2481 = vmatpush1.bf16.msra.mxu1 %v5815_v58  ;;  %v97_v58 = vld [vmem:[%s9405_s1 + $0x148] sm:$0xff] }
  0x3c   :  { %v296_v56 = vld [vmem:[%s9405_s1 + $0x780] sm:$0xff]  ;;  %v5824_v61 = vcombine.high %v168_v54, %v172_v55  ;;  %2523 = vmatprep.subr.bf16.mxu0 %v5944_v53  ;;  %v5823_v4 = vcombine.low %v168_v54, %v172_v55  ;;  %v5737_v54 = vcombine.low %v81_v41, %v85_v43 }
  0x3d   :  { %v300_v57 = vld [vmem:[%s9405_s1 + $0x7a0] sm:$0xff]  ;;  %2524 = vmatpush1.bf16.msra.mxu0 %v5943_v60  ;;  %v101_v60 = vld [vmem:[%s9405_s1 + $0x168] sm:$0xff] }
  0x3e   :  { %v5952_v62 = vcombine.high %v296_v56, %v300_v57  ;;  %v176_v63 = vld [vmem:[%s9405_s1 + $0x3c0] sm:$0xff]  ;;  %2482 = vmatprep.subr.bf16.mxu1 %v5824_v61  ;;  %v5951_v5 = vcombine.low %v296_v56, %v300_v57  ;;  %v5746_v56 = vcombine.high %v89_v50, %v93_v51  ;;  %v5753_v8 = vcombine.low %v97_v58, %v101_v60 }
  0x3f   :  { %v180_v0 = vld [vmem:[%s9405_s1 + $0x3e0] sm:$0xff]  ;;  %2483 = vmatpush1.bf16.msra.mxu1 %v5823_v4  ;;  %v105_v4 = vld [vmem:[%s9405_s1 + $0x188] sm:$0xff] }
  0x40   :  { %v304_v2 = vld [vmem:[%s9405_s1 + $0x7c0] sm:$0xff]  ;;  %v5832_v6 = vcombine.high %v176_v63, %v180_v0  ;;  %2525 = vmatprep.subr.bf16.mxu0 %v5952_v62  ;;  %v5831_v12 = vcombine.low %v176_v63, %v180_v0  ;;  %v5745_v63 = vcombine.low %v89_v50, %v93_v51 }
  0x41   :  { %v308_v3 = vld [vmem:[%s9405_s1 + $0x7e0] sm:$0xff]  ;;  %2526 = vmatpush1.bf16.msra.mxu0 %v5951_v5  ;;  %v109_v5 = vld [vmem:[%s9405_s1 + $0x1a8] sm:$0xff] }
  0x42   :  { %v5960_v7 = vcombine.high %v304_v2, %v308_v3  ;;  %v312_v10 = vld [vmem:[%s9405_s1 + $0x800] sm:$0xff]  ;;  %2484 = vmatprep.subr.bf16.mxu1 %v5832_v6  ;;  %v5959_v15 = vcombine.low %v304_v2, %v308_v3  ;;  %v5754_v2 = vcombine.high %v97_v58, %v101_v60 }
  0x43   :  { %v316_v11 = vld [vmem:[%s9405_s1 + $0x820] sm:$0xff]  ;;  %2485 = vmatpush1.bf16.msra.mxu1 %v5831_v12  ;;  %v113_v12 = vld [vmem:[%s9405_s1 + $0x1c8] sm:$0xff] }
  0x44   :  { %v35_v13 = vld [vmem:[%s9406_s0] sm:$0xff]  ;;  %2527 = vmatprep.subr.bf16.mxu0 %v5960_v7  ;;  %v5968_v19 = vcombine.high %v312_v10, %v316_v11  ;;  %v5967_v29 = vcombine.low %v312_v10, %v316_v11  ;;  %2626 = vmatprep.subr.bf16.mxu1 %v5714_v16  ;;  %v5762_v10 = vcombine.high %v105_v4, %v109_v5 }
  0x45   :  { %v320_v20 = vld [vmem:[%s9405_s1 + $0x840] sm:$0xff]  ;;  %v7316_v23 = vpack.c.bf16 %v42_v14, %v35_v13  ;;  %2528 = vmatpush1.bf16.msra.mxu0 %v5959_v15  ;;  %v117_v13 = vld [vmem:[%s9405_s1 + $0x1e8] sm:$0xff]  ;;  %v5761_v16 = vcombine.low %v105_v4, %v109_v5 }
  0x46   :  { %v324_v24 = vld [vmem:[%s9405_s1 + $0x860] sm:$0xff]  ;;  %2540 = vmatprep.subr.bf16.mxu0 %v5968_v19  ;;  %v5770_v18 = vcombine.high %v113_v12, %v117_v13 }
  0x47   :  { %v47_v26 = vld [vmem:[%s9406_s0 + $0x60] sm:$0xff]  ;;  %v5976_v31 = vcombine.high %v320_v20, %v324_v24  ;;  %2487 = vmatmul.mubr.bf16.vlgmr.msra.gmra.mrb[0].mxu1 %v7316_v23  ;;  %v5975_v38 = vcombine.low %v320_v20, %v324_v24  ;;  %v121_v20 = vld [vmem:[%s9405_s1 + $0x208] sm:$0xff] }
  0x48   :  { %v7335_v34 = vpack.c.bf16 %v47_v26, %v40_v25  ;;  %v328_v35 = vld [vmem:[%s9405_s1 + $0x880] sm:$0xff]  ;;  %2530 = vmatmul.mubr.bf16.vlgmr.msra.gmra.mrb[0].mxu0 %v7327_v28  ;;  %2627 = vmatpush1.bf16.msra.mxu1 %v5713_v27  ;;  %v5769_v25 = vcombine.low %v113_v12, %v117_v13  ;;  %v5778_v27 = vcombine.high %v121_v20, %v125_v21 }
  0x49   :  { %v332_v36 = vld [vmem:[%s9405_s1 + $0x8a0] sm:$0xff]  ;;  %2541 = vmatpush1.bf16.msra.mxu0 %v5967_v29  ;;  %2628 = vmatprep.subr.bf16.mxu1 %v5722_v30  ;;  %v129_v30 = vld [vmem:[%s9405_s1 + $0x248] sm:$0xff] }
  0x4a   :  { %2542 = vmatprep.subr.bf16.mxu0 %v5976_v31  ;;  %v5984_v40 = vcombine.high %v328_v35, %v332_v36  ;;  %2572 = vmatprep.mubr.bf16.mxu0 %v7335_v34  ;;  %v336_v44 = vld [vmem:[%s9405_s1 + $0x8c0] sm:$0xff]  ;;  %v5983_v47 = vcombine.low %v328_v35, %v332_v36  ;;  %v133_v31 = vld [vmem:[%s9405_s1 + $0x268] sm:$0xff]  ;;  %v5777_v35 = vcombine.low %v121_v20, %v125_v21 }
  0x4b   :  { %v340_v45 = vld [vmem:[%s9405_s1 + $0x8e0] sm:$0xff]  ;;  %2658 = vmatprep.mubr.bf16.mxu1 %v7169_v59 }
  0x4c   :  { %2629 = vmatpush1.bf16.msra.mxu1 %v5721_v37  ;;  %v5992_v49 = vcombine.high %v336_v44, %v340_v45  ;;  %v344_v52 = vld [vmem:[%s9405_s1 + $0x900] sm:$0xff]  ;;  %v5991_v55 = vcombine.low %v336_v44, %v340_v45  ;;  %v5786_v37 = vcombine.high %v129_v30, %v133_v31  ;;  %v5785_v44 = vcombine.low %v129_v30, %v133_v31 }
  0x4d   :  { %2543 = vmatpush1.bf16.msra.mxu0 %v5975_v38  ;;  %2630 = vmatprep.subr.bf16.mxu1 %v5730_v39  ;;  %v348_v53 = vld [vmem:[%s9405_s1 + $0x920] sm:$0xff]  ;;  %v137_v39 = vld [vmem:[%s9405_s1 + $0x288] sm:$0xff] }
  0x4e   :  { %2544 = vmatprep.subr.bf16.mxu0 %v5984_v40  ;;  %v6000_v57 = vcombine.high %v344_v52, %v348_v53  ;;  %v352_v61 = vld [vmem:[%s9405_s1 + $0x940] sm:$0xff]  ;;  %v5999_v0 = vcombine.low %v344_v52, %v348_v53  ;;  %v141_v40 = vld [vmem:[%s9405_s1 + $0x2a8] sm:$0xff] }
  0x4f   :  { %v356_v62 = vld [vmem:[%s9405_s1 + $0x960] sm:$0xff]  ;;  %v5793_v52 = vcombine.low %v137_v39, %v141_v40 }
  0x50   :  { %2631 = vmatpush1.bf16.msra.mxu1 %v5729_v46  ;;  %v6008_v3 = vcombine.high %v352_v61, %v356_v62  ;;  %v360_v6 = vld [vmem:[%s9405_s1 + $0x980] sm:$0xff]  ;;  %v6007_v9 = vcombine.low %v352_v61, %v356_v62  ;;  %v5794_v46 = vcombine.high %v137_v39, %v141_v40  ;;  %v197_v39 = vld [vmem:[%s9405_s1 + $0x468] sm:$0xff] }
  0x51   :  { %2545 = vmatpush1.bf16.msra.mxu0 %v5983_v47  ;;  %2632 = vmatprep.subr.bf16.mxu1 %v5738_v48  ;;  %v364_v7 = vld [vmem:[%s9405_s1 + $0x9a0] sm:$0xff]  ;;  %v145_v48 = vld [vmem:[%s9405_s1 + $0x2c8] sm:$0xff] }
  0x52   :  { %2546 = vmatprep.subr.bf16.mxu0 %v5992_v49  ;;  %v6016_v11 = vcombine.high %v360_v6, %v364_v7  ;;  %v368_v14 = vld [vmem:[%s9405_s1 + $0x9c0] sm:$0xff]  ;;  %v6015_v17 = vcombine.low %v360_v6, %v364_v7  ;;  %v149_v49 = vld [vmem:[%s9405_s1 + $0x2e8] sm:$0xff] }
  0x53   :  { %v372_v15 = vld [vmem:[%s9405_s1 + $0x9e0] sm:$0xff]  ;;  %v5801_v61 = vcombine.low %v145_v48, %v149_v49 }
  0x54   :  { %2633 = vmatpush1.bf16.msra.mxu1 %v5737_v54  ;;  %v6024_v19 = vcombine.high %v368_v14, %v372_v15  ;;  %v376_v22 = vld [vmem:[%s9405_s1 + $0xa00] sm:$0xff]  ;;  %v6023_v26 = vcombine.low %v368_v14, %v372_v15  ;;  %v5802_v54 = vcombine.high %v145_v48, %v149_v49  ;;  %v201_v48 = vld [vmem:[%s9405_s1 + $0x488] sm:$0xff] }
  0x55   :  { %2547 = vmatpush1.bf16.msra.mxu0 %v5991_v55  ;;  %2634 = vmatprep.subr.bf16.mxu1 %v5746_v56  ;;  %v380_v24 = vld [vmem:[%s9405_s1 + $0xa20] sm:$0xff]  ;;  %v153_v56 = vld [vmem:[%s9405_s1 + $0x308] sm:$0xff] }
  0x56   :  { %2548 = vmatprep.subr.bf16.mxu0 %v6000_v57  ;;  %v6032_v29 = vcombine.high %v376_v22, %v380_v24  ;;  %v384_v32 = vld [vmem:[%s9405_s1 + $0xa40] sm:$0xff]  ;;  %v6031_v36 = vcombine.low %v376_v22, %v380_v24  ;;  %v157_v57 = vld [vmem:[%s9405_s1 + $0x328] sm:$0xff] }
  0x57   :  { %v388_v33 = vld [vmem:[%s9405_s1 + $0xa60] sm:$0xff]  ;;  %v5809_v6 = vcombine.low %v153_v56, %v157_v57  ;;  %v205_v49 = vld [vmem:[%s9405_s1 + $0x4a8] sm:$0xff] }
  0x58   :  { %2635 = vmatpush1.bf16.msra.mxu1 %v5745_v63  ;;  %v6040_v38 = vcombine.high %v384_v32, %v388_v33  ;;  %v392_v41 = vld [vmem:[%s9405_s1 + $0xa80] sm:$0xff]  ;;  %v6039_v45 = vcombine.low %v384_v32, %v388_v33  ;;  %v5810_v63 = vcombine.high %v153_v56, %v157_v57  ;;  %v41_v56 = vld [vmem:[%s9406_s0 + $0x30] sm:$0xff]  ;;  %v48_v57 = vld [vmem:[%s9406_s0 + $0x68] sm:$0xff] }
  0x59   :  { %2549 = vmatpush1.bf16.msra.mxu0 %v5999_v0  ;;  %2636 = vmatprep.subr.bf16.mxu1 %v5754_v2  ;;  %v396_v43 = vld [vmem:[%s9405_s1 + $0xaa0] sm:$0xff]  ;;  %v161_v2 = vld [vmem:[%s9405_s1 + $0x348] sm:$0xff] }
  0x5a   :  { %2550 = vmatprep.subr.bf16.mxu0 %v6008_v3  ;;  %v6048_v47 = vcombine.high %v392_v41, %v396_v43  ;;  %v400_v50 = vld [vmem:[%s9405_s1 + $0xac0] sm:$0xff]  ;;  %v6047_v53 = vcombine.low %v392_v41, %v396_v43  ;;  %v165_v3 = vld [vmem:[%s9405_s1 + $0x368] sm:$0xff]  ;;  %v58_v41 = vld [vmem:[%s9405_s1 + $0x10] sm:$0xff] }
  0x5b   :  { %v404_v51 = vld [vmem:[%s9405_s1 + $0xae0] sm:$0xff]  ;;  %v5817_v14 = vcombine.low %v161_v2, %v165_v3  ;;  %v62_v43 = vld [vmem:[%s9405_s1 + $0x30] sm:$0xff] }
  0x5c   :  { %2637 = vmatpush1.bf16.msra.mxu1 %v5753_v8  ;;  %v6056_v55 = vcombine.high %v400_v50, %v404_v51  ;;  %v408_v58 = vld [vmem:[%s9405_s1 + $0xb00] sm:$0xff]  ;;  %v6055_v62 = vcombine.low %v400_v50, %v404_v51  ;;  %v5818_v8 = vcombine.high %v161_v2, %v165_v3  ;;  %v5716_v50 = vcombine.high %v58_v41, %v62_v43 }
  0x5d   :  { %2551 = vmatpush1.bf16.msra.mxu0 %v6007_v9  ;;  %2638 = vmatprep.subr.bf16.mxu1 %v5762_v10  ;;  %v412_v60 = vld [vmem:[%s9405_s1 + $0xb20] sm:$0xff]  ;;  %v169_v10 = vld [vmem:[%s9405_s1 + $0x388] sm:$0xff]  ;;  %v5715_v3 = vcombine.low %v58_v41, %v62_v43 }
  0x5e   :  { %2552 = vmatprep.subr.bf16.mxu0 %v6016_v11  ;;  %v6064_v0 = vcombine.high %v408_v58, %v412_v60  ;;  %v416_v4 = vld [vmem:[%s9405_s1 + $0xb40] sm:$0xff]  ;;  %v6063_v7 = vcombine.low %v408_v58, %v412_v60  ;;  %v173_v11 = vld [vmem:[%s9405_s1 + $0x3a8] sm:$0xff] }
  0x5f   :  { %v420_v5 = vld [vmem:[%s9405_s1 + $0xb60] sm:$0xff]  ;;  %v5825_v22 = vcombine.low %v169_v10, %v173_v11  ;;  %v217_v60 = vld [vmem:[%s9405_s1 + $0x508] sm:$0xff] }
  0x60   :  { %2639 = vmatpush1.bf16.msra.mxu1 %v5761_v16  ;;  %v6072_v9 = vcombine.high %v416_v4, %v420_v5  ;;  %v424_v12 = vld [vmem:[%s9405_s1 + $0xb80] sm:$0xff]  ;;  %v6071_v15 = vcombine.low %v416_v4, %v420_v5  ;;  %v5826_v16 = vcombine.high %v169_v10, %v173_v11  ;;  %v257_v41 = vld [vmem:[%s9405_s1 + $0x648] sm:$0xff] }
  0x61   :  { %2553 = vmatpush1.bf16.msra.mxu0 %v6015_v17  ;;  %2640 = vmatprep.subr.bf16.mxu1 %v5770_v18  ;;  %v428_v13 = vld [vmem:[%s9405_s1 + $0xba0] sm:$0xff]  ;;  %v177_v18 = vld [vmem:[%s9405_s1 + $0x3c8] sm:$0xff] }
  0x62   :  { %2554 = vmatprep.subr.bf16.mxu0 %v6024_v19  ;;  %v6080_v17 = vcombine.high %v424_v12, %v428_v13  ;;  %v181_v19 = vld [vmem:[%s9405_s1 + $0x3e8] sm:$0xff]  ;;  %v432_v20 = vld [vmem:[%s9405_s1 + $0xbc0] sm:$0xff]  ;;  %v6079_v24 = vcombine.low %v424_v12, %v428_v13 }
  0x63   :  { %v436_v21 = vld [vmem:[%s9405_s1 + $0xbe0] sm:$0xff]  ;;  %v5833_v32 = vcombine.low %v177_v18, %v181_v19  ;;  %v261_v43 = vld [vmem:[%s9405_s1 + $0x668] sm:$0xff] }
  0x64   :  { %2641 = vmatpush1.bf16.msra.mxu1 %v5769_v25  ;;  %v5834_v25 = vcombine.high %v177_v18, %v181_v19  ;;  %v440_v30 = vld [vmem:[%s9405_s1 + $0xc00] sm:$0xff]  ;;  %v6087_v33 = vcombine.low %v432_v20, %v436_v21 }
  0x65   :  { %2555 = vmatpush1.bf16.msra.mxu0 %v6023_v26  ;;  %2642 = vmatprep.subr.bf16.mxu1 %v5778_v27  ;;  %v6088_v26 = vcombine.high %v432_v20, %v436_v21  ;;  %v185_v27 = vld [vmem:[%s9405_s1 + $0x408] sm:$0xff]  ;;  %v444_v31 = vld [vmem:[%s9405_s1 + $0xc20] sm:$0xff] }
  0x66   :  { %2556 = vmatprep.subr.bf16.mxu0 %v6032_v29  ;;  %v189_v29 = vld [vmem:[%s9405_s1 + $0x428] sm:$0xff]  ;;  %v6096_v40 = vcombine.high %v440_v30, %v444_v31 }
  0x68   :  { %2643 = vmatpush1.bf16.msra.mxu1 %v5777_v35  ;;  %v39_v35 = vld [vmem:[%s9406_s0 + $0x20] sm:$0xff] }
  0x69   :  { %2557 = vmatpush1.bf16.msra.mxu0 %v6031_v36  ;;  %2644 = vmatprep.subr.bf16.mxu1 %v5786_v37  ;;  %v46_v36 = vld [vmem:[%s9406_s0 + $0x58] sm:$0xff]  ;;  %v5842_v37 = vcombine.high %v185_v27, %v189_v29 }
  0x6a   :  { %2558 = vmatprep.subr.bf16.mxu0 %v6040_v38  ;;  %v193_v38 = vld [vmem:[%s9405_s1 + $0x448] sm:$0xff] }
  0x6b   :  { %v5849_v51 = vcombine.low %v193_v38, %v197_v39 }
  0x6c   :  { %2645 = vmatpush1.bf16.msra.mxu1 %v5785_v44  ;;  %v7533_v44 = vpack.c.bf16 %v46_v36, %v39_v35  ;;  %v98_v35 = vld [vmem:[%s9405_s1 + $0x150] sm:$0xff] }
  0x6d   :  { %2559 = vmatpush1.bf16.msra.mxu0 %v6039_v45  ;;  %2646 = vmatprep.subr.bf16.mxu1 %v5794_v46  ;;  %v5841_v45 = vcombine.low %v185_v27, %v189_v29  ;;  %v5850_v46 = vcombine.high %v193_v38, %v197_v39  ;;  %v102_v36 = vld [vmem:[%s9405_s1 + $0x170] sm:$0xff] }
  0x6e   :  { %2560 = vmatprep.subr.bf16.mxu0 %v6048_v47  ;;  %v6095_v47 = vcombine.low %v440_v30, %v444_v31 }
  0x70   :  { %2647 = vmatpush1.bf16.msra.mxu1 %v5793_v52  ;;  %v5858_v52 = vcombine.high %v201_v48, %v205_v49 }
  0x71   :  { %2561 = vmatpush1.bf16.msra.mxu0 %v6047_v53  ;;  %2648 = vmatprep.subr.bf16.mxu1 %v5802_v54  ;;  %v209_v53 = vld [vmem:[%s9405_s1 + $0x4c8] sm:$0xff] }
  0x72   :  { %2562 = vmatprep.subr.bf16.mxu0 %v6056_v55  ;;  %v213_v54 = vld [vmem:[%s9405_s1 + $0x4e8] sm:$0xff]  ;;  %v5857_v55 = vcombine.low %v201_v48, %v205_v49  ;;  %v5755_v48 = vcombine.low %v98_v35, %v102_v36  ;;  %v5914_v49 = vcombine.high %v257_v41, %v261_v43 }
  0x73   :  { %v5866_v58 = vcombine.high %v209_v53, %v213_v54  ;;  %v5865_v2 = vcombine.low %v209_v53, %v213_v54  ;;  %v114_v53 = vld [vmem:[%s9405_s1 + $0x1d0] sm:$0xff] }
  0x74   :  { %2649 = vmatpush1.bf16.msra.mxu1 %v5801_v61  ;;  %v221_v61 = vld [vmem:[%s9405_s1 + $0x528] sm:$0xff]  ;;  %v118_v54 = vld [vmem:[%s9405_s1 + $0x1f0] sm:$0xff] }
  0x75   :  { %2563 = vmatpush1.bf16.msra.mxu0 %v6055_v62  ;;  %2650 = vmatprep.subr.bf16.mxu1 %v5810_v63  ;;  %v66_v62 = vld [vmem:[%s9405_s1 + $0x50] sm:$0xff]  ;;  %v5874_v4 = vcombine.high %v217_v60, %v221_v61  ;;  %v5873_v10 = vcombine.low %v217_v60, %v221_v61  ;;  %v273_v60 = vld [vmem:[%s9405_s1 + $0x6c8] sm:$0xff] }
  0x76   :  { %2564 = vmatprep.subr.bf16.mxu0 %v6064_v0  ;;  %v70_v63 = vld [vmem:[%s9405_s1 + $0x70] sm:$0xff]  ;;  %v7569_v0 = vpack.c.bf16 %v48_v57, %v41_v56  ;;  %v277_v61 = vld [vmem:[%s9405_s1 + $0x6e8] sm:$0xff] }
  0x77   :  { %v5724_v5 = vcombine.high %v66_v62, %v70_v63  ;;  %v5723_v11 = vcombine.low %v66_v62, %v70_v63  ;;  %v122_v62 = vld [vmem:[%s9405_s1 + $0x210] sm:$0xff] }
  0x78   :  { %2651 = vmatpush1.bf16.msra.mxu1 %v5809_v6  ;;  %v225_v6 = vld [vmem:[%s9405_s1 + $0x548] sm:$0xff]  ;;  %v126_v63 = vld [vmem:[%s9405_s1 + $0x230] sm:$0xff] }
  0x79   :  { %2565 = vmatpush1.bf16.msra.mxu0 %v6063_v7  ;;  %2652 = vmatprep.subr.bf16.mxu1 %v5818_v8  ;;  %v229_v7 = vld [vmem:[%s9405_s1 + $0x568] sm:$0xff]  ;;  %v74_v8 = vld [vmem:[%s9405_s1 + $0x90] sm:$0xff] }
  0x7a   :  { %2566 = vmatprep.subr.bf16.mxu0 %v6072_v9  ;;  %v78_v9 = vld [vmem:[%s9405_s1 + $0xb0] sm:$0xff]  ;;  %v5882_v12 = vcombine.high %v225_v6, %v229_v7  ;;  %v5881_v18 = vcombine.low %v225_v6, %v229_v7  ;;  %v281_v6 = vld [vmem:[%s9405_s1 + $0x708] sm:$0xff] }
  0x7b   :  { %v5732_v13 = vcombine.high %v74_v8, %v78_v9  ;;  %v5731_v19 = vcombine.low %v74_v8, %v78_v9  ;;  %v285_v7 = vld [vmem:[%s9405_s1 + $0x728] sm:$0xff]  ;;  %v130_v8 = vld [vmem:[%s9405_s1 + $0x250] sm:$0xff] }
  0x7c   :  { %2653 = vmatpush1.bf16.msra.mxu1 %v5817_v14  ;;  %v233_v14 = vld [vmem:[%s9405_s1 + $0x588] sm:$0xff]  ;;  %v134_v9 = vld [vmem:[%s9405_s1 + $0x270] sm:$0xff] }
  0x7d   :  { %2567 = vmatpush1.bf16.msra.mxu0 %v6071_v15  ;;  %2654 = vmatprep.subr.bf16.mxu1 %v5826_v16  ;;  %v237_v15 = vld [vmem:[%s9405_s1 + $0x5a8] sm:$0xff]  ;;  %v82_v16 = vld [vmem:[%s9405_s1 + $0xd0] sm:$0xff] }
  0x7e   :  { %2568 = vmatprep.subr.bf16.mxu0 %v6080_v17  ;;  %v86_v17 = vld [vmem:[%s9405_s1 + $0xf0] sm:$0xff]  ;;  %v5890_v20 = vcombine.high %v233_v14, %v237_v15  ;;  %v5889_v27 = vcombine.low %v233_v14, %v237_v15  ;;  %v289_v14 = vld [vmem:[%s9405_s1 + $0x748] sm:$0xff] }
  0x7f   :  { %v5740_v21 = vcombine.high %v82_v16, %v86_v17  ;;  %v5739_v29 = vcombine.low %v82_v16, %v86_v17  ;;  %v293_v15 = vld [vmem:[%s9405_s1 + $0x768] sm:$0xff]  ;;  %v138_v16 = vld [vmem:[%s9405_s1 + $0x290] sm:$0xff] }
  0x80   :  { %2655 = vmatpush1.bf16.msra.mxu1 %v5825_v22  ;;  %v241_v22 = vld [vmem:[%s9405_s1 + $0x5c8] sm:$0xff]  ;;  %v142_v17 = vld [vmem:[%s9405_s1 + $0x2b0] sm:$0xff] }
  0x81   :  { %2569 = vmatpush1.bf16.msra.mxu0 %v6079_v24  ;;  %2656 = vmatprep.subr.bf16.mxu1 %v5834_v25  ;;  %v245_v24 = vld [vmem:[%s9405_s1 + $0x5e8] sm:$0xff]  ;;  %v90_v25 = vld [vmem:[%s9405_s1 + $0x110] sm:$0xff] }
  0x82   :  { %2570 = vmatprep.subr.bf16.mxu0 %v6088_v26  ;;  %v94_v26 = vld [vmem:[%s9405_s1 + $0x130] sm:$0xff]  ;;  %v5898_v30 = vcombine.high %v241_v22, %v245_v24 }
  0x83   :  { %v5748_v31 = vcombine.high %v90_v25, %v94_v26  ;;  %v5747_v38 = vcombine.low %v90_v25, %v94_v26  ;;  %v146_v25 = vld [vmem:[%s9405_s1 + $0x2d0] sm:$0xff] }
  0x84   :  { %2657 = vmatpush1.bf16.msra.mxu1 %v5833_v32  ;;  %v249_v32 = vld [vmem:[%s9405_s1 + $0x608] sm:$0xff]  ;;  %v150_v26 = vld [vmem:[%s9405_s1 + $0x2f0] sm:$0xff] }
  0x85   :  { %2571 = vmatpush1.bf16.msra.mxu0 %v6087_v33  ;;  %2669 = vmatprep.subr.bf16.mxu1 %v5842_v37  ;;  %v253_v33 = vld [vmem:[%s9405_s1 + $0x628] sm:$0xff]  ;;  %v5897_v37 = vcombine.low %v241_v22, %v245_v24 }
  0x86   :  { %2583 = vmatprep.subr.bf16.mxu0 %v6096_v40  ;;  %v5906_v39 = vcombine.high %v249_v32, %v253_v33  ;;  %v5756_v40 = vcombine.high %v98_v35, %v102_v36  ;;  %v297_v22 = vld [vmem:[%s9405_s1 + $0x788] sm:$0xff]  ;;  %v154_v35 = vld [vmem:[%s9405_s1 + $0x310] sm:$0xff] }
  0x87   :  { %2659 = vmatmul.mubr.bf16.vlgmr.msra.gmra.mrb[4].mxu1 %v7316_v23  ;;  %v301_v24 = vld [vmem:[%s9405_s1 + $0x7a8] sm:$0xff]  ;;  %v158_v36 = vld [vmem:[%s9405_s1 + $0x330] sm:$0xff] }
  0x88   :  { %2573 = vmatmul.mubr.bf16.vlgmr.msra.gmra.mrb[0].mxu0 %v7533_v44  ;;  %2670 = vmatpush1.bf16.msra.mxu1 %v5841_v45  ;;  %v106_v45 = vld [vmem:[%s9405_s1 + $0x190] sm:$0xff] }
  0x89   :  { %2671 = vmatprep.subr.bf16.mxu1 %v5850_v46  ;;  %2584 = vmatpush1.bf16.msra.mxu0 %v6095_v47  ;;  %v110_v46 = vld [vmem:[%s9405_s1 + $0x1b0] sm:$0xff]  ;;  %v5905_v47 = vcombine.low %v249_v32, %v253_v33  ;;  %v305_v32 = vld [vmem:[%s9405_s1 + $0x7c8] sm:$0xff] }
  0x8a   :  { %2615 = vmatprep.mubr.bf16.mxu0 %v7020_v42  ;;  %2798 = vmatprep.subr.bf16.mxu0 %v5716_v50  ;;  %v5764_v50 = vcombine.high %v106_v45, %v110_v46  ;;  %v5763_v56 = vcombine.low %v106_v45, %v110_v46  ;;  %v309_v33 = vld [vmem:[%s9405_s1 + $0x7e8] sm:$0xff]  ;;  %v162_v45 = vld [vmem:[%s9405_s1 + $0x350] sm:$0xff] }
  0x8b   :  { %2701 = vmatprep.mubr.bf16.mxu1 %v7184_v1  ;;  %v166_v46 = vld [vmem:[%s9405_s1 + $0x370] sm:$0xff] }
  0x8c   :  { %2672 = vmatpush1.bf16.msra.mxu1 %v5849_v51  ;;  %v265_v51 = vld [vmem:[%s9405_s1 + $0x688] sm:$0xff] }
  0x8d   :  { %2673 = vmatprep.subr.bf16.mxu1 %v5858_v52  ;;  %v269_v52 = vld [vmem:[%s9405_s1 + $0x6a8] sm:$0xff] }
  0x8e   :  { %v5922_v57 = vcombine.high %v265_v51, %v269_v52 }
  0x90   :  { %2674 = vmatpush1.bf16.msra.mxu1 %v5857_v55  ;;  %v5913_v55 = vcombine.low %v257_v41, %v261_v43  ;;  %v313_v41 = vld [vmem:[%s9405_s1 + $0x808] sm:$0xff] }
  0x91   :  { %2675 = vmatprep.subr.bf16.mxu1 %v5866_v58  ;;  %v5772_v58 = vcombine.high %v114_v53, %v118_v54  ;;  %v317_v43 = vld [vmem:[%s9405_s1 + $0x828] sm:$0xff] }
  0x94   :  { %6103 = vmatmul.mubr.msk.bf16.vlgmr.msra.gmra.mrb[0].mxu0 %vm2450_vm0, %v7569_v0  ;;  %2676 = vmatpush1.bf16.msra.mxu1 %v5865_v2  ;;  %v5921_v2 = vcombine.low %v265_v51, %v269_v52  ;;  %v321_v51 = vld [vmem:[%s9405_s1 + $0x848] sm:$0xff] }
  0x95   :  { %2799 = vmatpush1.bf16.msra.mxu0 %v5715_v3  ;;  %2677 = vmatprep.subr.bf16.mxu1 %v5874_v4  ;;  %v5771_v3 = vcombine.low %v114_v53, %v118_v54  ;;  %v5930_v4 = vcombine.high %v273_v60, %v277_v61  ;;  %v325_v52 = vld [vmem:[%s9405_s1 + $0x868] sm:$0xff]  ;;  %v170_v53 = vld [vmem:[%s9405_s1 + $0x390] sm:$0xff] }
  0x96   :  { %2800 = vmatprep.subr.bf16.mxu0 %v5724_v5  ;;  %2830 = vmatprep.mubr.bf16.mxu0 %v7169_v59  ;;  %v5780_v5 = vcombine.high %v122_v62, %v126_v63  ;;  %v174_v54 = vld [vmem:[%s9405_s1 + $0x3b0] sm:$0xff] }
  0x98   :  { %2678 = vmatpush1.bf16.msra.mxu1 %v5873_v10  ;;  %v5929_v10 = vcombine.low %v273_v60, %v277_v61  ;;  %v329_v60 = vld [vmem:[%s9405_s1 + $0x888] sm:$0xff] }
  0x99   :  { %2801 = vmatpush1.bf16.msra.mxu0 %v5723_v11  ;;  %2679 = vmatprep.subr.bf16.mxu1 %v5882_v12  ;;  %v5779_v11 = vcombine.low %v122_v62, %v126_v63  ;;  %v5938_v12 = vcombine.high %v281_v6, %v285_v7  ;;  %v333_v61 = vld [vmem:[%s9405_s1 + $0x8a8] sm:$0xff]  ;;  %v178_v62 = vld [vmem:[%s9405_s1 + $0x3d0] sm:$0xff] }
  0x9a   :  { %2802 = vmatprep.subr.bf16.mxu0 %v5732_v13  ;;  %v5788_v13 = vcombine.high %v130_v8, %v134_v9  ;;  %v182_v63 = vld [vmem:[%s9405_s1 + $0x3f0] sm:$0xff] }
  0x9c   :  { %2680 = vmatpush1.bf16.msra.mxu1 %v5881_v18  ;;  %v5937_v18 = vcombine.low %v281_v6, %v285_v7  ;;  %v337_v6 = vld [vmem:[%s9405_s1 + $0x8c8] sm:$0xff] }
  0x9d   :  { %2803 = vmatpush1.bf16.msra.mxu0 %v5731_v19  ;;  %2681 = vmatprep.subr.bf16.mxu1 %v5890_v20  ;;  %v5787_v19 = vcombine.low %v130_v8, %v134_v9  ;;  %v5946_v20 = vcombine.high %v289_v14, %v293_v15  ;;  %v341_v7 = vld [vmem:[%s9405_s1 + $0x8e8] sm:$0xff]  ;;  %v186_v8 = vld [vmem:[%s9405_s1 + $0x410] sm:$0xff] }
  0x9e   :  { %2804 = vmatprep.subr.bf16.mxu0 %v5740_v21  ;;  %v5796_v21 = vcombine.high %v138_v16, %v142_v17  ;;  %v190_v9 = vld [vmem:[%s9405_s1 + $0x430] sm:$0xff] }
  0xa0   :  { %2682 = vmatpush1.bf16.msra.mxu1 %v5889_v27  ;;  %v5945_v27 = vcombine.low %v289_v14, %v293_v15  ;;  %v345_v14 = vld [vmem:[%s9405_s1 + $0x908] sm:$0xff] }
  0xa1   :  { %2805 = vmatpush1.bf16.msra.mxu0 %v5739_v29  ;;  %2683 = vmatprep.subr.bf16.mxu1 %v5898_v30  ;;  %v5795_v29 = vcombine.low %v138_v16, %v142_v17  ;;  %v5954_v30 = vcombine.high %v297_v22, %v301_v24  ;;  %v349_v15 = vld [vmem:[%s9405_s1 + $0x928] sm:$0xff]  ;;  %v194_v16 = vld [vmem:[%s9405_s1 + $0x450] sm:$0xff] }
  0xa2   :  { %2806 = vmatprep.subr.bf16.mxu0 %v5748_v31  ;;  %v5804_v31 = vcombine.high %v146_v25, %v150_v26  ;;  %v198_v17 = vld [vmem:[%s9405_s1 + $0x470] sm:$0xff] }
  0xa4   :  { %2684 = vmatpush1.bf16.msra.mxu1 %v5897_v37  ;;  %v5953_v37 = vcombine.low %v297_v22, %v301_v24  ;;  %v353_v22 = vld [vmem:[%s9405_s1 + $0x948] sm:$0xff] }
  0xa5   :  { %2807 = vmatpush1.bf16.msra.mxu0 %v5747_v38  ;;  %2685 = vmatprep.subr.bf16.mxu1 %v5906_v39  ;;  %v5803_v38 = vcombine.low %v146_v25, %v150_v26  ;;  %v5962_v39 = vcombine.high %v305_v32, %v309_v33  ;;  %v357_v24 = vld [vmem:[%s9405_s1 + $0x968] sm:$0xff]  ;;  %v202_v25 = vld [vmem:[%s9405_s1 + $0x490] sm:$0xff] }
  0xa6   :  { %2808 = vmatprep.subr.bf16.mxu0 %v5756_v40  ;;  %v5812_v40 = vcombine.high %v154_v35, %v158_v36  ;;  %v206_v26 = vld [vmem:[%s9405_s1 + $0x4b0] sm:$0xff] }
  0xa8   :  { %2686 = vmatpush1.bf16.msra.mxu1 %v5905_v47  ;;  %v5961_v47 = vcombine.low %v305_v32, %v309_v33  ;;  %v361_v32 = vld [vmem:[%s9405_s1 + $0x988] sm:$0xff] }
  0xa9   :  { %2809 = vmatpush1.bf16.msra.mxu0 %v5755_v48  ;;  %2687 = vmatprep.subr.bf16.mxu1 %v5914_v49  ;;  %v5811_v48 = vcombine.low %v154_v35, %v158_v36  ;;  %v5970_v49 = vcombine.high %v313_v41, %v317_v43  ;;  %v365_v33 = vld [vmem:[%s9405_s1 + $0x9a8] sm:$0xff]  ;;  %v210_v35 = vld [vmem:[%s9405_s1 + $0x4d0] sm:$0xff] }
  0xaa   :  { %2810 = vmatprep.subr.bf16.mxu0 %v5764_v50  ;;  %v5820_v50 = vcombine.high %v162_v45, %v166_v46  ;;  %v214_v36 = vld [vmem:[%s9405_s1 + $0x4f0] sm:$0xff] }
  0xac   :  { %2688 = vmatpush1.bf16.msra.mxu1 %v5913_v55  ;;  %v5969_v55 = vcombine.low %v313_v41, %v317_v43  ;;  %v369_v41 = vld [vmem:[%s9405_s1 + $0x9c8] sm:$0xff] }
  0xad   :  { %2811 = vmatpush1.bf16.msra.mxu0 %v5763_v56  ;;  %2689 = vmatprep.subr.bf16.mxu1 %v5922_v57  ;;  %v5819_v56 = vcombine.low %v162_v45, %v166_v46  ;;  %v5978_v57 = vcombine.high %v321_v51, %v325_v52  ;;  %v373_v43 = vld [vmem:[%s9405_s1 + $0x9e8] sm:$0xff]  ;;  %v218_v45 = vld [vmem:[%s9405_s1 + $0x510] sm:$0xff] }
  0xae   :  { %2812 = vmatprep.subr.bf16.mxu0 %v5772_v58  ;;  %v5828_v58 = vcombine.high %v170_v53, %v174_v54  ;;  %v222_v46 = vld [vmem:[%s9405_s1 + $0x530] sm:$0xff] }
  0xb0   :  { %2690 = vmatpush1.bf16.msra.mxu1 %v5921_v2  ;;  %v5977_v2 = vcombine.low %v321_v51, %v325_v52  ;;  %v5876_v51 = vcombine.high %v218_v45, %v222_v46  ;;  %v230_v52 = vld [vmem:[%s9405_s1 + $0x570] sm:$0xff] }
  0xb1   :  { %2813 = vmatpush1.bf16.msra.mxu0 %v5771_v3  ;;  %2691 = vmatprep.subr.bf16.mxu1 %v5930_v4  ;;  %v5827_v3 = vcombine.low %v170_v53, %v174_v54  ;;  %v5986_v4 = vcombine.high %v329_v60, %v333_v61  ;;  %v377_v53 = vld [vmem:[%s9405_s1 + $0xa08] sm:$0xff] }
  0xb2   :  { %2814 = vmatprep.subr.bf16.mxu0 %v5780_v5  ;;  %v5836_v5 = vcombine.high %v178_v62, %v182_v63  ;;  %v381_v54 = vld [vmem:[%s9405_s1 + $0xa28] sm:$0xff] }
  0xb4   :  { %2692 = vmatpush1.bf16.msra.mxu1 %v5929_v10  ;;  %v5985_v10 = vcombine.low %v329_v60, %v333_v61  ;;  %v238_v60 = vld [vmem:[%s9405_s1 + $0x5b0] sm:$0xff] }
  0xb5   :  { %2815 = vmatpush1.bf16.msra.mxu0 %v5779_v11  ;;  %2693 = vmatprep.subr.bf16.mxu1 %v5938_v12  ;;  %v5835_v11 = vcombine.low %v178_v62, %v182_v63  ;;  %v5994_v12 = vcombine.high %v337_v6, %v341_v7  ;;  %v385_v62 = vld [vmem:[%s9405_s1 + $0xa48] sm:$0xff] }
  0xb6   :  { %2816 = vmatprep.subr.bf16.mxu0 %v5788_v13  ;;  %v5844_v13 = vcombine.high %v186_v8, %v190_v9  ;;  %v389_v63 = vld [vmem:[%s9405_s1 + $0xa68] sm:$0xff] }
  0xb8   :  { %2694 = vmatpush1.bf16.msra.mxu1 %v5937_v18  ;;  %v5993_v18 = vcombine.low %v337_v6, %v341_v7  ;;  %v246_v6 = vld [vmem:[%s9405_s1 + $0x5f0] sm:$0xff] }
  0xb9   :  { %2817 = vmatpush1.bf16.msra.mxu0 %v5787_v19  ;;  %2695 = vmatprep.subr.bf16.mxu1 %v5946_v20  ;;  %v5843_v19 = vcombine.low %v186_v8, %v190_v9  ;;  %v6002_v20 = vcombine.high %v345_v14, %v349_v15  ;;  %v393_v8 = vld [vmem:[%s9405_s1 + $0xa88] sm:$0xff] }
  0xba   :  { %2818 = vmatprep.subr.bf16.mxu0 %v5796_v21  ;;  %v5852_v21 = vcombine.high %v194_v16, %v198_v17  ;;  %v397_v9 = vld [vmem:[%s9405_s1 + $0xaa8] sm:$0xff] }
  0xbc   :  { %2696 = vmatpush1.bf16.msra.mxu1 %v5945_v27  ;;  %v6001_v27 = vcombine.low %v345_v14, %v349_v15  ;;  %v250_v14 = vld [vmem:[%s9405_s1 + $0x610] sm:$0xff]  ;;  %v401_v15 = vld [vmem:[%s9405_s1 + $0xac8] sm:$0xff] }
  0xbd   :  { %2819 = vmatpush1.bf16.msra.mxu0 %v5795_v29  ;;  %2697 = vmatprep.subr.bf16.mxu1 %v5954_v30  ;;  %v5851_v29 = vcombine.low %v194_v16, %v198_v17  ;;  %v6010_v30 = vcombine.high %v353_v22, %v357_v24  ;;  %v405_v16 = vld [vmem:[%s9405_s1 + $0xae8] sm:$0xff]  ;;  %v254_v17 = vld [vmem:[%s9405_s1 + $0x630] sm:$0xff] }
  0xbe   :  { %2820 = vmatprep.subr.bf16.mxu0 %v5804_v31  ;;  %v5860_v31 = vcombine.high %v202_v25, %v206_v26 }
  0xc0   :  { %2698 = vmatpush1.bf16.msra.mxu1 %v5953_v37  ;;  %v6009_v37 = vcombine.low %v353_v22, %v357_v24  ;;  %v258_v22 = vld [vmem:[%s9405_s1 + $0x650] sm:$0xff]  ;;  %v409_v24 = vld [vmem:[%s9405_s1 + $0xb08] sm:$0xff] }
  0xc1   :  { %2821 = vmatpush1.bf16.msra.mxu0 %v5803_v38  ;;  %2699 = vmatprep.subr.bf16.mxu1 %v5962_v39  ;;  %v5859_v38 = vcombine.low %v202_v25, %v206_v26  ;;  %v6018_v39 = vcombine.high %v361_v32, %v365_v33  ;;  %v413_v25 = vld [vmem:[%s9405_s1 + $0xb28] sm:$0xff]  ;;  %v262_v26 = vld [vmem:[%s9405_s1 + $0x670] sm:$0xff] }
  0xc2   :  { %2822 = vmatprep.subr.bf16.mxu0 %v5812_v40  ;;  %v5868_v40 = vcombine.high %v210_v35, %v214_v36 }
  0xc4   :  { %2700 = vmatpush1.bf16.msra.mxu1 %v5961_v47  ;;  %v6017_v47 = vcombine.low %v361_v32, %v365_v33  ;;  %v270_v32 = vld [vmem:[%s9405_s1 + $0x6b0] sm:$0xff]  ;;  %v5916_v33 = vcombine.high %v258_v22, %v262_v26 }
  0xc5   :  { %2823 = vmatpush1.bf16.msra.mxu0 %v5811_v48  ;;  %2712 = vmatprep.subr.bf16.mxu1 %v5970_v49  ;;  %v5867_v48 = vcombine.low %v210_v35, %v214_v36  ;;  %v6026_v49 = vcombine.high %v369_v41, %v373_v43  ;;  %v417_v35 = vld [vmem:[%s9405_s1 + $0xb48] sm:$0xff] }
  0xc6   :  { %2824 = vmatprep.subr.bf16.mxu0 %v5820_v50  ;;  %v226_v50 = vld [vmem:[%s9405_s1 + $0x550] sm:$0xff]  ;;  %v421_v36 = vld [vmem:[%s9405_s1 + $0xb68] sm:$0xff] }
  0xc7   :  { %2702 = vmatmul.mubr.bf16.vlgmr.msra.gmra.mrb[4].mxu1 %v7327_v28  ;;  %v5884_v61 = vcombine.high %v226_v50, %v230_v52 }
  0xc8   :  { %2713 = vmatpush1.bf16.msra.mxu1 %v5969_v55  ;;  %2744 = vmatprep.mubr.bf16.mxu1 %v7335_v34  ;;  %v6025_v55 = vcombine.low %v369_v41, %v373_v43  ;;  %v278_v41 = vld [vmem:[%s9405_s1 + $0x6f0] sm:$0xff] }
  0xc9   :  { %2825 = vmatpush1.bf16.msra.mxu0 %v5819_v56  ;;  %2714 = vmatprep.subr.bf16.mxu1 %v5978_v57  ;;  %v5875_v56 = vcombine.low %v218_v45, %v222_v46  ;;  %v6034_v57 = vcombine.high %v377_v53, %v381_v54  ;;  %v425_v45 = vld [vmem:[%s9405_s1 + $0xb88] sm:$0xff] }
  0xca   :  { %2826 = vmatprep.subr.bf16.mxu0 %v5828_v58  ;;  %v234_v58 = vld [vmem:[%s9405_s1 + $0x590] sm:$0xff]  ;;  %v429_v46 = vld [vmem:[%s9405_s1 + $0xba8] sm:$0xff] }
  0xcb   :  { %v5892_v7 = vcombine.high %v234_v58, %v238_v60 }
  0xcc   :  { %2715 = vmatpush1.bf16.msra.mxu1 %v5977_v2  ;;  %v6033_v2 = vcombine.low %v377_v53, %v381_v54  ;;  %v433_v53 = vld [vmem:[%s9405_s1 + $0xbc8] sm:$0xff] }
  0xcd   :  { %2827 = vmatpush1.bf16.msra.mxu0 %v5827_v3  ;;  %2716 = vmatprep.subr.bf16.mxu1 %v5986_v4  ;;  %v5883_v3 = vcombine.low %v226_v50, %v230_v52  ;;  %v6042_v4 = vcombine.high %v385_v62, %v389_v63  ;;  %v282_v50 = vld [vmem:[%s9405_s1 + $0x710] sm:$0xff]  ;;  %v437_v54 = vld [vmem:[%s9405_s1 + $0xbe8] sm:$0xff] }
  0xce   :  { %2828 = vmatprep.subr.bf16.mxu0 %v5836_v5  ;;  %v242_v5 = vld [vmem:[%s9405_s1 + $0x5d0] sm:$0xff] }
  0xd0   :  { %2717 = vmatpush1.bf16.msra.mxu1 %v5985_v10  ;;  %v6041_v10 = vcombine.low %v385_v62, %v389_v63  ;;  %v441_v62 = vld [vmem:[%s9405_s1 + $0xc08] sm:$0xff] }
  0xd1   :  { %2829 = vmatpush1.bf16.msra.mxu0 %v5835_v11  ;;  %2718 = vmatprep.subr.bf16.mxu1 %v5994_v12  ;;  %v5891_v11 = vcombine.low %v234_v58, %v238_v60  ;;  %v6050_v12 = vcombine.high %v393_v8, %v397_v9  ;;  %v290_v58 = vld [vmem:[%s9405_s1 + $0x750] sm:$0xff]  ;;  %v445_v63 = vld [vmem:[%s9405_s1 + $0xc28] sm:$0xff] }
  0xd2   :  { %2841 = vmatprep.subr.bf16.mxu0 %v5844_v13  ;;  %v5900_v13 = vcombine.high %v242_v5, %v246_v6  ;;  %v294_v60 = vld [vmem:[%s9405_s1 + $0x770] sm:$0xff] }
  0xd4   :  { %2831 = vmatmul.mubr.bf16.vlgmr.msra.gmra.mrb[4].mxu0 %v7316_v23  ;;  %2719 = vmatpush1.bf16.msra.mxu1 %v5993_v18  ;;  %v6049_v18 = vcombine.low %v393_v8, %v397_v9  ;;  %v59_v8 = vld [vmem:[%s9405_s1 + $0x18] sm:$0xff] }
  0xd5   :  { %2842 = vmatpush1.bf16.msra.mxu0 %v5843_v19  ;;  %2720 = vmatprep.subr.bf16.mxu1 %v6002_v20  ;;  %v5899_v19 = vcombine.low %v242_v5, %v246_v6  ;;  %v6058_v20 = vcombine.high %v401_v15, %v405_v16  ;;  %v298_v5 = vld [vmem:[%s9405_s1 + $0x790] sm:$0xff]  ;;  %v63_v9 = vld [vmem:[%s9405_s1 + $0x38] sm:$0xff] }
  0xd6   :  { %2843 = vmatprep.subr.bf16.mxu0 %v5852_v21  ;;  %2873 = vmatprep.mubr.bf16.mxu0 %v7184_v1  ;;  %v5908_v21 = vcombine.high %v250_v14, %v254_v17  ;;  %v302_v6 = vld [vmem:[%s9405_s1 + $0x7b0] sm:$0xff] }
  0xd8   :  { %2721 = vmatpush1.bf16.msra.mxu1 %v6001_v27  ;;  %v6057_v27 = vcombine.low %v401_v15, %v405_v16  ;;  %v310_v15 = vld [vmem:[%s9405_s1 + $0x7f0] sm:$0xff]  ;;  %v5955_v16 = vcombine.low %v298_v5, %v302_v6 }
  0xd9   :  { %2844 = vmatpush1.bf16.msra.mxu0 %v5851_v29  ;;  %2722 = vmatprep.subr.bf16.mxu1 %v6010_v30  ;;  %v5907_v29 = vcombine.low %v250_v14, %v254_v17  ;;  %v6066_v30 = vcombine.high %v409_v24, %v413_v25  ;;  %v306_v14 = vld [vmem:[%s9405_s1 + $0x7d0] sm:$0xff] }
  0xda   :  { %2845 = vmatprep.subr.bf16.mxu0 %v5860_v31  ;;  %v266_v31 = vld [vmem:[%s9405_s1 + $0x690] sm:$0xff]  ;;  %v5964_v17 = vcombine.high %v306_v14, %v310_v15 }
  0xdb   :  { %v5924_v43 = vcombine.high %v266_v31, %v270_v32 }
  0xdc   :  { %2723 = vmatpush1.bf16.msra.mxu1 %v6009_v37  ;;  %v6065_v37 = vcombine.low %v409_v24, %v413_v25  ;;  %v67_v25 = vld [vmem:[%s9405_s1 + $0x58] sm:$0xff] }
  0xdd   :  { %2846 = vmatpush1.bf16.msra.mxu0 %v5859_v38  ;;  %2724 = vmatprep.subr.bf16.mxu1 %v6018_v39  ;;  %v5915_v38 = vcombine.low %v258_v22, %v262_v26  ;;  %v6074_v39 = vcombine.high %v417_v35, %v421_v36  ;;  %v326_v22 = vld [vmem:[%s9405_s1 + $0x870] sm:$0xff]  ;;  %v71_v26 = vld [vmem:[%s9405_s1 + $0x78] sm:$0xff] }
  0xde   :  { %2847 = vmatprep.subr.bf16.mxu0 %v5868_v40  ;;  %v274_v40 = vld [vmem:[%s9405_s1 + $0x6d0] sm:$0xff] }
  0xdf   :  { %v5932_v52 = vcombine.high %v274_v40, %v278_v41 }
  0xe0   :  { %2725 = vmatpush1.bf16.msra.mxu1 %v6017_v47  ;;  %v6073_v47 = vcombine.low %v417_v35, %v421_v36  ;;  %v75_v35 = vld [vmem:[%s9405_s1 + $0x98] sm:$0xff] }
  0xe1   :  { %2848 = vmatpush1.bf16.msra.mxu0 %v5867_v48  ;;  %2726 = vmatprep.subr.bf16.mxu1 %v6026_v49  ;;  %v5923_v48 = vcombine.low %v266_v31, %v270_v32  ;;  %v6082_v49 = vcombine.high %v425_v45, %v429_v46  ;;  %v330_v31 = vld [vmem:[%s9405_s1 + $0x890] sm:$0xff]  ;;  %v79_v36 = vld [vmem:[%s9405_s1 + $0xb8] sm:$0xff] }
  0xe2   :  { %2849 = vmatprep.subr.bf16.mxu0 %v5876_v51  ;;  %v286_v51 = vld [vmem:[%s9405_s1 + $0x730] sm:$0xff] }
  0xe3   :  { %v334_v32 = vld [vmem:[%s9405_s1 + $0x8b0] sm:$0xff] }
  0xe4   :  { %2727 = vmatpush1.bf16.msra.mxu1 %v6025_v55  ;;  %v6081_v55 = vcombine.low %v425_v45, %v429_v46  ;;  %v83_v45 = vld [vmem:[%s9405_s1 + $0xd8] sm:$0xff] }
  0xe5   :  { %2850 = vmatpush1.bf16.msra.mxu0 %v5875_v56  ;;  %2728 = vmatprep.subr.bf16.mxu1 %v6034_v57  ;;  %v5931_v56 = vcombine.low %v274_v40, %v278_v41  ;;  %v6090_v57 = vcombine.high %v433_v53, %v437_v54  ;;  %v338_v40 = vld [vmem:[%s9405_s1 + $0x8d0] sm:$0xff]  ;;  %v87_v46 = vld [vmem:[%s9405_s1 + $0xf8] sm:$0xff] }
  0xe6   :  { %2851 = vmatprep.subr.bf16.mxu0 %v5884_v61  ;;  %v5940_v61 = vcombine.high %v282_v50, %v286_v51  ;;  %v342_v41 = vld [vmem:[%s9405_s1 + $0x8f0] sm:$0xff] }
  0xe8   :  { %2729 = vmatpush1.bf16.msra.mxu1 %v6033_v2  ;;  %v6089_v2 = vcombine.low %v433_v53, %v437_v54  ;;  %v5996_v53 = vcombine.high %v338_v40, %v342_v41  ;;  %v95_v54 = vld [vmem:[%s9405_s1 + $0x138] sm:$0xff] }
  0xe9   :  { %2852 = vmatpush1.bf16.msra.mxu0 %v5883_v3  ;;  %2730 = vmatprep.subr.bf16.mxu1 %v6042_v4  ;;  %v5939_v3 = vcombine.low %v282_v50, %v286_v51  ;;  %v6098_v4 = vcombine.high %v441_v62, %v445_v63  ;;  %v346_v50 = vld [vmem:[%s9405_s1 + $0x910] sm:$0xff] }
  0xea   :  { %2853 = vmatprep.subr.bf16.mxu0 %v5892_v7  ;;  %v5948_v7 = vcombine.high %v290_v58, %v294_v60  ;;  %v350_v51 = vld [vmem:[%s9405_s1 + $0x930] sm:$0xff] }
  0xec   :  { %2731 = vmatpush1.bf16.msra.mxu1 %v6041_v10  ;;  %v6097_v10 = vcombine.low %v441_v62, %v445_v63  ;;  %v354_v62 = vld [vmem:[%s9405_s1 + $0x950] sm:$0xff] }
  0xed   :  { %2854 = vmatpush1.bf16.msra.mxu0 %v5891_v11  ;;  %2732 = vmatprep.subr.bf16.mxu1 %v6050_v12  ;;  %v5947_v11 = vcombine.low %v290_v58, %v294_v60  ;;  %v5718_v12 = vcombine.high %v59_v8, %v63_v9  ;;  %v5995_v60 = vcombine.low %v338_v40, %v342_v41  ;;  %v358_v63 = vld [vmem:[%s9405_s1 + $0x970] sm:$0xff] }
  0xee   :  { %2855 = vmatprep.subr.bf16.mxu0 %v5900_v13  ;;  %v5956_v13 = vcombine.high %v298_v5, %v302_v6  ;;  %v107_v6 = vld [vmem:[%s9405_s1 + $0x198] sm:$0xff] }
  0xf0   :  { %2733 = vmatpush1.bf16.msra.mxu1 %v6049_v18  ;;  %v314_v18 = vld [vmem:[%s9405_s1 + $0x810] sm:$0xff] }
  0xf1   :  { %2856 = vmatpush1.bf16.msra.mxu0 %v5899_v19  ;;  %2734 = vmatprep.subr.bf16.mxu1 %v6058_v20  ;;  %v318_v19 = vld [vmem:[%s9405_s1 + $0x830] sm:$0xff]  ;;  %v5963_v20 = vcombine.low %v306_v14, %v310_v15  ;;  %v115_v14 = vld [vmem:[%s9405_s1 + $0x1d8] sm:$0xff] }
  0xf2   :  { %2857 = vmatprep.subr.bf16.mxu0 %v5908_v21  ;;  %v322_v21 = vld [vmem:[%s9405_s1 + $0x850] sm:$0xff]  ;;  %v5972_v24 = vcombine.high %v314_v18, %v318_v19  ;;  %v119_v15 = vld [vmem:[%s9405_s1 + $0x1f8] sm:$0xff] }
  0xf4   :  { %2735 = vmatpush1.bf16.msra.mxu1 %v6057_v27  ;;  %v5717_v27 = vcombine.low %v59_v8, %v63_v9  ;;  %v6003_v8 = vcombine.low %v346_v50, %v350_v51 }
  0xf5   :  { %2858 = vmatpush1.bf16.msra.mxu0 %v5907_v29  ;;  %2736 = vmatprep.subr.bf16.mxu1 %v6066_v30  ;;  %v5971_v29 = vcombine.low %v314_v18, %v318_v19  ;;  %v5726_v30 = vcombine.high %v67_v25, %v71_v26  ;;  %v370_v18 = vld [vmem:[%s9405_s1 + $0x9d0] sm:$0xff] }
  0xf6   :  { %2859 = vmatprep.subr.bf16.mxu0 %v5916_v33  ;;  %v5980_v33 = vcombine.high %v322_v21, %v326_v22  ;;  %v374_v19 = vld [vmem:[%s9405_s1 + $0x9f0] sm:$0xff] }
  0xf8   :  { %2737 = vmatpush1.bf16.msra.mxu1 %v6065_v37  ;;  %v5725_v37 = vcombine.low %v67_v25, %v71_v26  ;;  %v5774_v26 = vcombine.high %v115_v14, %v119_v15 }
  0xf9   :  { %2860 = vmatpush1.bf16.msra.mxu0 %v5915_v38  ;;  %2738 = vmatprep.subr.bf16.mxu1 %v6074_v39  ;;  %v5979_v38 = vcombine.low %v322_v21, %v326_v22  ;;  %v5734_v39 = vcombine.high %v75_v35, %v79_v36  ;;  %v123_v22 = vld [vmem:[%s9405_s1 + $0x218] sm:$0xff] }
  0xfa   :  { %2861 = vmatprep.subr.bf16.mxu0 %v5924_v43  ;;  %v5988_v43 = vcombine.high %v330_v31, %v334_v32 }
  0xfc   :  { %2739 = vmatpush1.bf16.msra.mxu1 %v6073_v47  ;;  %v5733_v47 = vcombine.low %v75_v35, %v79_v36  ;;  %v6027_v35 = vcombine.low %v370_v18, %v374_v19 }
  0xfd   :  { %2862 = vmatpush1.bf16.msra.mxu0 %v5923_v48  ;;  %2740 = vmatprep.subr.bf16.mxu1 %v6082_v49  ;;  %v5987_v48 = vcombine.low %v330_v31, %v334_v32  ;;  %v5742_v49 = vcombine.high %v83_v45, %v87_v46  ;;  %v5773_v31 = vcombine.low %v115_v14, %v119_v15  ;;  %v131_v32 = vld [vmem:[%s9405_s1 + $0x258] sm:$0xff] }
  0xfe   :  { %2863 = vmatprep.subr.bf16.mxu0 %v5932_v52  ;;  %v167_v14 = vld [vmem:[%s9405_s1 + $0x378] sm:$0xff] }
 0x100   :  { %2741 = vmatpush1.bf16.msra.mxu1 %v6081_v55 }
 0x101   :  { %2864 = vmatpush1.bf16.msra.mxu0 %v5931_v56  ;;  %2742 = vmatprep.subr.bf16.mxu1 %v6090_v57  ;;  %v5741_v57 = vcombine.low %v83_v45, %v87_v46  ;;  %v394_v45 = vld [vmem:[%s9405_s1 + $0xa90] sm:$0xff] }
 0x102   :  { %2865 = vmatprep.subr.bf16.mxu0 %v5940_v61  ;;  %v398_v46 = vld [vmem:[%s9405_s1 + $0xab0] sm:$0xff] }
 0x104   :  { %2743 = vmatpush1.bf16.msra.mxu1 %v6089_v2  ;;  %v6004_v2 = vcombine.high %v346_v50, %v350_v51 }
 0x105   :  { %2866 = vmatpush1.bf16.msra.mxu0 %v5939_v3  ;;  %2755 = vmatprep.subr.bf16.mxu1 %v6098_v4  ;;  %v99_v3 = vld [vmem:[%s9405_s1 + $0x158] sm:$0xff] }
 0x106   :  { %2867 = vmatprep.subr.bf16.mxu0 %v5948_v7  ;;  %v103_v4 = vld [vmem:[%s9405_s1 + $0x178] sm:$0xff] }
 0x107   :  { %2745 = vmatmul.mubr.bf16.vlgmr.msra.gmra.mrb[4].mxu1 %v7533_v44  ;;  %v111_v7 = vld [vmem:[%s9405_s1 + $0x1b8] sm:$0xff]  ;;  %v5758_v9 = vcombine.high %v99_v3, %v103_v4 }
 0x108   :  { %2756 = vmatpush1.bf16.msra.mxu1 %v6097_v10  ;;  %2787 = vmatprep.mubr.bf16.mxu1 %v7020_v42  ;;  %v362_v10 = vld [vmem:[%s9405_s1 + $0x990] sm:$0xff]  ;;  %v5765_v21 = vcombine.low %v107_v6, %v111_v7 }
 0x109   :  { %2868 = vmatpush1.bf16.msra.mxu0 %v5947_v11  ;;  %2970 = vmatprep.subr.bf16.mxu1 %v5718_v12  ;;  %v366_v11 = vld [vmem:[%s9405_s1 + $0x9b0] sm:$0xff]  ;;  %v6012_v12 = vcombine.high %v354_v62, %v358_v63 }
 0x10a   :  { %2869 = vmatprep.subr.bf16.mxu0 %v5956_v13  ;;  %v5757_v13 = vcombine.low %v99_v3, %v103_v4  ;;  %v6019_v25 = vcombine.low %v362_v10, %v366_v11  ;;  %v410_v3 = vld [vmem:[%s9405_s1 + $0xb10] sm:$0xff] }
 0x10b   :  { %v414_v4 = vld [vmem:[%s9405_s1 + $0xb30] sm:$0xff] }
 0x10c   :  { %v6068_v15 = vcombine.high %v410_v3, %v414_v4 }
 0x10d   :  { %2870 = vmatpush1.bf16.msra.mxu0 %v5955_v16  ;;  %v6011_v16 = vcombine.low %v354_v62, %v358_v63  ;;  %v6051_v63 = vcombine.low %v394_v45, %v398_v46 }
 0x10e   :  { %2871 = vmatprep.subr.bf16.mxu0 %v5964_v17  ;;  %v5766_v17 = vcombine.high %v107_v6, %v111_v7  ;;  %v159_v6 = vld [vmem:[%s9405_s1 + $0x338] sm:$0xff] }
 0x111   :  { %2872 = vmatpush1.bf16.msra.mxu0 %v5963_v20  ;;  %v6020_v20 = vcombine.high %v362_v10, %v366_v11  ;;  %v418_v11 = vld [vmem:[%s9405_s1 + $0xb50] sm:$0xff] }
 0x112   :  { %2884 = vmatprep.subr.bf16.mxu0 %v5972_v24  ;;  %v127_v24 = vld [vmem:[%s9405_s1 + $0x238] sm:$0xff] }
 0x113   :  { %6104 = vmatmul.mubr.msk.bf16.vlgmr.msra.gmra.mrb[4].mxu1 %vm2450_vm0, %v7569_v0  ;;  %v5782_v36 = vcombine.high %v123_v22, %v127_v24  ;;  %v5781_v40 = vcombine.low %v123_v22, %v127_v24  ;;  %v175_v22 = vld [vmem:[%s9405_s1 + $0x3b8] sm:$0xff] }
 0x114   :  { %2874 = vmatmul.mubr.bf16.vlgmr.msra.gmra.mrb[4].mxu0 %v7327_v28  ;;  %2971 = vmatpush1.bf16.msra.mxu1 %v5717_v27  ;;  %v378_v27 = vld [vmem:[%s9405_s1 + $0xa10] sm:$0xff] }
 0x115   :  { %2885 = vmatpush1.bf16.msra.mxu0 %v5971_v29  ;;  %2972 = vmatprep.subr.bf16.mxu1 %v5726_v30  ;;  %v382_v29 = vld [vmem:[%s9405_s1 + $0xa30] sm:$0xff]  ;;  %v6028_v30 = vcombine.high %v370_v18, %v374_v19 }
 0x116   :  { %2886 = vmatprep.subr.bf16.mxu0 %v5980_v33  ;;  %2916 = vmatprep.mubr.bf16.mxu0 %v7335_v34  ;;  %v135_v33 = vld [vmem:[%s9405_s1 + $0x278] sm:$0xff]  ;;  %v6035_v41 = vcombine.low %v378_v27, %v382_v29  ;;  %v426_v19 = vld [vmem:[%s9405_s1 + $0xb90] sm:$0xff] }
 0x117   :  { %3002 = vmatprep.mubr.bf16.mxu1 %v7169_v59  ;;  %v91_v59 = vld [vmem:[%s9405_s1 + $0x118] sm:$0xff]  ;;  %v5789_v50 = vcombine.low %v131_v32, %v135_v33 }
 0x118   :  { %2973 = vmatpush1.bf16.msra.mxu1 %v5725_v37  ;;  %v5750_v61 = vcombine.high %v91_v59, %v95_v54  ;;  %v5749_v5 = vcombine.low %v91_v59, %v95_v54  ;;  %v386_v37 = vld [vmem:[%s9405_s1 + $0xa50] sm:$0xff] }
 0x119   :  { %2887 = vmatpush1.bf16.msra.mxu0 %v5979_v38  ;;  %2974 = vmatprep.subr.bf16.mxu1 %v5734_v39  ;;  %v390_v38 = vld [vmem:[%s9405_s1 + $0xa70] sm:$0xff]  ;;  %v6036_v39 = vcombine.high %v378_v27, %v382_v29 }
 0x11a   :  { %v7987_v52 = vpop.f32.mrb[0].mxu1  ;;  %2888 = vmatprep.subr.bf16.mxu0 %v5988_v43  ;;  %v5790_v43 = vcombine.high %v131_v32, %v135_v33  ;;  %v6043_v51 = vcombine.low %v386_v37, %v390_v38  ;;  %v402_v59 = vld [vmem:[%s9405_s1 + $0xad0] sm:$0xff]  ;;  %v183_v32 = vld [vmem:[%s9405_s1 + $0x3f8] sm:$0xff] }
 0x11b   :  { %v7995_v55 = vpop.f32.mrb[1].mxu1  ;;  %v406_v54 = vld [vmem:[%s9405_s1 + $0xaf0] sm:$0xff] }
 0x11c   :  { %2975 = vmatpush1.bf16.msra.mxu1 %v5733_v47  ;;  %v7997_v56 = vpop.f32.mrb[2].mxu1  ;;  %v139_v47 = vld [vmem:[%s9405_s1 + $0x298] sm:$0xff]  ;;  %v6060_v7 = vcombine.high %v402_v59, %v406_v54  ;;  %v434_v29 = vld [vmem:[%s9405_s1 + $0xbd0] sm:$0xff] }
 0x11d   :  { %2889 = vmatpush1.bf16.msra.mxu0 %v5987_v48  ;;  %v7999_v58 = vpop.f32.mrb[3].mxu1  ;;  %2976 = vmatprep.subr.bf16.mxu1 %v5742_v49  ;;  %v143_v48 = vld [vmem:[%s9405_s1 + $0x2b8] sm:$0xff]  ;;  %v6044_v49 = vcombine.high %v386_v37, %v390_v38 }
 0x11e   :  { %2890 = vmatprep.subr.bf16.mxu0 %v5996_v53  ;;  %v5798_v53 = vcombine.high %v139_v47, %v143_v48  ;;  %v5797_v62 = vcombine.low %v139_v47, %v143_v48  ;;  %v191_v37 = vld [vmem:[%s9405_s1 + $0x438] sm:$0xff] }
 0x11f   :  { %v195_v48 = vld [vmem:[%s9405_s1 + $0x458] sm:$0xff] }
 0x120   :  { %2977 = vmatpush1.bf16.msra.mxu1 %v5741_v57  ;;  %v147_v57 = vld [vmem:[%s9405_s1 + $0x2d8] sm:$0xff] }
 0x121   :  { %2891 = vmatpush1.bf16.msra.mxu0 %v5995_v60  ;;  %2978 = vmatprep.subr.bf16.mxu1 %v5750_v61  ;;  %v151_v60 = vld [vmem:[%s9405_s1 + $0x2f8] sm:$0xff]  ;;  %v6052_v61 = vcombine.high %v394_v45, %v398_v46 }
 0x122   :  { %2892 = vmatprep.subr.bf16.mxu0 %v6004_v2  ;;  %v5806_v2 = vcombine.high %v147_v57, %v151_v60 }
 0x124   :  { %2979 = vmatpush1.bf16.msra.mxu1 %v5749_v5  ;;  %v155_v5 = vld [vmem:[%s9405_s1 + $0x318] sm:$0xff] }
 0x125   :  { %2893 = vmatpush1.bf16.msra.mxu0 %v6003_v8  ;;  %2980 = vmatprep.subr.bf16.mxu1 %v5758_v9  ;;  %v5805_v8 = vcombine.low %v147_v57, %v151_v60  ;;  %v6059_v9 = vcombine.low %v402_v59, %v406_v54  ;;  %v5814_v10 = vcombine.high %v155_v5, %v159_v6  ;;  %v207_v59 = vld [vmem:[%s9405_s1 + $0x4b8] sm:$0xff]  ;;  %v6537_v54 = vld [vmem:[%s9407_s3 + $0x4] ss:$16 sps:$4 sm:$0xff]  }
 0x126   :  { %2894 = vmatprep.subr.bf16.mxu0 %v6012_v12  ;;  %v422_v12 = vld [vmem:[%s9405_s1 + $0xb70] sm:$0xff] }
 0x127   :  { %v6076_v24 = vcombine.high %v418_v11, %v422_v12 }
 0x128   :  { %2981 = vmatpush1.bf16.msra.mxu1 %v5757_v13  ;;  %v163_v13 = vld [vmem:[%s9405_s1 + $0x358] sm:$0xff] }
 0x129   :  { %2895 = vmatpush1.bf16.msra.mxu0 %v6011_v16  ;;  %2982 = vmatprep.subr.bf16.mxu1 %v5766_v17  ;;  %v5813_v16 = vcombine.low %v155_v5, %v159_v6  ;;  %v6067_v17 = vcombine.low %v410_v3, %v414_v4  ;;  %v5822_v18 = vcombine.high %v163_v13, %v167_v14  ;;  %v215_v3 = vld [vmem:[%s9405_s1 + $0x4f8] sm:$0xff] }
 0x12a   :  { %2896 = vmatprep.subr.bf16.mxu0 %v6020_v20  ;;  %v430_v20 = vld [vmem:[%s9405_s1 + $0xbb0] sm:$0xff]  ;;  %v219_v6 = vld [vmem:[%s9405_s1 + $0x518] sm:$0xff] }
 0x12b   :  { %v6084_v33 = vcombine.high %v426_v19, %v430_v20  ;;  %v6083_v38 = vcombine.low %v426_v19, %v430_v20  ;;  %v6543_v20 = vld [vmem:[%s9407_s3 + $0x44] ss:$16 sps:$4 sm:$0xff]  }
 0x12c   :  { %2983 = vmatpush1.bf16.msra.mxu1 %v5765_v21  ;;  %v171_v21 = vld [vmem:[%s9405_s1 + $0x398] sm:$0xff] }
 0x12d   :  { %2897 = vmatpush1.bf16.msra.mxu0 %v6019_v25  ;;  %2984 = vmatprep.subr.bf16.mxu1 %v5774_v26  ;;  %v5821_v25 = vcombine.low %v163_v13, %v167_v14  ;;  %v6075_v26 = vcombine.low %v418_v11, %v422_v12  ;;  %v5830_v27 = vcombine.high %v171_v21, %v175_v22  ;;  %v6540_v11 = vld [vmem:[%s9407_s3 + $0x24] ss:$16 sps:$4 sm:$0xff]   ;;  %v227_v12 = vld [vmem:[%s9405_s1 + $0x558] sm:$0xff] }
 0x12e   :  { %2898 = vmatprep.subr.bf16.mxu0 %v6028_v30  ;;  %v438_v30 = vld [vmem:[%s9405_s1 + $0xbf0] sm:$0xff]  ;;  %v231_v13 = vld [vmem:[%s9405_s1 + $0x578] sm:$0xff]  ;;  %v8196_v14 = vld [vmem:[%s9408_s2] sm:$0xff] }
 0x12f   :  { %v6091_v46 = vcombine.low %v434_v29, %v438_v30 }
 0x130   :  { %2985 = vmatpush1.bf16.msra.mxu1 %v5773_v31  ;;  %v179_v31 = vld [vmem:[%s9405_s1 + $0x3d8] sm:$0xff] }
 0x131   :  { %2899 = vmatpush1.bf16.msra.mxu0 %v6027_v35  ;;  %2986 = vmatprep.subr.bf16.mxu1 %v5782_v36  ;;  %v5829_v35 = vcombine.low %v171_v21, %v175_v22  ;;  %v187_v36 = vld [vmem:[%s9405_s1 + $0x418] sm:$0xff]  ;;  %v5837_v45 = vcombine.low %v179_v31, %v183_v32 }
 0x132   :  { %2900 = vmatprep.subr.bf16.mxu0 %v6036_v39  ;;  %v5838_v39 = vcombine.high %v179_v31, %v183_v32  ;;  %v5846_v47 = vcombine.high %v187_v36, %v191_v37  ;;  %v235_v21 = vld [vmem:[%s9405_s1 + $0x598] sm:$0xff] }
 0x133   :  { %v239_v22 = vld [vmem:[%s9405_s1 + $0x5b8] sm:$0xff] }
 0x134   :  { %2987 = vmatpush1.bf16.msra.mxu1 %v5781_v40  ;;  %v442_v40 = vld [vmem:[%s9405_s1 + $0xc10] sm:$0xff]  ;;  %v243_v31 = vld [vmem:[%s9405_s1 + $0x5d8] sm:$0xff] }
 0x135   :  { %2901 = vmatpush1.bf16.msra.mxu0 %v6035_v41  ;;  %2988 = vmatprep.subr.bf16.mxu1 %v5790_v43  ;;  %v446_v41 = vld [vmem:[%s9405_s1 + $0xc30] sm:$0xff]  ;;  %v6092_v43 = vcombine.high %v434_v29, %v438_v30  ;;  %v247_v32 = vld [vmem:[%s9405_s1 + $0x5f8] sm:$0xff] }
 0x136   :  { %2902 = vmatprep.subr.bf16.mxu0 %v6044_v49  ;;  %v199_v49 = vld [vmem:[%s9405_s1 + $0x478] sm:$0xff]  ;;  %v6099_v60 = vcombine.low %v442_v40, %v446_v41  ;;  %v6546_v30 = vld [vmem:[%s9407_s3 + $0x64] ss:$16 sps:$4 sm:$0xff]  }
 0x137   :  { %v5854_v57 = vcombine.high %v195_v48, %v199_v49 }
 0x138   :  { %2989 = vmatpush1.bf16.msra.mxu1 %v5789_v50  ;;  %v6100_v50 = vcombine.high %v442_v40, %v446_v41 }
 0x139   :  { %2903 = vmatpush1.bf16.msra.mxu0 %v6043_v51  ;;  %2990 = vmatprep.subr.bf16.mxu1 %v5798_v53  ;;  %v5845_v51 = vcombine.low %v187_v36, %v191_v37  ;;  %v203_v53 = vld [vmem:[%s9405_s1 + $0x498] sm:$0xff] }
 0x13a   :  { %2904 = vmatprep.subr.bf16.mxu0 %v6052_v61  ;;  %v5853_v61 = vcombine.low %v195_v48, %v199_v49  ;;  %v255_v48 = vld [vmem:[%s9405_s1 + $0x638] sm:$0xff] }
 0x13c   :  { %2991 = vmatpush1.bf16.msra.mxu1 %v5797_v62  ;;  %v5862_v62 = vcombine.high %v203_v53, %v207_v59 }
 0x13d   :  { %2905 = vmatpush1.bf16.msra.mxu0 %v6051_v63  ;;  %2992 = vmatprep.subr.bf16.mxu1 %v5806_v2  ;;  %v211_v63 = vld [vmem:[%s9405_s1 + $0x4d8] sm:$0xff]  ;;  %v450_v2 = vlaneseq }
 0x13e   :  { %2906 = vmatprep.subr.bf16.mxu0 %v6060_v7  ;;  %v5870_v4 = vcombine.high %v211_v63, %v215_v3  ;;  %v223_v7 = vld [vmem:[%s9405_s1 + $0x538] sm:$0xff] }
 0x13f   :  { %v8170_v5 = vshrl.u32 %v450_v2, 7  ;;  %v263_v2 = vld [vmem:[%s9405_s1 + $0x678] sm:$0xff] }
 0x140   :  { %2993 = vmatpush1.bf16.msra.mxu1 %v5805_v8  ;;  %v5869_v8 = vcombine.low %v211_v63, %v215_v3  ;;  %v259_v63 = vld [vmem:[%s9405_s1 + $0x658] sm:$0xff] }
 0x141   :  { %2907 = vmatpush1.bf16.msra.mxu0 %v6059_v9  ;;  %2994 = vmatprep.subr.bf16.mxu1 %v5814_v10  ;;  %v5878_v9 = vcombine.high %v219_v6, %v223_v7  ;;  %v8182_v10 = vsub.s32 0, %v8170_v5 }
 0x142   :  { %2908 = vmatprep.subr.bf16.mxu0 %v6068_v15  ;;  %v8199_v15 = vsub.s32 1, %v8170_v5 }
 0x143   :  { %v453_v19 = vrot.slane %v8196_v14, %v8182_v10 }
 0x144   :  { %2995 = vmatpush1.bf16.msra.mxu1 %v5813_v16  ;;  %v5877_v16 = vcombine.low %v219_v6, %v223_v7 }
 0x145   :  { %2909 = vmatpush1.bf16.msra.mxu0 %v6067_v17  ;;  %2996 = vmatprep.subr.bf16.mxu1 %v5822_v18  ;;  %v6538_v17 = vld [vmem:[%s9407_s3 + $0x20] ss:$16 sps:$4 sm:$0xff]   ;;  %v5886_v18 = vcombine.high %v227_v12, %v231_v13  ;;  %v2489_v29 = vadd.f32 %v7987_v52, %v453_v19  ;;  %v2493_v36 = vadd.f32 %v7997_v56, %v453_v19  ;;  %v275_v19 = vld [vmem:[%s9405_s1 + $0x6d8] sm:$0xff] }
 0x146   :  { %2910 = vmatprep.subr.bf16.mxu0 %v6076_v24  ;;  %v457_v24 = vrot.slane %v8196_v14, %v8199_v15 }
 0x148   :  { %2997 = vmatpush1.bf16.msra.mxu1 %v5821_v25  ;;  %v5885_v25 = vcombine.low %v227_v12, %v231_v13  ;;  %v271_v12 = vld [vmem:[%s9405_s1 + $0x6b8] sm:$0xff]  ;;  %v5917_v13 = vcombine.low %v259_v63, %v263_v2 }
 0x149   :  { %2911 = vmatpush1.bf16.msra.mxu0 %v6075_v26  ;;  %2998 = vmatprep.subr.bf16.mxu1 %v5830_v27  ;;  %v6541_v26 = vld [vmem:[%s9407_s3 + $0x40] ss:$16 sps:$4 sm:$0xff]   ;;  %v5894_v27 = vcombine.high %v235_v21, %v239_v22 }
 0x14a   :  { %2912 = vmatprep.subr.bf16.mxu0 %v6084_v33  ;;  %v2491_v33 = vadd.f32 %v7995_v55, %v457_v24  ;;  %v6549_v55 = vld [vmem:[%s9407_s3 + $0x84] ss:$16 sps:$4 sm:$0xff]  }
 0x14c   :  { %2999 = vmatpush1.bf16.msra.mxu1 %v5829_v35 }
 0x14d   :  { %2913 = vmatpush1.bf16.msra.mxu0 %v6083_v38  ;;  %3000 = vmatprep.subr.bf16.mxu1 %v5838_v39  ;;  %v5893_v38 = vcombine.low %v235_v21, %v239_v22  ;;  %v2495_v39 = vadd.f32 %v7999_v58, %v457_v24  ;;  %v251_v58 = vld [vmem:[%s9405_s1 + $0x618] sm:$0xff]  ;;  %v6556_v22 = vld [vmem:[%s9407_s3 + $0xe0] ss:$16 sps:$4 sm:$0xff]  }
 0x14e   :  { %2914 = vmatprep.subr.bf16.mxu0 %v6092_v43  ;;  %v6544_v43 = vld [vmem:[%s9407_s3 + $0x60] ss:$16 sps:$4 sm:$0xff]   ;;  %v5909_v7 = vcombine.low %v251_v58, %v255_v48 }
 0x150   :  { %3001 = vmatpush1.bf16.msra.mxu1 %v5837_v45  ;;  %v5902_v45 = vcombine.high %v243_v31, %v247_v32 }
 0x151   :  { %2915 = vmatpush1.bf16.msra.mxu0 %v6091_v46  ;;  %3013 = vmatprep.subr.bf16.mxu1 %v5846_v47 }
 0x152   :  { %2927 = vmatprep.subr.bf16.mxu0 %v6100_v50 }
 0x153   :  { %3003 = vmatmul.mubr.bf16.vlgmr.msra.gmra.mrb[8].mxu1 %v7316_v23  ;;  %v5861_v23 = vcombine.low %v203_v53, %v207_v59  ;;  %v5901_v53 = vcombine.low %v243_v31, %v247_v32  ;;  %v6564_v32 = vld [vmem:[%s9407_s3 + $0x124] ss:$16 sps:$4 sm:$0xff]  }
 0x154   :  { %2917 = vmatmul.mubr.bf16.vlgmr.msra.gmra.mrb[4].mxu0 %v7533_v44  ;;  %3014 = vmatpush1.bf16.msra.mxu1 %v5845_v51 }
 0x155   :  { %3015 = vmatprep.subr.bf16.mxu1 %v5854_v57  ;;  %2928 = vmatpush1.bf16.msra.mxu0 %v6099_v60  ;;  %v5910_v57 = vcombine.high %v251_v58, %v255_v48  ;;  %v6568_v58 = vld [vmem:[%s9407_s3 + $0x160] ss:$16 sps:$4 sm:$0xff]  }
 0x156   :  { %2959 = vmatprep.mubr.bf16.mxu0 %v7020_v42  ;;  %4756 = vmatprep.subr.bf16.mxu0 %v6537_v54  ;;  %v6547_v54 = vld [vmem:[%s9407_s3 + $0x80] ss:$16 sps:$4 sm:$0xff]  }
 0x157   :  { %3045 = vmatprep.mubr.bf16.mxu1 %v7184_v1  ;;  %v6535_v1 = vld [vmem:[%s9407_s3] ss:$16 sps:$4 sm:$0xff]  }
 0x158   :  { %3016 = vmatpush1.bf16.msra.mxu1 %v5853_v61 }
 0x159   :  { %3017 = vmatprep.subr.bf16.mxu1 %v5862_v62  ;;  %v6552_v62 = vld [vmem:[%s9407_s3 + $0xa4] ss:$16 sps:$4 sm:$0xff]  }
 0x15c   :  { %3018 = vmatpush1.bf16.msra.mxu1 %v5861_v23 }
 0x15d   :  { %3019 = vmatprep.subr.bf16.mxu1 %v5870_v4 }
 0x160   :  { %6105 = vmatmul.mubr.msk.bf16.vlgmr.msra.gmra.mrb[4].mxu0 %vm2450_vm0, %v7569_v0  ;;  %3020 = vmatpush1.bf16.msra.mxu1 %v5869_v8  ;;  %v6550_v8 = vld [vmem:[%s9407_s3 + $0xa0] ss:$16 sps:$4 sm:$0xff]  }
 0x161   :  { %4757 = vmatpush1.bf16.msra.mxu0 %v6535_v1  ;;  %3021 = vmatprep.subr.bf16.mxu1 %v5878_v9  ;;  %v5918_v1 = vcombine.high %v259_v63, %v263_v2  ;;  %v6555_v9 = vld [vmem:[%s9407_s3 + $0xc4] ss:$16 sps:$4 sm:$0xff]   ;;  %v6574_v63 = vld [vmem:[%s9407_s3 + $0x1a0] ss:$16 sps:$4 sm:$0xff]  }
 0x162   :  { %4758 = vmatprep.subr.bf16.mxu0 %v6540_v11  ;;  %v267_v11 = vld [vmem:[%s9405_s1 + $0x698] sm:$0xff] }
 0x163   :  { %v5925_v21 = vcombine.low %v267_v11, %v271_v12 }
 0x164   :  { %3022 = vmatpush1.bf16.msra.mxu1 %v5877_v16  ;;  %v6553_v16 = vld [vmem:[%s9407_s3 + $0xc0] ss:$16 sps:$4 sm:$0xff]  }
 0x165   :  { %4759 = vmatpush1.bf16.msra.mxu0 %v6538_v17  ;;  %3023 = vmatprep.subr.bf16.mxu1 %v5886_v18  ;;  %v5926_v17 = vcombine.high %v267_v11, %v271_v12  ;;  %v6558_v18 = vld [vmem:[%s9407_s3 + $0xe4] ss:$16 sps:$4 sm:$0xff]  }
 0x166   :  { %4760 = vmatprep.subr.bf16.mxu0 %v6543_v20  ;;  %v279_v20 = vld [vmem:[%s9405_s1 + $0x6f8] sm:$0xff]  ;;  %v6582_v11 = vld [vmem:[%s9407_s3 + $0x1e4] ss:$16 sps:$4 sm:$0xff]  }
 0x167   :  { %v2617_v35 = vpop.f32.mrb[0].mxu0  ;;  %v5934_v24 = vcombine.high %v275_v19, %v279_v20 }
 0x168   :  { %v6429_v37 = vadd.f32 %v2617_v35, %v2489_v29  ;;  %v2619_v52 = vpop.f32.mrb[1].mxu0  ;;  %3024 = vmatpush1.bf16.msra.mxu1 %v5885_v25  ;;  %v6561_v25 = vld [vmem:[%s9407_s3 + $0x104] ss:$16 sps:$4 sm:$0xff]   ;;  %v5933_v29 = vcombine.low %v275_v19, %v279_v20  ;;  %v295_v35 = vld [vmem:[%s9405_s1 + $0x778] sm:$0xff] }
 0x169   :  { %4761 = vmatpush1.bf16.msra.mxu0 %v6541_v26  ;;  %v6431_v40 = vadd.f32 %v2619_v52, %v2491_v33  ;;  %v2621_v41 = vpop.f32.mrb[2].mxu0  ;;  %3025 = vmatprep.subr.bf16.mxu1 %v5894_v27  ;;  %v283_v26 = vld [vmem:[%s9405_s1 + $0x718] sm:$0xff]  ;;  %v6585_v19 = vld [vmem:[%s9407_s3 + $0x204] ss:$16 sps:$4 sm:$0xff]  }
 0x16a   :  { %v3158_v56 = vmul.f32 0.2, %v6429_v37  ;;  %v6433_v46 = vadd.f32 %v2621_v41, %v2493_v36  ;;  %v2623_v47 = vpop.f32.mrb[3].mxu0  ;;  %4762 = vmatprep.subr.bf16.mxu0 %v6546_v30  ;;  %vm3142_vm1 = vcmp.gt.f32.partialorder %v6429_v37, 0.0  ;;  %v287_v27 = vld [vmem:[%s9405_s1 + $0x738] sm:$0xff] }
 0x16b   :  { %v3159_v49 = vmul.f32 0.2, %v6431_v40  ;;  %v6435_v50 = vadd.f32 %v2623_v47, %v2495_v39  ;;  %vm3143_vm2 = vcmp.gt.f32.partialorder %v6431_v40, 0.0  ;;  %v6559_v30 = vld [vmem:[%s9407_s3 + $0x100] ss:$16 sps:$4 sm:$0xff]   ;;  %v5942_v31 = vcombine.high %v283_v26, %v287_v27  ;;  %v291_v33 = vld [vmem:[%s9405_s1 + $0x758] sm:$0xff] }
 0x16c   :  { %vm3150_vm3 = vcmp.gt.f32.partialorder %v6433_v46, 0.0  ;;  %v3166_v51 = vmul.f32 0.2, %v6433_v46  ;;  %3026 = vmatpush1.bf16.msra.mxu1 %v5893_v38  ;;  %v3174_v60 = vsel %vm3142_vm1, %v6429_v37, %v3158_v56  ;;  %v5941_v36 = vcombine.low %v283_v26, %v287_v27  ;;  %v6562_v37 = vld [vmem:[%s9407_s3 + $0x120] ss:$16 sps:$4 sm:$0xff]   ;;  %v299_v39 = vld [vmem:[%s9405_s1 + $0x798] sm:$0xff] }
 0x16d   :  { %vm3151_vm4 = vcmp.gt.f32.partialorder %v6435_v50, 0.0  ;;  %v3167_v59 = vmul.f32 0.2, %v6435_v50  ;;  %4763 = vmatpush1.bf16.msra.mxu0 %v6544_v43  ;;  %3027 = vmatprep.subr.bf16.mxu1 %v5902_v45  ;;  %v3175_v23 = vsel %vm3143_vm2, %v6431_v40, %v3159_v49  ;;  %v5950_v52 = vcombine.high %v291_v33, %v295_v35  ;;  %v6567_v38 = vld [vmem:[%s9407_s3 + $0x144] ss:$16 sps:$4 sm:$0xff]   ;;  %v303_v40 = vld [vmem:[%s9405_s1 + $0x7b8] sm:$0xff] }
 0x16e   :  { %v3182_v61 = vsel %vm3150_vm3, %v6433_v46, %v3166_v51  ;;  %4764 = vmatprep.subr.bf16.mxu0 %v6549_v55  ;;  %v5949_v41 = vcombine.low %v291_v33, %v295_v35  ;;  %v6565_v43 = vld [vmem:[%s9407_s3 + $0x140] ss:$16 sps:$4 sm:$0xff]   ;;  %v5958_v55 = vcombine.high %v299_v39, %v303_v40  ;;  %v6570_v45 = vld [vmem:[%s9407_s3 + $0x164] ss:$16 sps:$4 sm:$0xff]   ;;  %v307_v56 = vld [vmem:[%s9405_s1 + $0x7d8] sm:$0xff]  ;;  %v5957_v47 = vcombine.low %v299_v39, %v303_v40 }
 0x16f   :  { %v8259_v3 = vpack.c.bf16 %v3182_v61, %v3174_v60  ;;  %v3183_v4 = vsel %vm3151_vm4, %v6435_v50, %v3167_v59  ;;  %v311_v46 = vld [vmem:[%s9405_s1 + $0x7f8] sm:$0xff]  ;;  %v6573_v49 = vld [vmem:[%s9407_s3 + $0x184] ss:$16 sps:$4 sm:$0xff]   ;;  %v6571_v59 = vld [vmem:[%s9407_s3 + $0x180] ss:$16 sps:$4 sm:$0xff]  }
 0x170   :  { %3028 = vmatpush1.bf16.msra.mxu1 %v5901_v53  ;;  %v8262_v6 = vpack.c.bf16 %v3183_v4, %v3175_v23  ;;  %v5966_v48 = vcombine.high %v307_v56, %v311_v46  ;;  %v315_v50 = vld [vmem:[%s9405_s1 + $0x818] sm:$0xff]  ;;  %v5965_v53 = vcombine.low %v307_v56, %v311_v46  ;;  %v6579_v23 = vld [vmem:[%s9407_s3 + $0x1c4] ss:$16 sps:$4 sm:$0xff]  }
 0x171   :  { %4765 = vmatpush1.bf16.msra.mxu0 %v6547_v54  ;;  %3029 = vmatprep.subr.bf16.mxu1 %v5910_v57  ;;  %v319_v51 = vld [vmem:[%s9405_s1 + $0x838] sm:$0xff]  ;;  %v6576_v57 = vld [vmem:[%s9407_s3 + $0x1a4] ss:$16 sps:$4 sm:$0xff]  }
 0x172   :  { %4766 = vmatprep.subr.bf16.mxu0 %v6552_v62  ;;  %4788 = vmatprep.mubr.bf16.mxu0 %v8262_v6  ;;  %v5974_v54 = vcombine.high %v315_v50, %v319_v51  ;;  %v323_v60 = vld [vmem:[%s9405_s1 + $0x858] sm:$0xff]  ;;  %v5973_v62 = vcombine.low %v315_v50, %v319_v51  ;;  %v6588_v26 = vld [vmem:[%s9407_s3 + $0x224] ss:$16 sps:$4 sm:$0xff]  }
 0x173   :  { %v327_v61 = vld [vmem:[%s9405_s1 + $0x878] sm:$0xff]  ;;  %v6591_v33 = vld [vmem:[%s9407_s3 + $0x244] ss:$16 sps:$4 sm:$0xff]  }
 0x174   :  { %3030 = vmatpush1.bf16.msra.mxu1 %v5909_v7  ;;  %v5982_v2 = vcombine.high %v323_v60, %v327_v61  ;;  %v331_v4 = vld [vmem:[%s9405_s1 + $0x898] sm:$0xff]  ;;  %v6594_v39 = vld [vmem:[%s9407_s3 + $0x264] ss:$16 sps:$4 sm:$0xff]  }
 0x175   :  { %4767 = vmatpush1.bf16.msra.mxu0 %v6550_v8  ;;  %3031 = vmatprep.subr.bf16.mxu1 %v5918_v1  ;;  %v335_v7 = vld [vmem:[%s9405_s1 + $0x8b8] sm:$0xff]  ;;  %v5981_v8 = vcombine.low %v323_v60, %v327_v61  ;;  %v6577_v1 = vld [vmem:[%s9407_s3 + $0x1c0] ss:$16 sps:$4 sm:$0xff]   ;;  %v6597_v56 = vld [vmem:[%s9407_s3 + $0x284] ss:$16 sps:$4 sm:$0xff]  }
 0x176   :  { %4768 = vmatprep.subr.bf16.mxu0 %v6555_v9  ;;  %v5990_v9 = vcombine.high %v331_v4, %v335_v7  ;;  %v5989_v12 = vcombine.low %v331_v4, %v335_v7  ;;  %v6600_v50 = vld [vmem:[%s9407_s3 + $0x2a4] ss:$16 sps:$4 sm:$0xff]  }
 0x177   :  { %v6603_v60 = vld [vmem:[%s9407_s3 + $0x2c4] ss:$16 sps:$4 sm:$0xff]  }
 0x178   :  { %3032 = vmatpush1.bf16.msra.mxu1 %v5917_v13  ;;  %v6580_v13 = vld [vmem:[%s9407_s3 + $0x1e0] ss:$16 sps:$4 sm:$0xff]   ;;  %v6606_v4 = vld [vmem:[%s9407_s3 + $0x2e4] ss:$16 sps:$4 sm:$0xff]  }
 0x179   :  { %4769 = vmatpush1.bf16.msra.mxu0 %v6553_v16  ;;  %3033 = vmatprep.subr.bf16.mxu1 %v5926_v17  ;;  %v347_v17 = vld [vmem:[%s9405_s1 + $0x918] sm:$0xff] }
 0x17a   :  { %4770 = vmatprep.subr.bf16.mxu0 %v6558_v18  ;;  %v351_v18 = vld [vmem:[%s9405_s1 + $0x938] sm:$0xff] }
 0x17b   :  { %v6005_v27 = vcombine.low %v347_v17, %v351_v18 }
 0x17c   :  { %3034 = vmatpush1.bf16.msra.mxu1 %v5925_v21  ;;  %v6006_v21 = vcombine.high %v347_v17, %v351_v18  ;;  %v423_v17 = vld [vmem:[%s9405_s1 + $0xb78] sm:$0xff]  ;;  %v6612_v18 = vld [vmem:[%s9407_s3 + $0x324] ss:$16 sps:$4 sm:$0xff]  }
 0x17d   :  { %4771 = vmatpush1.bf16.msra.mxu0 %v6556_v22  ;;  %3035 = vmatprep.subr.bf16.mxu1 %v5934_v24  ;;  %v6583_v22 = vld [vmem:[%s9407_s3 + $0x200] ss:$16 sps:$4 sm:$0xff]   ;;  %v355_v24 = vld [vmem:[%s9405_s1 + $0x958] sm:$0xff] }
 0x17e   :  { %4772 = vmatprep.subr.bf16.mxu0 %v6561_v25  ;;  %v359_v25 = vld [vmem:[%s9405_s1 + $0x978] sm:$0xff] }
 0x17f   :  { %v6013_v35 = vcombine.low %v355_v24, %v359_v25 }
 0x180   :  { %3036 = vmatpush1.bf16.msra.mxu1 %v5933_v29  ;;  %v6014_v29 = vcombine.high %v355_v24, %v359_v25  ;;  %v431_v24 = vld [vmem:[%s9405_s1 + $0xbb8] sm:$0xff]  ;;  %v6615_v25 = vld [vmem:[%s9407_s3 + $0x344] ss:$16 sps:$4 sm:$0xff]  }
 0x181   :  { %4773 = vmatpush1.bf16.msra.mxu0 %v6559_v30  ;;  %3037 = vmatprep.subr.bf16.mxu1 %v5942_v31  ;;  %v6586_v30 = vld [vmem:[%s9407_s3 + $0x220] ss:$16 sps:$4 sm:$0xff]   ;;  %v363_v31 = vld [vmem:[%s9405_s1 + $0x998] sm:$0xff] }
 0x182   :  { %4774 = vmatprep.subr.bf16.mxu0 %v6564_v32  ;;  %v367_v32 = vld [vmem:[%s9405_s1 + $0x9b8] sm:$0xff] }
 0x183   :  { %v6021_v40 = vcombine.low %v363_v31, %v367_v32 }
 0x184   :  { %3038 = vmatpush1.bf16.msra.mxu1 %v5941_v36  ;;  %v6022_v36 = vcombine.high %v363_v31, %v367_v32  ;;  %v439_v31 = vld [vmem:[%s9405_s1 + $0xbf8] sm:$0xff]  ;;  %v6621_v32 = vld [vmem:[%s9407_s3 + $0x364] ss:$16 sps:$4 sm:$0xff]  }
 0x185   :  { %4775 = vmatpush1.bf16.msra.mxu0 %v6562_v37  ;;  %3039 = vmatprep.subr.bf16.mxu1 %v5950_v52  ;;  %v6589_v37 = vld [vmem:[%s9407_s3 + $0x240] ss:$16 sps:$4 sm:$0xff]   ;;  %v371_v52 = vld [vmem:[%s9405_s1 + $0x9d8] sm:$0xff] }
 0x186   :  { %4776 = vmatprep.subr.bf16.mxu0 %v6567_v38  ;;  %v375_v38 = vld [vmem:[%s9405_s1 + $0x9f8] sm:$0xff] }
 0x187   :  { %v6029_v46 = vcombine.low %v371_v52, %v375_v38 }
 0x188   :  { %3040 = vmatpush1.bf16.msra.mxu1 %v5949_v41  ;;  %v6030_v41 = vcombine.high %v371_v52, %v375_v38  ;;  %v447_v52 = vld [vmem:[%s9405_s1 + $0xc38] sm:$0xff]  ;;  %v6627_v38 = vld [vmem:[%s9407_s3 + $0x384] ss:$16 sps:$4 sm:$0xff]  }
 0x189   :  { %4777 = vmatpush1.bf16.msra.mxu0 %v6565_v43  ;;  %3041 = vmatprep.subr.bf16.mxu1 %v5958_v55  ;;  %v6592_v43 = vld [vmem:[%s9407_s3 + $0x260] ss:$16 sps:$4 sm:$0xff]   ;;  %v379_v55 = vld [vmem:[%s9405_s1 + $0xa18] sm:$0xff] }
 0x18a   :  { %4778 = vmatprep.subr.bf16.mxu0 %v6570_v45  ;;  %v383_v45 = vld [vmem:[%s9405_s1 + $0xa38] sm:$0xff] }
 0x18b   :  { %v6037_v51 = vcombine.low %v379_v55, %v383_v45 }
 0x18c   :  { %3042 = vmatpush1.bf16.msra.mxu1 %v5957_v47  ;;  %v6038_v47 = vcombine.high %v379_v55, %v383_v45  ;;  %v6618_v45 = vld [vmem:[%s9407_s3 + $0xc] ss:$16 sps:$4 sm:$0xff]  }
 0x18d   :  { %4779 = vmatpush1.bf16.msra.mxu0 %v6568_v58  ;;  %3043 = vmatprep.subr.bf16.mxu1 %v5966_v48  ;;  %v6595_v58 = vld [vmem:[%s9407_s3 + $0x280] ss:$16 sps:$4 sm:$0xff]   ;;  %v387_v48 = vld [vmem:[%s9405_s1 + $0xa58] sm:$0xff] }
 0x18e   :  { %4780 = vmatprep.subr.bf16.mxu0 %v6573_v49  ;;  %v391_v49 = vld [vmem:[%s9405_s1 + $0xa78] sm:$0xff] }
 0x18f   :  { %v6045_v61 = vcombine.low %v387_v48, %v391_v49 }
 0x190   :  { %3044 = vmatpush1.bf16.msra.mxu1 %v5965_v53  ;;  %v6046_v53 = vcombine.high %v387_v48, %v391_v49  ;;  %v6643_v48 = vld [vmem:[%s9407_s3 + $0x3e0] ss:$16 sps:$4 sm:$0xff]   ;;  %v6624_v49 = vld [vmem:[%s9407_s3 + $0x2c] ss:$16 sps:$4 sm:$0xff]  }
 0x191   :  { %4781 = vmatpush1.bf16.msra.mxu0 %v6571_v59  ;;  %3056 = vmatprep.subr.bf16.mxu1 %v5974_v54  ;;  %v6598_v59 = vld [vmem:[%s9407_s3 + $0x2a0] ss:$16 sps:$4 sm:$0xff]   ;;  %v395_v54 = vld [vmem:[%s9405_s1 + $0xa98] sm:$0xff] }
 0x192   :  { %4782 = vmatprep.subr.bf16.mxu0 %v6576_v57  ;;  %v399_v57 = vld [vmem:[%s9405_s1 + $0xab8] sm:$0xff] }
 0x193   :  { %3046 = vmatmul.mubr.bf16.vlgmr.msra.gmra.mrb[8].mxu1 %v7327_v28  ;;  %v339_v28 = vld [vmem:[%s9405_s1 + $0x8d8] sm:$0xff]  ;;  %v6053_v7 = vcombine.low %v395_v54, %v399_v57 }
 0x194   :  { %3057 = vmatpush1.bf16.msra.mxu1 %v5973_v62  ;;  %3088 = vmatprep.mubr.bf16.mxu1 %v7335_v34  ;;  %v343_v34 = vld [vmem:[%s9405_s1 + $0x8f8] sm:$0xff]  ;;  %v6054_v62 = vcombine.high %v395_v54, %v399_v57 }
 0x195   :  { %4783 = vmatpush1.bf16.msra.mxu0 %v6574_v63  ;;  %3058 = vmatprep.subr.bf16.mxu1 %v5982_v2  ;;  %v5998_v16 = vcombine.high %v339_v28, %v343_v34  ;;  %v5997_v20 = vcombine.low %v339_v28, %v343_v34  ;;  %v6601_v63 = vld [vmem:[%s9407_s3 + $0x2c0] ss:$16 sps:$4 sm:$0xff]   ;;  %v403_v2 = vld [vmem:[%s9405_s1 + $0xad8] sm:$0xff]  ;;  %v6609_v28 = vld [vmem:[%s9407_s3 + $0x304] ss:$16 sps:$4 sm:$0xff]  }
 0x196   :  { %4784 = vmatprep.subr.bf16.mxu0 %v6579_v23  ;;  %v407_v23 = vld [vmem:[%s9405_s1 + $0xaf8] sm:$0xff] }
 0x197   :  { %v6061_v34 = vcombine.low %v403_v2, %v407_v23  ;;  %v6636_v57 = vld [vmem:[%s9407_s3 + $0x6c] ss:$16 sps:$4 sm:$0xff]  }
 0x198   :  { %3059 = vmatpush1.bf16.msra.mxu1 %v5981_v8  ;;  %v6062_v8 = vcombine.high %v403_v2, %v407_v23  ;;  %v6634_v23 = vld [vmem:[%s9407_s3 + $0x68] ss:$16 sps:$4 sm:$0xff]  }
 0x199   :  { %4785 = vmatpush1.bf16.msra.mxu0 %v6577_v1  ;;  %3060 = vmatprep.subr.bf16.mxu1 %v5990_v9  ;;  %v6604_v1 = vld [vmem:[%s9407_s3 + $0x2e0] ss:$16 sps:$4 sm:$0xff]   ;;  %v411_v9 = vld [vmem:[%s9405_s1 + $0xb18] sm:$0xff] }
 0x19a   :  { %4786 = vmatprep.subr.bf16.mxu0 %v6582_v11  ;;  %v415_v11 = vld [vmem:[%s9405_s1 + $0xb38] sm:$0xff] }
 0x19c   :  { %3061 = vmatpush1.bf16.msra.mxu1 %v5989_v12  ;;  %v6070_v12 = vcombine.high %v411_v9, %v415_v11 }
 0x19d   :  { %4787 = vmatpush1.bf16.msra.mxu0 %v6580_v13  ;;  %3062 = vmatprep.subr.bf16.mxu1 %v5998_v16  ;;  %v6607_v13 = vld [vmem:[%s9407_s3 + $0x300] ss:$16 sps:$4 sm:$0xff]   ;;  %v419_v16 = vld [vmem:[%s9405_s1 + $0xb58] sm:$0xff] }
 0x19e   :  { %4799 = vmatprep.subr.bf16.mxu0 %v6585_v19  ;;  %v6069_v19 = vcombine.low %v411_v9, %v415_v11 }
 0x1a0   :  { %4789 = vmatmul.mubr.bf16.vlgmr.msra.gmra.mrb[8].mxu0 %v8259_v3  ;;  %3063 = vmatpush1.bf16.msra.mxu1 %v5997_v20  ;;  %v6078_v20 = vcombine.high %v419_v16, %v423_v17 }
 0x1a1   :  { %3064 = vmatprep.subr.bf16.mxu1 %v6006_v21  ;;  %4800 = vmatpush1.bf16.msra.mxu0 %v6583_v22  ;;  %v6610_v21 = vld [vmem:[%s9407_s3 + $0x320] ss:$16 sps:$4 sm:$0xff]   ;;  %v427_v22 = vld [vmem:[%s9405_s1 + $0xb98] sm:$0xff] }
 0x1a2   :  { %4801 = vmatprep.subr.bf16.mxu0 %v6588_v26  ;;  %v6077_v26 = vcombine.low %v419_v16, %v423_v17  ;;  %v6648_v16 = vld [vmem:[%s9407_s3 + $0xac] ss:$16 sps:$4 sm:$0xff]  }
 0x1a4   :  { %3065 = vmatpush1.bf16.msra.mxu1 %v6005_v27  ;;  %v6086_v27 = vcombine.high %v427_v22, %v431_v24 }
 0x1a5   :  { %3066 = vmatprep.subr.bf16.mxu1 %v6014_v29  ;;  %4802 = vmatpush1.bf16.msra.mxu0 %v6586_v30  ;;  %v6613_v29 = vld [vmem:[%s9407_s3 + $0x340] ss:$16 sps:$4 sm:$0xff]   ;;  %v435_v30 = vld [vmem:[%s9405_s1 + $0xbd8] sm:$0xff] }
 0x1a6   :  { %4803 = vmatprep.subr.bf16.mxu0 %v6591_v33  ;;  %v6085_v33 = vcombine.low %v427_v22, %v431_v24  ;;  %v6646_v22 = vld [vmem:[%s9407_s3 + $0xa8] ss:$16 sps:$4 sm:$0xff]   ;;  %v6663_v24 = vld [vmem:[%s9407_s3 + $0x424] ss:$16 sps:$4 sm:$0xff]  }
 0x1a8   :  { %3067 = vmatpush1.bf16.msra.mxu1 %v6013_v35  ;;  %v6094_v35 = vcombine.high %v435_v30, %v439_v31 }
 0x1a9   :  { %3068 = vmatprep.subr.bf16.mxu1 %v6022_v36  ;;  %4804 = vmatpush1.bf16.msra.mxu0 %v6589_v37  ;;  %v6619_v36 = vld [vmem:[%s9407_s3 + $0x360] ss:$16 sps:$4 sm:$0xff]   ;;  %v443_v37 = vld [vmem:[%s9405_s1 + $0xc18] sm:$0xff] }
 0x1aa   :  { %4805 = vmatprep.subr.bf16.mxu0 %v6594_v39  ;;  %v6093_v39 = vcombine.low %v435_v30, %v439_v31  ;;  %v6101_v55 = vcombine.low %v443_v37, %v447_v52  ;;  %v6654_v30 = vld [vmem:[%s9407_s3 + $0xec] ss:$16 sps:$4 sm:$0xff]   ;;  %v6667_v31 = vld [vmem:[%s9407_s3 + $0x440] ss:$16 sps:$4 sm:$0xff]  }
 0x1ac   :  { %3069 = vmatpush1.bf16.msra.mxu1 %v6021_v40  ;;  %v6102_v40 = vcombine.high %v443_v37, %v447_v52  ;;  %v6658_v37 = vld [vmem:[%s9407_s3 + $0x108] ss:$16 sps:$4 sm:$0xff]   ;;  %v6681_v52 = vld [vmem:[%s9407_s3 + $0x484] ss:$16 sps:$4 sm:$0xff]  }
 0x1ad   :  { %3070 = vmatprep.subr.bf16.mxu1 %v6030_v41  ;;  %4806 = vmatpush1.bf16.msra.mxu0 %v6592_v43  ;;  %v6625_v41 = vld [vmem:[%s9407_s3 + $0x380] ss:$16 sps:$4 sm:$0xff]   ;;  %v6633_v43 = vld [vmem:[%s9407_s3 + $0x3a4] ss:$16 sps:$4 sm:$0xff]  }
 0x1ae   :  { %4807 = vmatprep.subr.bf16.mxu0 %v6597_v56  ;;  %v6631_v56 = vld [vmem:[%s9407_s3 + $0x3a0] ss:$16 sps:$4 sm:$0xff]  }
 0x1b0   :  { %3071 = vmatpush1.bf16.msra.mxu1 %v6029_v46  ;;  %v6639_v46 = vld [vmem:[%s9407_s3 + $0x3c4] ss:$16 sps:$4 sm:$0xff]  }
 0x1b1   :  { %3072 = vmatprep.subr.bf16.mxu1 %v6038_v47  ;;  %4808 = vmatpush1.bf16.msra.mxu0 %v6595_v58  ;;  %v6637_v47 = vld [vmem:[%s9407_s3 + $0x3c0] ss:$16 sps:$4 sm:$0xff]   ;;  %v6645_v58 = vld [vmem:[%s9407_s3 + $0x3e4] ss:$16 sps:$4 sm:$0xff]  }
 0x1b2   :  { %4809 = vmatprep.subr.bf16.mxu0 %v6600_v50  ;;  %v460_v50 = vsub.s32 2, %v8170_v5 }
 0x1b4   :  { %3073 = vmatpush1.bf16.msra.mxu1 %v6037_v51  ;;  %v6622_v51 = vld [vmem:[%s9407_s3 + $0x28] ss:$16 sps:$4 sm:$0xff]  }
 0x1b5   :  { %3074 = vmatprep.subr.bf16.mxu1 %v6046_v53  ;;  %4810 = vmatpush1.bf16.msra.mxu0 %v6598_v59  ;;  %v464_v53 = vsub.s32 3, %v8170_v5  ;;  %v6630_v59 = vld [vmem:[%s9407_s3 + $0x4c] ss:$16 sps:$4 sm:$0xff]  }
 0x1b6   :  { %4811 = vmatprep.subr.bf16.mxu0 %v6603_v60 }
 0x1b7   :  { %v465_v54 = vrot.slane %v8196_v14, %v464_v53 }
 0x1b8   :  { %3075 = vmatpush1.bf16.msra.mxu1 %v6045_v61 }
 0x1b9   :  { %3076 = vmatprep.subr.bf16.mxu1 %v6054_v62  ;;  %4812 = vmatpush1.bf16.msra.mxu0 %v6601_v63 }
 0x1ba   :  { %4813 = vmatprep.subr.bf16.mxu0 %v6606_v4 }
 0x1bc   :  { %3077 = vmatpush1.bf16.msra.mxu1 %v6053_v7 }
 0x1bd   :  { %3078 = vmatprep.subr.bf16.mxu1 %v6062_v8  ;;  %4814 = vmatpush1.bf16.msra.mxu0 %v6604_v1 }
 0x1be   :  { %4815 = vmatprep.subr.bf16.mxu0 %v6609_v28 }
 0x1c0   :  { %3079 = vmatpush1.bf16.msra.mxu1 %v6061_v34  ;;  %v6640_v34 = vld [vmem:[%s9407_s3 + $0x88] ss:$16 sps:$4 sm:$0xff]  }
 0x1c1   :  { %3080 = vmatprep.subr.bf16.mxu1 %v6070_v12  ;;  %4816 = vmatpush1.bf16.msra.mxu0 %v6607_v13 }
 0x1c2   :  { %4817 = vmatprep.subr.bf16.mxu0 %v6612_v18 }
 0x1c4   :  { %3081 = vmatpush1.bf16.msra.mxu1 %v6069_v19 }
 0x1c5   :  { %3082 = vmatprep.subr.bf16.mxu1 %v6078_v20  ;;  %4818 = vmatpush1.bf16.msra.mxu0 %v6610_v21  ;;  %v6655_v21 = vld [vmem:[%s9407_s3 + $0x400] ss:$16 sps:$4 sm:$0xff]  }
 0x1c6   :  { %4819 = vmatprep.subr.bf16.mxu0 %v6615_v25  ;;  %v6651_v25 = vld [vmem:[%s9407_s3 + $0xcc] ss:$16 sps:$4 sm:$0xff]  }
 0x1c8   :  { %3083 = vmatpush1.bf16.msra.mxu1 %v6077_v26  ;;  %v6661_v26 = vld [vmem:[%s9407_s3 + $0x420] ss:$16 sps:$4 sm:$0xff]  }
 0x1c9   :  { %3084 = vmatprep.subr.bf16.mxu1 %v6086_v27  ;;  %4820 = vmatpush1.bf16.msra.mxu0 %v6613_v29  ;;  %v6649_v27 = vld [vmem:[%s9407_s3 + $0xc8] ss:$16 sps:$4 sm:$0xff]   ;;  %v6669_v29 = vld [vmem:[%s9407_s3 + $0x444] ss:$16 sps:$4 sm:$0xff]  }
 0x1ca   :  { %4821 = vmatprep.subr.bf16.mxu0 %v6621_v32  ;;  %v6652_v32 = vld [vmem:[%s9407_s3 + $0xe8] ss:$16 sps:$4 sm:$0xff]  }
 0x1cc   :  { %3085 = vmatpush1.bf16.msra.mxu1 %v6085_v33  ;;  %v6675_v33 = vld [vmem:[%s9407_s3 + $0x464] ss:$16 sps:$4 sm:$0xff]  }
 0x1cd   :  { %3086 = vmatprep.subr.bf16.mxu1 %v6094_v35  ;;  %4822 = vmatpush1.bf16.msra.mxu0 %v6619_v36  ;;  %v6660_v35 = vld [vmem:[%s9407_s3 + $0x10c] ss:$16 sps:$4 sm:$0xff]   ;;  %v6673_v36 = vld [vmem:[%s9407_s3 + $0x460] ss:$16 sps:$4 sm:$0xff]  }
 0x1ce   :  { %4823 = vmatprep.subr.bf16.mxu0 %v6627_v38  ;;  %v6666_v38 = vld [vmem:[%s9407_s3 + $0x12c] ss:$16 sps:$4 sm:$0xff]  }
 0x1d0   :  { %3087 = vmatpush1.bf16.msra.mxu1 %v6093_v39  ;;  %v6679_v39 = vld [vmem:[%s9407_s3 + $0x480] ss:$16 sps:$4 sm:$0xff]  }
 0x1d1   :  { %3099 = vmatprep.subr.bf16.mxu1 %v6102_v40  ;;  %4824 = vmatpush1.bf16.msra.mxu0 %v6625_v41  ;;  %v6664_v40 = vld [vmem:[%s9407_s3 + $0x128] ss:$16 sps:$4 sm:$0xff]   ;;  %v6687_v41 = vld [vmem:[%s9407_s3 + $0x4a4] ss:$16 sps:$4 sm:$0xff]  }
 0x1d2   :  { %4825 = vmatprep.subr.bf16.mxu0 %v6633_v43  ;;  %v6672_v43 = vld [vmem:[%s9407_s3 + $0x14c] ss:$16 sps:$4 sm:$0xff]  }
 0x1d3   :  { %3089 = vmatmul.mubr.bf16.vlgmr.msra.gmra.mrb[8].mxu1 %v7533_v44  ;;  %v6616_v44 = vld [vmem:[%s9407_s3 + $0x8] ss:$16 sps:$4 sm:$0xff]  }
 0x1d4   :  { %3100 = vmatpush1.bf16.msra.mxu1 %v6101_v55  ;;  %3131 = vmatprep.mubr.bf16.mxu1 %v7020_v42  ;;  %v6657_v42 = vld [vmem:[%s9407_s3 + $0x404] ss:$16 sps:$4 sm:$0xff]   ;;  %v6685_v55 = vld [vmem:[%s9407_s3 + $0x4a0] ss:$16 sps:$4 sm:$0xff]  }
 0x1d5   :  { %4928 = vmatprep.subr.bf16.mxu1 %v6618_v45  ;;  %4826 = vmatpush1.bf16.msra.mxu0 %v6631_v56  ;;  %v6670_v45 = vld [vmem:[%s9407_s3 + $0x148] ss:$16 sps:$4 sm:$0xff]   ;;  %v6693_v56 = vld [vmem:[%s9407_s3 + $0x4c4] ss:$16 sps:$4 sm:$0xff]  }
 0x1d6   :  { %4827 = vmatprep.subr.bf16.mxu0 %v6639_v46  ;;  %v6678_v46 = vld [vmem:[%s9407_s3 + $0x16c] ss:$16 sps:$4 sm:$0xff]  }
 0x1d9   :  { %4828 = vmatpush1.bf16.msra.mxu0 %v6637_v47  ;;  %v6691_v47 = vld [vmem:[%s9407_s3 + $0x4c0] ss:$16 sps:$4 sm:$0xff]  }
 0x1da   :  { %4829 = vmatprep.subr.bf16.mxu0 %v6645_v58  ;;  %v6676_v58 = vld [vmem:[%s9407_s3 + $0x168] ss:$16 sps:$4 sm:$0xff]  }
 0x1dd   :  { %4830 = vmatpush1.bf16.msra.mxu0 %v6643_v48  ;;  %v6699_v48 = vld [vmem:[%s9407_s3 + $0x4e4] ss:$16 sps:$4 sm:$0xff]  }
 0x1de   :  { %4842 = vmatprep.subr.bf16.mxu0 %v6657_v42  ;;  %v6684_v42 = vld [vmem:[%s9407_s3 + $0x18c] ss:$16 sps:$4 sm:$0xff]  }
 0x1df   :  { %6106 = vmatmul.mubr.msk.bf16.vlgmr.msra.gmra.mrb[8].mxu1 %vm2450_vm0, %v7569_v0  ;;  %v461_v0 = vrot.slane %v8196_v14, %v460_v50  ;;  %v6642_v14 = vld [vmem:[%s9407_s3 + $0x8c] ss:$16 sps:$4 sm:$0xff]  }
 0x1e0   :  { %4929 = vmatpush1.bf16.msra.mxu1 %v6616_v44  ;;  %4960 = vmatprep.mubr.bf16.mxu1 %v8262_v6  ;;  %v6628_v6 = vld [vmem:[%s9407_s3 + $0x48] ss:$16 sps:$4 sm:$0xff]   ;;  %v6697_v44 = vld [vmem:[%s9407_s3 + $0x4e0] ss:$16 sps:$4 sm:$0xff]  }
 0x1e1   :  { %4930 = vmatprep.subr.bf16.mxu1 %v6624_v49  ;;  %v6682_v49 = vld [vmem:[%s9407_s3 + $0x188] ss:$16 sps:$4 sm:$0xff]  }
 0x1e4   :  { %4931 = vmatpush1.bf16.msra.mxu1 %v6622_v51  ;;  %v6705_v51 = vld [vmem:[%s9407_s3 + $0x504] ss:$16 sps:$4 sm:$0xff]  }
 0x1e5   :  { %4932 = vmatprep.subr.bf16.mxu1 %v6630_v59  ;;  %v6690_v59 = vld [vmem:[%s9407_s3 + $0x1ac] ss:$16 sps:$4 sm:$0xff]  }
 0x1e6   :  { %v2789_v60 = vpop.f32.mrb[4].mxu1 }
 0x1e7   :  { %v6436_v61 = vadd.f32 %v2789_v60, %v461_v0  ;;  %v2791_v62 = vpop.f32.mrb[5].mxu1  ;;  %v6709_v60 = vld [vmem:[%s9407_s3 + $0x520] ss:$16 sps:$4 sm:$0xff]  }
 0x1e8   :  { %4933 = vmatpush1.bf16.msra.mxu1 %v6628_v6  ;;  %v6437_v63 = vadd.f32 %v2791_v62, %v465_v54  ;;  %v2793_v2 = vpop.f32.mrb[6].mxu1  ;;  %v6688_v6 = vld [vmem:[%s9407_s3 + $0x1a8] ss:$16 sps:$4 sm:$0xff]   ;;  %v6717_v62 = vld [vmem:[%s9407_s3 + $0x544] ss:$16 sps:$4 sm:$0xff]  }
 0x1e9   :  { %v3160_v4 = vmul.f32 0.2, %v6436_v61  ;;  %v6438_v7 = vadd.f32 %v2793_v2, %v461_v0  ;;  %v2795_v8 = vpop.f32.mrb[7].mxu1  ;;  %4934 = vmatprep.subr.bf16.mxu1 %v6636_v57  ;;  %vm3144_vm5 = vcmp.gt.f32.partialorder %v6436_v61, 0.0  ;;  %v6703_v0 = vld [vmem:[%s9407_s3 + $0x500] ss:$16 sps:$4 sm:$0xff]  }
 0x1ea   :  { %v3161_v1 = vmul.f32 0.2, %v6437_v63  ;;  %v6439_v9 = vadd.f32 %v2795_v8, %v465_v54  ;;  %vm3145_vm6 = vcmp.gt.f32.partialorder %v6437_v63, 0.0  ;;  %v6711_v54 = vld [vmem:[%s9407_s3 + $0x524] ss:$16 sps:$4 sm:$0xff]  }
 0x1eb   :  { %vm3152_vm7 = vcmp.gt.f32.partialorder %v6438_v7, 0.0  ;;  %v3168_v11 = vmul.f32 0.2, %v6438_v7  ;;  %v3176_v12 = vsel %vm3144_vm5, %v6436_v61, %v3160_v4  ;;  %v6696_v57 = vld [vmem:[%s9407_s3 + $0x1cc] ss:$16 sps:$4 sm:$0xff]  }
 0x1ec   :  { %vm3153_vm8 = vcmp.gt.f32.partialorder %v6439_v9, 0.0  ;;  %v3169_v28 = vmul.f32 0.2, %v6439_v9  ;;  %4935 = vmatpush1.bf16.msra.mxu1 %v6634_v23  ;;  %v3177_v18 = vsel %vm3145_vm6, %v6437_v63, %v3161_v1  ;;  %v6694_v61 = vld [vmem:[%s9407_s3 + $0x1c8] ss:$16 sps:$4 sm:$0xff]  }
 0x1ed   :  { %v3184_v13 = vsel %vm3152_vm7, %v6438_v7, %v3168_v11  ;;  %4936 = vmatprep.subr.bf16.mxu1 %v6642_v14  ;;  %v6702_v63 = vld [vmem:[%s9407_s3 + $0x1ec] ss:$16 sps:$4 sm:$0xff]   ;;  %v6715_v2 = vld [vmem:[%s9407_s3 + $0x540] ss:$16 sps:$4 sm:$0xff]   ;;  %v6700_v23 = vld [vmem:[%s9407_s3 + $0x1e8] ss:$16 sps:$4 sm:$0xff]  }
 0x1ee   :  { %v8614_v17 = vpack.c.bf16 %v3184_v13, %v3176_v12  ;;  %v3185_v19 = vsel %vm3153_vm8, %v6439_v9, %v3169_v28  ;;  %v6723_v4 = vld [vmem:[%s9407_s3 + $0x564] ss:$16 sps:$4 sm:$0xff]   ;;  %v6708_v7 = vld [vmem:[%s9407_s3 + $0x20c] ss:$16 sps:$4 sm:$0xff]   ;;  %v6721_v8 = vld [vmem:[%s9407_s3 + $0x560] ss:$16 sps:$4 sm:$0xff]  }
 0x1ef   :  { %v8616_v20 = vpack.c.bf16 %v3185_v19, %v3177_v18  ;;  %v6706_v14 = vld [vmem:[%s9407_s3 + $0x208] ss:$16 sps:$4 sm:$0xff]   ;;  %v6714_v1 = vld [vmem:[%s9407_s3 + $0x22c] ss:$16 sps:$4 sm:$0xff]   ;;  %v6729_v9 = vld [vmem:[%s9407_s3 + $0x584] ss:$16 sps:$4 sm:$0xff]  }
 0x1f0   :  { %4937 = vmatpush1.bf16.msra.mxu1 %v6640_v34  ;;  %v6727_v11 = vld [vmem:[%s9407_s3 + $0x580] ss:$16 sps:$4 sm:$0xff]   ;;  %v6712_v28 = vld [vmem:[%s9407_s3 + $0x228] ss:$16 sps:$4 sm:$0xff]   ;;  %v6735_v34 = vld [vmem:[%s9407_s3 + $0x5a4] ss:$16 sps:$4 sm:$0xff]  }
 0x1f1   :  { %4831 = vmatprep.mubr.bf16.mxu0 %v8616_v20  ;;  %4938 = vmatprep.subr.bf16.mxu1 %v6648_v16  ;;  %v6733_v12 = vld [vmem:[%s9407_s3 + $0x5a0] ss:$16 sps:$4 sm:$0xff]   ;;  %v6718_v13 = vld [vmem:[%s9407_s3 + $0x248] ss:$16 sps:$4 sm:$0xff]   ;;  %v6741_v16 = vld [vmem:[%s9407_s3 + $0x5c4] ss:$16 sps:$4 sm:$0xff]  }
 0x1f2   :  { %4832 = vmatmul.mubr.bf16.vlgmr.msra.gmra.mrb[8].mxu0 %v8614_v17  ;;  %v6726_v18 = vld [vmem:[%s9407_s3 + $0x26c] ss:$16 sps:$4 sm:$0xff]   ;;  %v6739_v19 = vld [vmem:[%s9407_s3 + $0x5c0] ss:$16 sps:$4 sm:$0xff]  }
 0x1f3   :  { %4843 = vmatpush1.bf16.msra.mxu0 %v6655_v21  ;;  %v6747_v21 = vld [vmem:[%s9407_s3 + $0x5e4] ss:$16 sps:$4 sm:$0xff]  }
 0x1f4   :  { %4939 = vmatpush1.bf16.msra.mxu1 %v6646_v22  ;;  %4844 = vmatprep.subr.bf16.mxu0 %v6663_v24  ;;  %v6732_v22 = vld [vmem:[%s9407_s3 + $0x28c] ss:$16 sps:$4 sm:$0xff]   ;;  %v6745_v24 = vld [vmem:[%s9407_s3 + $0x5e0] ss:$16 sps:$4 sm:$0xff]  }
 0x1f5   :  { %4940 = vmatprep.subr.bf16.mxu1 %v6651_v25  ;;  %v6730_v25 = vld [vmem:[%s9407_s3 + $0x288] ss:$16 sps:$4 sm:$0xff]  }
 0x1f7   :  { %4845 = vmatpush1.bf16.msra.mxu0 %v6661_v26  ;;  %v468_v26 = vsub.s32 4, %v8170_v5 }
 0x1f8   :  { %4941 = vmatpush1.bf16.msra.mxu1 %v6649_v27  ;;  %4846 = vmatprep.subr.bf16.mxu0 %v6669_v29  ;;  %v6801_v27 = vld [vmem:[%s9407_s3 + $0x604] ss:$16 sps:$4 sm:$0xff]   ;;  %v6738_v29 = vld [vmem:[%s9407_s3 + $0x2ac] ss:$16 sps:$4 sm:$0xff]  }
 0x1f9   :  { %4942 = vmatprep.subr.bf16.mxu1 %v6654_v30  ;;  %v472_v30 = vsub.s32 5, %v8170_v5 }
 0x1fb   :  { %4847 = vmatpush1.bf16.msra.mxu0 %v6667_v31  ;;  %v8819_v31 = vld [vmem:[%s9408_s2] sm:$0xff] }
 0x1fc   :  { %4943 = vmatpush1.bf16.msra.mxu1 %v6652_v32  ;;  %4848 = vmatprep.subr.bf16.mxu0 %v6675_v33  ;;  %v469_v32 = vrot.slane %v8819_v31, %v468_v26  ;;  %v6736_v33 = vld [vmem:[%s9407_s3 + $0x2a8] ss:$16 sps:$4 sm:$0xff]   ;;  %v6843_v26 = vld [vmem:[%s9407_s3 + $0x6e4] ss:$16 sps:$4 sm:$0xff]  }
 0x1fd   :  { %4944 = vmatprep.subr.bf16.mxu1 %v6660_v35  ;;  %v473_v35 = vrot.slane %v8819_v31, %v472_v30  ;;  %v6777_v30 = vld [vmem:[%s9407_s3 + $0x40c] ss:$16 sps:$4 sm:$0xff]  }
 0x1ff   :  { %4849 = vmatpush1.bf16.msra.mxu0 %v6673_v36  ;;  %v6744_v36 = vld [vmem:[%s9407_s3 + $0x2cc] ss:$16 sps:$4 sm:$0xff]  }
 0x200   :  { %4945 = vmatpush1.bf16.msra.mxu1 %v6658_v37  ;;  %4850 = vmatprep.subr.bf16.mxu0 %v6681_v52 }
 0x201   :  { %4946 = vmatprep.subr.bf16.mxu1 %v6666_v38 }
 0x203   :  { %4851 = vmatpush1.bf16.msra.mxu0 %v6679_v39  ;;  %v6742_v39 = vld [vmem:[%s9407_s3 + $0x2c8] ss:$16 sps:$4 sm:$0xff]  }
 0x204   :  { %4947 = vmatpush1.bf16.msra.mxu1 %v6664_v40  ;;  %4852 = vmatprep.subr.bf16.mxu0 %v6687_v41 }
 0x205   :  { %4948 = vmatprep.subr.bf16.mxu1 %v6672_v43  ;;  %v6750_v43 = vld [vmem:[%s9407_s3 + $0x2ec] ss:$16 sps:$4 sm:$0xff]  }
 0x207   :  { %4853 = vmatpush1.bf16.msra.mxu0 %v6685_v55 }
 0x208   :  { %4949 = vmatpush1.bf16.msra.mxu1 %v6670_v45  ;;  %4854 = vmatprep.subr.bf16.mxu0 %v6693_v56 }
 0x209   :  { %4950 = vmatprep.subr.bf16.mxu1 %v6678_v46 }
 0x20b   :  { %4855 = vmatpush1.bf16.msra.mxu0 %v6691_v47 }
 0x20c   :  { %4951 = vmatpush1.bf16.msra.mxu1 %v6676_v58  ;;  %4856 = vmatprep.subr.bf16.mxu0 %v6699_v48  ;;  %v6748_v48 = vld [vmem:[%s9407_s3 + $0x2e8] ss:$16 sps:$4 sm:$0xff]  }
 0x20d   :  { %4952 = vmatprep.subr.bf16.mxu1 %v6684_v42 }
 0x20f   :  { %4857 = vmatpush1.bf16.msra.mxu0 %v6697_v44  ;;  %v6753_v44 = vld [vmem:[%s9407_s3 + $0x30c] ss:$16 sps:$4 sm:$0xff]  }
 0x210   :  { %4953 = vmatpush1.bf16.msra.mxu1 %v6682_v49  ;;  %4858 = vmatprep.subr.bf16.mxu0 %v6705_v51 }
 0x211   :  { %4954 = vmatprep.subr.bf16.mxu1 %v6690_v59 }
 0x213   :  { %4859 = vmatpush1.bf16.msra.mxu0 %v6703_v0 }
 0x214   :  { %4955 = vmatpush1.bf16.msra.mxu1 %v6688_v6  ;;  %4860 = vmatprep.subr.bf16.mxu0 %v6711_v54 }
 0x215   :  { %4956 = vmatprep.subr.bf16.mxu1 %v6696_v57  ;;  %v6751_v57 = vld [vmem:[%s9407_s3 + $0x308] ss:$16 sps:$4 sm:$0xff]  }
 0x217   :  { %4861 = vmatpush1.bf16.msra.mxu0 %v6709_v60  ;;  %v6799_v60 = vld [vmem:[%s9407_s3 + $0x600] ss:$16 sps:$4 sm:$0xff]  }
 0x218   :  { %4957 = vmatpush1.bf16.msra.mxu1 %v6694_v61  ;;  %4862 = vmatprep.subr.bf16.mxu0 %v6717_v62  ;;  %v6756_v61 = vld [vmem:[%s9407_s3 + $0x32c] ss:$16 sps:$4 sm:$0xff]   ;;  %v6807_v62 = vld [vmem:[%s9407_s3 + $0x624] ss:$16 sps:$4 sm:$0xff]  }
 0x219   :  { %4958 = vmatprep.subr.bf16.mxu1 %v6702_v63  ;;  %v6754_v63 = vld [vmem:[%s9407_s3 + $0x328] ss:$16 sps:$4 sm:$0xff]  }
 0x21b   :  { %4863 = vmatpush1.bf16.msra.mxu0 %v6715_v2  ;;  %v6805_v2 = vld [vmem:[%s9407_s3 + $0x620] ss:$16 sps:$4 sm:$0xff]  }
 0x21c   :  { %4959 = vmatpush1.bf16.msra.mxu1 %v6700_v23  ;;  %4864 = vmatprep.subr.bf16.mxu0 %v6723_v4  ;;  %v6759_v23 = vld [vmem:[%s9407_s3 + $0x34c] ss:$16 sps:$4 sm:$0xff]   ;;  %v6813_v4 = vld [vmem:[%s9407_s3 + $0x644] ss:$16 sps:$4 sm:$0xff]  }
 0x21d   :  { %4971 = vmatprep.subr.bf16.mxu1 %v6708_v7  ;;  %v6757_v7 = vld [vmem:[%s9407_s3 + $0x348] ss:$16 sps:$4 sm:$0xff]  }
 0x21f   :  { %4961 = vmatmul.mubr.bf16.vlgmr.msra.gmra.mrb[12].mxu1 %v8259_v3  ;;  %4865 = vmatpush1.bf16.msra.mxu0 %v6721_v8  ;;  %v6720_v3 = vld [vmem:[%s9407_s3 + $0x24c] ss:$16 sps:$4 sm:$0xff]   ;;  %v6811_v8 = vld [vmem:[%s9407_s3 + $0x640] ss:$16 sps:$4 sm:$0xff]  }
 0x220   :  { %4972 = vmatpush1.bf16.msra.mxu1 %v6706_v14  ;;  %5003 = vmatprep.mubr.bf16.mxu1 %v8616_v20  ;;  %v6724_v20 = vld [vmem:[%s9407_s3 + $0x268] ss:$16 sps:$4 sm:$0xff]   ;;  %v6762_v14 = vld [vmem:[%s9407_s3 + $0x36c] ss:$16 sps:$4 sm:$0xff]  }
 0x221   :  { %4973 = vmatprep.subr.bf16.mxu1 %v6714_v1  ;;  %4866 = vmatprep.subr.bf16.mxu0 %v6729_v9  ;;  %v6819_v1 = vld [vmem:[%s9407_s3 + $0x664] ss:$16 sps:$4 sm:$0xff]   ;;  %v6760_v9 = vld [vmem:[%s9407_s3 + $0x368] ss:$16 sps:$4 sm:$0xff]  }
 0x223   :  { %4867 = vmatpush1.bf16.msra.mxu0 %v6727_v11  ;;  %v6817_v11 = vld [vmem:[%s9407_s3 + $0x660] ss:$16 sps:$4 sm:$0xff]  }
 0x224   :  { %4974 = vmatpush1.bf16.msra.mxu1 %v6712_v28  ;;  %4868 = vmatprep.subr.bf16.mxu0 %v6735_v34  ;;  %v6765_v28 = vld [vmem:[%s9407_s3 + $0x38c] ss:$16 sps:$4 sm:$0xff]   ;;  %v6825_v34 = vld [vmem:[%s9407_s3 + $0x684] ss:$16 sps:$4 sm:$0xff]  }
 0x225   :  { %4975 = vmatprep.subr.bf16.mxu1 %v6720_v3  ;;  %v6763_v3 = vld [vmem:[%s9407_s3 + $0x388] ss:$16 sps:$4 sm:$0xff]  }
 0x227   :  { %4869 = vmatpush1.bf16.msra.mxu0 %v6733_v12  ;;  %v6823_v12 = vld [vmem:[%s9407_s3 + $0x680] ss:$16 sps:$4 sm:$0xff]  }
 0x228   :  { %4976 = vmatpush1.bf16.msra.mxu1 %v6718_v13  ;;  %4870 = vmatprep.subr.bf16.mxu0 %v6741_v16  ;;  %v6768_v13 = vld [vmem:[%s9407_s3 + $0x3ac] ss:$16 sps:$4 sm:$0xff]   ;;  %v6831_v16 = vld [vmem:[%s9407_s3 + $0x6a4] ss:$16 sps:$4 sm:$0xff]  }
 0x229   :  { %4977 = vmatprep.subr.bf16.mxu1 %v6726_v18  ;;  %v6766_v18 = vld [vmem:[%s9407_s3 + $0x3a8] ss:$16 sps:$4 sm:$0xff]  }
 0x22b   :  { %4871 = vmatpush1.bf16.msra.mxu0 %v6739_v19  ;;  %v6829_v19 = vld [vmem:[%s9407_s3 + $0x6a0] ss:$16 sps:$4 sm:$0xff]  }
 0x22c   :  { %4978 = vmatpush1.bf16.msra.mxu1 %v6724_v20  ;;  %4872 = vmatprep.subr.bf16.mxu0 %v6747_v21  ;;  %v6771_v20 = vld [vmem:[%s9407_s3 + $0x3cc] ss:$16 sps:$4 sm:$0xff]   ;;  %v6837_v21 = vld [vmem:[%s9407_s3 + $0x6c4] ss:$16 sps:$4 sm:$0xff]  }
 0x22d   :  { %4979 = vmatprep.subr.bf16.mxu1 %v6732_v22  ;;  %v6769_v22 = vld [vmem:[%s9407_s3 + $0x3c8] ss:$16 sps:$4 sm:$0xff]  }
 0x22f   :  { %4873 = vmatpush1.bf16.msra.mxu0 %v6745_v24  ;;  %v6835_v24 = vld [vmem:[%s9407_s3 + $0x6c0] ss:$16 sps:$4 sm:$0xff]  }
 0x230   :  { %4980 = vmatpush1.bf16.msra.mxu1 %v6730_v25  ;;  %4885 = vmatprep.subr.bf16.mxu0 %v6801_v27  ;;  %v6774_v25 = vld [vmem:[%s9407_s3 + $0x3ec] ss:$16 sps:$4 sm:$0xff]   ;;  %v6772_v27 = vld [vmem:[%s9407_s3 + $0x3e8] ss:$16 sps:$4 sm:$0xff]  }
 0x231   :  { %4981 = vmatprep.subr.bf16.mxu1 %v6738_v29  ;;  %v6841_v29 = vld [vmem:[%s9407_s3 + $0x6e0] ss:$16 sps:$4 sm:$0xff]  }
 0x233   :  { %v2961_v37 = vpop.f32.mrb[4].mxu0 }
 0x234   :  { %v6440_v52 = vadd.f32 %v2961_v37, %v469_v32  ;;  %v2963_v38 = vpop.f32.mrb[5].mxu0  ;;  %4982 = vmatpush1.bf16.msra.mxu1 %v6736_v33  ;;  %v6775_v33 = vld [vmem:[%s9407_s3 + $0x408] ss:$16 sps:$4 sm:$0xff]   ;;  %v6855_v37 = vld [vmem:[%s9407_s3 + $0x724] ss:$16 sps:$4 sm:$0xff]  }
 0x235   :  { %v6441_v40 = vadd.f32 %v2963_v38, %v473_v35  ;;  %v2965_v41 = vpop.f32.mrb[6].mxu0  ;;  %4983 = vmatprep.subr.bf16.mxu1 %v6744_v36  ;;  %v6847_v36 = vld [vmem:[%s9407_s3 + $0x700] ss:$16 sps:$4 sm:$0xff]   ;;  %v6783_v38 = vld [vmem:[%s9407_s3 + $0x44c] ss:$16 sps:$4 sm:$0xff]  }
 0x236   :  { %v3162_v55 = vmul.f32 0.2, %v6440_v52  ;;  %v6442_v45 = vadd.f32 %v2965_v41, %v469_v32  ;;  %v2967_v56 = vpop.f32.mrb[7].mxu0  ;;  %vm3146_vm9 = vcmp.gt.f32.partialorder %v6440_v52, 0.0  ;;  %v6849_v32 = vld [vmem:[%s9407_s3 + $0x704] ss:$16 sps:$4 sm:$0xff]  }
 0x237   :  { %v3163_v46 = vmul.f32 0.2, %v6441_v40  ;;  %v6443_v47 = vadd.f32 %v2967_v56, %v473_v35  ;;  %vm3147_vm10 = vcmp.gt.f32.partialorder %v6441_v40, 0.0  ;;  %v6780_v35 = vld [vmem:[%s9407_s3 + $0x42c] ss:$16 sps:$4 sm:$0xff]  }
 0x238   :  { %vm3154_vm11 = vcmp.gt.f32.partialorder %v6442_v45, 0.0  ;;  %v3170_v58 = vmul.f32 0.2, %v6442_v45  ;;  %4984 = vmatpush1.bf16.msra.mxu1 %v6742_v39  ;;  %v3178_v49 = vsel %vm3146_vm9, %v6440_v52, %v3162_v55  ;;  %v6778_v52 = vld [vmem:[%s9407_s3 + $0x428] ss:$16 sps:$4 sm:$0xff]  }
 0x239   :  { %vm3155_vm12 = vcmp.gt.f32.partialorder %v6443_v47, 0.0  ;;  %v3171_v42 = vmul.f32 0.2, %v6443_v47  ;;  %4985 = vmatprep.subr.bf16.mxu1 %v6750_v43  ;;  %v3179_v0 = vsel %vm3147_vm10, %v6441_v40, %v3163_v46  ;;  %v6853_v39 = vld [vmem:[%s9407_s3 + $0x720] ss:$16 sps:$4 sm:$0xff]  }
 0x23a   :  { %v3186_v51 = vsel %vm3154_vm11, %v6442_v45, %v3170_v58  ;;  %v6781_v40 = vld [vmem:[%s9407_s3 + $0x448] ss:$16 sps:$4 sm:$0xff]   ;;  %v6786_v41 = vld [vmem:[%s9407_s3 + $0x46c] ss:$16 sps:$4 sm:$0xff]   ;;  %v6859_v43 = vld [vmem:[%s9407_s3 + $0x740] ss:$16 sps:$4 sm:$0xff]  }
 0x23b   :  { %v8841_v59 = vpack.c.bf16 %v3186_v51, %v3178_v49  ;;  %v3187_v6 = vsel %vm3155_vm12, %v6443_v47, %v3171_v42  ;;  %v6867_v55 = vld [vmem:[%s9407_s3 + $0x764] ss:$16 sps:$4 sm:$0xff]   ;;  %v6784_v45 = vld [vmem:[%s9407_s3 + $0x468] ss:$16 sps:$4 sm:$0xff]   ;;  %v6789_v56 = vld [vmem:[%s9407_s3 + $0x48c] ss:$16 sps:$4 sm:$0xff]  }
 0x23c   :  { %4986 = vmatpush1.bf16.msra.mxu1 %v6748_v48  ;;  %v8843_v54 = vpack.c.bf16 %v3187_v6, %v3179_v0  ;;  %v6865_v46 = vld [vmem:[%s9407_s3 + $0x760] ss:$16 sps:$4 sm:$0xff]   ;;  %v6873_v47 = vld [vmem:[%s9407_s3 + $0x784] ss:$16 sps:$4 sm:$0xff]   ;;  %v6787_v58 = vld [vmem:[%s9407_s3 + $0x488] ss:$16 sps:$4 sm:$0xff]  }
 0x23d   :  { %4987 = vmatprep.subr.bf16.mxu1 %v6753_v44  ;;  %v6792_v48 = vld [vmem:[%s9407_s3 + $0x4ac] ss:$16 sps:$4 sm:$0xff]   ;;  %v6871_v42 = vld [vmem:[%s9407_s3 + $0x780] ss:$16 sps:$4 sm:$0xff]   ;;  %v6879_v44 = vld [vmem:[%s9407_s3 + $0x7a4] ss:$16 sps:$4 sm:$0xff]  }
 0x23e   :  { %4874 = vmatprep.mubr.bf16.mxu0 %v8843_v54  ;;  %v6790_v49 = vld [vmem:[%s9407_s3 + $0x4a8] ss:$16 sps:$4 sm:$0xff]   ;;  %v6795_v51 = vld [vmem:[%s9407_s3 + $0x4cc] ss:$16 sps:$4 sm:$0xff]   ;;  %v6877_v0 = vld [vmem:[%s9407_s3 + $0x7a0] ss:$16 sps:$4 sm:$0xff]  }
 0x23f   :  { %4875 = vmatmul.mubr.bf16.vlgmr.msra.gmra.mrb[8].mxu0 %v8841_v59  ;;  %v6793_v6 = vld [vmem:[%s9407_s3 + $0x4c8] ss:$16 sps:$4 sm:$0xff]  }
 0x240   :  { %4988 = vmatpush1.bf16.msra.mxu1 %v6751_v57  ;;  %4886 = vmatpush1.bf16.msra.mxu0 %v6799_v60  ;;  %v6798_v57 = vld [vmem:[%s9407_s3 + $0x4ec] ss:$16 sps:$4 sm:$0xff]   ;;  %v6883_v60 = vld [vmem:[%s9407_s3 + $0x7c0] ss:$16 sps:$4 sm:$0xff]  }
 0x241   :  { %4989 = vmatprep.subr.bf16.mxu1 %v6756_v61  ;;  %4887 = vmatprep.subr.bf16.mxu0 %v6807_v62  ;;  %v6891_v61 = vld [vmem:[%s9407_s3 + $0x7e4] ss:$16 sps:$4 sm:$0xff]   ;;  %v6796_v62 = vld [vmem:[%s9407_s3 + $0x4e8] ss:$16 sps:$4 sm:$0xff]  }
 0x244   :  { %4990 = vmatpush1.bf16.msra.mxu1 %v6754_v63  ;;  %4888 = vmatpush1.bf16.msra.mxu0 %v6805_v2  ;;  %v6804_v63 = vld [vmem:[%s9407_s3 + $0x50c] ss:$16 sps:$4 sm:$0xff]   ;;  %v6889_v2 = vld [vmem:[%s9407_s3 + $0x7e0] ss:$16 sps:$4 sm:$0xff]  }
 0x245   :  { %4991 = vmatprep.subr.bf16.mxu1 %v6759_v23  ;;  %4889 = vmatprep.subr.bf16.mxu0 %v6813_v4  ;;  %v6921_v23 = vld [vmem:[%s9409_s5 + $0x4] ss:$8 sps:$4 sm:$0xff]   ;;  %v6802_v4 = vld [vmem:[%s9407_s3 + $0x508] ss:$16 sps:$4 sm:$0xff]  }
 0x248   :  { %4992 = vmatpush1.bf16.msra.mxu1 %v6757_v7  ;;  %4890 = vmatpush1.bf16.msra.mxu0 %v6811_v8  ;;  %v6810_v7 = vld [vmem:[%s9407_s3 + $0x52c] ss:$16 sps:$4 sm:$0xff]   ;;  %v6808_v8 = vld [vmem:[%s9407_s3 + $0x528] ss:$16 sps:$4 sm:$0xff]  }
 0x249   :  { %4993 = vmatprep.subr.bf16.mxu1 %v6762_v14  ;;  %4891 = vmatprep.subr.bf16.mxu0 %v6819_v1  ;;  %v6816_v14 = vld [vmem:[%s9407_s3 + $0x54c] ss:$16 sps:$4 sm:$0xff]   ;;  %v6814_v1 = vld [vmem:[%s9407_s3 + $0x548] ss:$16 sps:$4 sm:$0xff]  }
 0x24c   :  { %4994 = vmatpush1.bf16.msra.mxu1 %v6760_v9  ;;  %4892 = vmatpush1.bf16.msra.mxu0 %v6817_v11  ;;  %v6822_v9 = vld [vmem:[%s9407_s3 + $0x56c] ss:$16 sps:$4 sm:$0xff]   ;;  %v6820_v11 = vld [vmem:[%s9407_s3 + $0x568] ss:$16 sps:$4 sm:$0xff]  }
 0x24d   :  { %4995 = vmatprep.subr.bf16.mxu1 %v6765_v28  ;;  %4893 = vmatprep.subr.bf16.mxu0 %v6825_v34  ;;  %v6828_v28 = vld [vmem:[%s9407_s3 + $0x58c] ss:$16 sps:$4 sm:$0xff]   ;;  %v6826_v34 = vld [vmem:[%s9407_s3 + $0x588] ss:$16 sps:$4 sm:$0xff]  }
 0x250   :  { %4996 = vmatpush1.bf16.msra.mxu1 %v6763_v3  ;;  %4894 = vmatpush1.bf16.msra.mxu0 %v6823_v12  ;;  %v6834_v3 = vld [vmem:[%s9407_s3 + $0x5ac] ss:$16 sps:$4 sm:$0xff]   ;;  %v6832_v12 = vld [vmem:[%s9407_s3 + $0x5a8] ss:$16 sps:$4 sm:$0xff]  }
 0x251   :  { %4997 = vmatprep.subr.bf16.mxu1 %v6768_v13  ;;  %4895 = vmatprep.subr.bf16.mxu0 %v6831_v16  ;;  %v6840_v13 = vld [vmem:[%s9407_s3 + $0x5cc] ss:$16 sps:$4 sm:$0xff]   ;;  %v6838_v16 = vld [vmem:[%s9407_s3 + $0x5c8] ss:$16 sps:$4 sm:$0xff]  }
 0x254   :  { %4998 = vmatpush1.bf16.msra.mxu1 %v6766_v18  ;;  %4896 = vmatpush1.bf16.msra.mxu0 %v6829_v19  ;;  %v6846_v18 = vld [vmem:[%s9407_s3 + $0x5ec] ss:$16 sps:$4 sm:$0xff]   ;;  %v6844_v19 = vld [vmem:[%s9407_s3 + $0x5e8] ss:$16 sps:$4 sm:$0xff]  }
 0x255   :  { %4999 = vmatprep.subr.bf16.mxu1 %v6771_v20  ;;  %4897 = vmatprep.subr.bf16.mxu0 %v6837_v21  ;;  %v6852_v20 = vld [vmem:[%s9407_s3 + $0x60c] ss:$16 sps:$4 sm:$0xff]   ;;  %v6850_v21 = vld [vmem:[%s9407_s3 + $0x608] ss:$16 sps:$4 sm:$0xff]  }
 0x258   :  { %5000 = vmatpush1.bf16.msra.mxu1 %v6769_v22  ;;  %4898 = vmatpush1.bf16.msra.mxu0 %v6835_v24  ;;  %v6858_v22 = vld [vmem:[%s9407_s3 + $0x62c] ss:$16 sps:$4 sm:$0xff]   ;;  %v6856_v24 = vld [vmem:[%s9407_s3 + $0x628] ss:$16 sps:$4 sm:$0xff]  }
 0x259   :  { %5001 = vmatprep.subr.bf16.mxu1 %v6774_v25  ;;  %4899 = vmatprep.subr.bf16.mxu0 %v6843_v26  ;;  %v6864_v25 = vld [vmem:[%s9407_s3 + $0x64c] ss:$16 sps:$4 sm:$0xff]   ;;  %v6862_v26 = vld [vmem:[%s9407_s3 + $0x648] ss:$16 sps:$4 sm:$0xff]  }
 0x25c   :  { %5002 = vmatpush1.bf16.msra.mxu1 %v6772_v27  ;;  %4900 = vmatpush1.bf16.msra.mxu0 %v6841_v29  ;;  %v6868_v27 = vld [vmem:[%s9407_s3 + $0x668] ss:$16 sps:$4 sm:$0xff]   ;;  %v6876_v29 = vld [vmem:[%s9407_s3 + $0x68c] ss:$16 sps:$4 sm:$0xff]  }
 0x25d   :  { %5014 = vmatprep.subr.bf16.mxu1 %v6777_v30  ;;  %4901 = vmatprep.subr.bf16.mxu0 %v6849_v32  ;;  %v476_v30 = vsub.s32 6, %v8170_v5  ;;  %v6874_v32 = vld [vmem:[%s9407_s3 + $0x688] ss:$16 sps:$4 sm:$0xff]  }
 0x25f   :  { %5004 = vmatmul.mubr.bf16.vlgmr.msra.gmra.mrb[12].mxu1 %v8614_v17  ;;  %v6861_v17 = vld [vmem:[%s9407_s3 + $0x744] ss:$16 sps:$4 sm:$0xff]  }
 0x260   :  { %5015 = vmatpush1.bf16.msra.mxu1 %v6775_v33  ;;  %5046 = vmatprep.mubr.bf16.mxu1 %v8843_v54  ;;  %v6885_v54 = vld [vmem:[%s9407_s3 + $0x7c4] ss:$16 sps:$4 sm:$0xff]   ;;  %v480_v33 = vsub.s32 7, %v8170_v5 }
 0x261   :  { %5016 = vmatprep.subr.bf16.mxu1 %v6780_v35  ;;  %4902 = vmatpush1.bf16.msra.mxu0 %v6847_v36  ;;  %v6882_v35 = vld [vmem:[%s9407_s3 + $0x6ac] ss:$16 sps:$4 sm:$0xff]   ;;  %v477_v36 = vrot.slane %v8819_v31, %v476_v30  ;;  %v6916_v30 = vld [vmem:[%s9407_s3 + $0x7e8] ss:$16 sps:$4 sm:$0xff]  }
 0x262   :  { %4903 = vmatprep.subr.bf16.mxu0 %v6855_v37  ;;  %v6880_v37 = vld [vmem:[%s9407_s3 + $0x6a8] ss:$16 sps:$4 sm:$0xff]  }
 0x264   :  { %5017 = vmatpush1.bf16.msra.mxu1 %v6778_v52  ;;  %v481_v52 = vrot.slane %v8819_v31, %v480_v33  ;;  %v6894_v31 = vld [vmem:[%s9407_s3 + $0x6ec] ss:$16 sps:$4 sm:$0xff]   ;;  %v6943_v33 = vld [vmem:[%s9409_s5 + $0x80] ss:$8 sps:$4 sm:$0xff]  }
 0x265   :  { %5018 = vmatprep.subr.bf16.mxu1 %v6783_v38  ;;  %4904 = vmatpush1.bf16.msra.mxu0 %v6853_v39  ;;  %v6888_v38 = vld [vmem:[%s9407_s3 + $0x6cc] ss:$16 sps:$4 sm:$0xff]  }
 0x266   :  { %4905 = vmatprep.subr.bf16.mxu0 %v6861_v17 }
 0x268   :  { %5019 = vmatpush1.bf16.msra.mxu1 %v6781_v40 }
 0x269   :  { %5020 = vmatprep.subr.bf16.mxu1 %v6786_v41  ;;  %4906 = vmatpush1.bf16.msra.mxu0 %v6859_v43 }
 0x26a   :  { %4907 = vmatprep.subr.bf16.mxu0 %v6867_v55  ;;  %v6886_v55 = vld [vmem:[%s9407_s3 + $0x6c8] ss:$16 sps:$4 sm:$0xff]  }
 0x26c   :  { %5021 = vmatpush1.bf16.msra.mxu1 %v6784_v45 }
 0x26d   :  { %5022 = vmatprep.subr.bf16.mxu1 %v6789_v56  ;;  %4908 = vmatpush1.bf16.msra.mxu0 %v6865_v46 }
 0x26e   :  { %4909 = vmatprep.subr.bf16.mxu0 %v6873_v47 }
 0x270   :  { %5023 = vmatpush1.bf16.msra.mxu1 %v6787_v58 }
 0x271   :  { %5024 = vmatprep.subr.bf16.mxu1 %v6792_v48  ;;  %4910 = vmatpush1.bf16.msra.mxu0 %v6871_v42 }
 0x272   :  { %4911 = vmatprep.subr.bf16.mxu0 %v6879_v44  ;;  %v6892_v44 = vld [vmem:[%s9407_s3 + $0x6e8] ss:$16 sps:$4 sm:$0xff]  }
 0x274   :  { %5025 = vmatpush1.bf16.msra.mxu1 %v6790_v49 }
 0x275   :  { %5026 = vmatprep.subr.bf16.mxu1 %v6795_v51  ;;  %4912 = vmatpush1.bf16.msra.mxu0 %v6877_v0 }
 0x276   :  { %4913 = vmatprep.subr.bf16.mxu0 %v6885_v54 }
 0x278   :  { %5027 = vmatpush1.bf16.msra.mxu1 %v6793_v6 }
 0x279   :  { %5028 = vmatprep.subr.bf16.mxu1 %v6798_v57  ;;  %4914 = vmatpush1.bf16.msra.mxu0 %v6883_v60  ;;  %v6897_v57 = vld [vmem:[%s9407_s3 + $0x70c] ss:$16 sps:$4 sm:$0xff]  }
 0x27a   :  { %4915 = vmatprep.subr.bf16.mxu0 %v6891_v61  ;;  %v6919_v61 = vld [vmem:[%s9409_s5] ss:$8 sps:$4 sm:$0xff]  }
 0x27c   :  { %5029 = vmatpush1.bf16.msra.mxu1 %v6796_v62  ;;  %v6895_v62 = vld [vmem:[%s9407_s3 + $0x708] ss:$16 sps:$4 sm:$0xff]  }
 0x27d   :  { %5030 = vmatprep.subr.bf16.mxu1 %v6804_v63  ;;  %4916 = vmatpush1.bf16.msra.mxu0 %v6889_v2  ;;  %v6924_v63 = vld [vmem:[%s9409_s5 + $0x14] ss:$8 sps:$4 sm:$0xff]  }
 0x27e   :  { %5524 = vmatprep.subr.bf16.mxu0 %v6921_v23  ;;  %v6900_v2 = vld [vmem:[%s9407_s3 + $0x72c] ss:$16 sps:$4 sm:$0xff]   ;;  %v6922_v23 = vld [vmem:[%s9409_s5 + $0x10] ss:$8 sps:$4 sm:$0xff]  }
 0x280   :  { %5031 = vmatpush1.bf16.msra.mxu1 %v6802_v4  ;;  %v6898_v4 = vld [vmem:[%s9407_s3 + $0x728] ss:$16 sps:$4 sm:$0xff]  }
 0x281   :  { %5032 = vmatprep.subr.bf16.mxu1 %v6810_v7  ;;  %v6927_v7 = vld [vmem:[%s9409_s5 + $0x24] ss:$8 sps:$4 sm:$0xff]  }
 0x284   :  { %5033 = vmatpush1.bf16.msra.mxu1 %v6808_v8  ;;  %v6903_v8 = vld [vmem:[%s9407_s3 + $0x74c] ss:$16 sps:$4 sm:$0xff]  }
 0x285   :  { %5034 = vmatprep.subr.bf16.mxu1 %v6816_v14  ;;  %v6925_v14 = vld [vmem:[%s9409_s5 + $0x20] ss:$8 sps:$4 sm:$0xff]  }
 0x288   :  { %5035 = vmatpush1.bf16.msra.mxu1 %v6814_v1  ;;  %v6901_v1 = vld [vmem:[%s9407_s3 + $0x748] ss:$16 sps:$4 sm:$0xff]  }
 0x289   :  { %5036 = vmatprep.subr.bf16.mxu1 %v6822_v9  ;;  %v6930_v9 = vld [vmem:[%s9409_s5 + $0x34] ss:$8 sps:$4 sm:$0xff]  }
 0x28c   :  { %5037 = vmatpush1.bf16.msra.mxu1 %v6820_v11  ;;  %v6906_v11 = vld [vmem:[%s9407_s3 + $0x76c] ss:$16 sps:$4 sm:$0xff]  }
 0x28d   :  { %5038 = vmatprep.subr.bf16.mxu1 %v6828_v28  ;;  %v6928_v28 = vld [vmem:[%s9409_s5 + $0x30] ss:$8 sps:$4 sm:$0xff]  }
 0x290   :  { %5039 = vmatpush1.bf16.msra.mxu1 %v6826_v34  ;;  %v6904_v34 = vld [vmem:[%s9407_s3 + $0x768] ss:$16 sps:$4 sm:$0xff]  }
 0x291   :  { %5040 = vmatprep.subr.bf16.mxu1 %v6834_v3  ;;  %v6933_v3 = vld [vmem:[%s9409_s5 + $0x44] ss:$8 sps:$4 sm:$0xff]  }
 0x294   :  { %5041 = vmatpush1.bf16.msra.mxu1 %v6832_v12  ;;  %v6909_v12 = vld [vmem:[%s9407_s3 + $0x78c] ss:$16 sps:$4 sm:$0xff]  }
 0x295   :  { %5042 = vmatprep.subr.bf16.mxu1 %v6840_v13  ;;  %v6931_v13 = vld [vmem:[%s9409_s5 + $0x40] ss:$8 sps:$4 sm:$0xff]  }
 0x298   :  { %5043 = vmatpush1.bf16.msra.mxu1 %v6838_v16  ;;  %v6907_v16 = vld [vmem:[%s9407_s3 + $0x788] ss:$16 sps:$4 sm:$0xff]  }
 0x299   :  { %5044 = vmatprep.subr.bf16.mxu1 %v6846_v18  ;;  %v6936_v18 = vld [vmem:[%s9409_s5 + $0x54] ss:$8 sps:$4 sm:$0xff]  }
 0x29c   :  { %5045 = vmatpush1.bf16.msra.mxu1 %v6844_v19  ;;  %v6912_v19 = vld [vmem:[%s9407_s3 + $0x7ac] ss:$16 sps:$4 sm:$0xff]  }
 0x29d   :  { %5057 = vmatprep.subr.bf16.mxu1 %v6852_v20  ;;  %v6934_v20 = vld [vmem:[%s9409_s5 + $0x50] ss:$8 sps:$4 sm:$0xff]  }
 0x29f   :  { %5047 = vmatmul.mubr.bf16.vlgmr.msra.gmra.mrb[12].mxu1 %v8841_v59  ;;  %v6870_v59 = vld [vmem:[%s9407_s3 + $0x66c] ss:$16 sps:$4 sm:$0xff]  }
 0x2a0   :  { %5058 = vmatpush1.bf16.msra.mxu1 %v6850_v21  ;;  %v6910_v21 = vld [vmem:[%s9407_s3 + $0x7a8] ss:$16 sps:$4 sm:$0xff]  }
 0x2a1   :  { %5059 = vmatprep.subr.bf16.mxu1 %v6858_v22  ;;  %v6939_v22 = vld [vmem:[%s9409_s5 + $0x64] ss:$8 sps:$4 sm:$0xff]  }
 0x2a4   :  { %5060 = vmatpush1.bf16.msra.mxu1 %v6856_v24  ;;  %v6915_v24 = vld [vmem:[%s9407_s3 + $0x7cc] ss:$16 sps:$4 sm:$0xff]  }
 0x2a5   :  { %5061 = vmatprep.subr.bf16.mxu1 %v6864_v25  ;;  %v6937_v25 = vld [vmem:[%s9409_s5 + $0x60] ss:$8 sps:$4 sm:$0xff]  }
 0x2a8   :  { %5062 = vmatpush1.bf16.msra.mxu1 %v6862_v26  ;;  %v6913_v26 = vld [vmem:[%s9407_s3 + $0x7c8] ss:$16 sps:$4 sm:$0xff]  }
 0x2a9   :  { %5063 = vmatprep.subr.bf16.mxu1 %v6870_v59  ;;  %v6942_v59 = vld [vmem:[%s9409_s5 + $0x74] ss:$8 sps:$4 sm:$0xff]  }
 0x2ac   :  { %5064 = vmatpush1.bf16.msra.mxu1 %v6868_v27  ;;  %v6918_v27 = vld [vmem:[%s9407_s3 + $0x7ec] ss:$16 sps:$4 sm:$0xff]  }
 0x2ad   :  { %5065 = vmatprep.subr.bf16.mxu1 %v6876_v29  ;;  %v6940_v29 = vld [vmem:[%s9409_s5 + $0x70] ss:$8 sps:$4 sm:$0xff]  }
 0x2b0   :  { %5066 = vmatpush1.bf16.msra.mxu1 %v6874_v32  ;;  %v6945_v32 = vld [vmem:[%s9409_s5 + $0x84] ss:$8 sps:$4 sm:$0xff]  }
 0x2b1   :  { %5067 = vmatprep.subr.bf16.mxu1 %v6882_v35  ;;  %v6948_v35 = vld [vmem:[%s9409_s5 + $0x94] ss:$8 sps:$4 sm:$0xff]  }
 0x2b2   :  { %v3133_v39 = vpop.f32.mrb[8].mxu1 }
 0x2b3   :  { %v6444_v17 = vadd.f32 %v3133_v39, %v477_v36  ;;  %v3135_v40 = vpop.f32.mrb[9].mxu1  ;;  %v6952_v39 = vld [vmem:[%s9409_s5 + $0xb0] ss:$8 sps:$4 sm:$0xff]  }
 0x2b4   :  { %v6445_v41 = vadd.f32 %v3135_v40, %v481_v52  ;;  %5068 = vmatpush1.bf16.msra.mxu1 %v6880_v37  ;;  %v3137_v43 = vpop.f32.mrb[10].mxu1  ;;  %v6951_v37 = vld [vmem:[%s9409_s5 + $0xa4] ss:$8 sps:$4 sm:$0xff]   ;;  %v6955_v40 = vld [vmem:[%s9409_s5 + $0xc0] ss:$8 sps:$4 sm:$0xff]  }
 0x2b5   :  { %v3164_v45 = vmul.f32 0.2, %v6444_v17  ;;  %v6446_v56 = vadd.f32 %v3137_v43, %v477_v36  ;;  %v3139_v46 = vpop.f32.mrb[11].mxu1  ;;  %5069 = vmatprep.subr.bf16.mxu1 %v6888_v38  ;;  %vm3148_vm13 = vcmp.gt.f32.partialorder %v6444_v17, 0.0  ;;  %v6946_v36 = vld [vmem:[%s9409_s5 + $0x90] ss:$8 sps:$4 sm:$0xff]  }
 0x2b6   :  { %v3165_v47 = vmul.f32 0.2, %v6445_v41  ;;  %v6447_v58 = vadd.f32 %v3139_v46, %v481_v52  ;;  %vm3149_vm14 = vcmp.gt.f32.partialorder %v6445_v41, 0.0  ;;  %v6949_v52 = vld [vmem:[%s9409_s5 + $0xa0] ss:$8 sps:$4 sm:$0xff]  }
 0x2b7   :  { %vm3156_vm15 = vcmp.gt.f32.partialorder %v6446_v56, 0.0  ;;  %v3172_v48 = vmul.f32 0.2, %v6446_v56  ;;  %v3180_v49 = vsel %vm3148_vm13, %v6444_v17, %v3164_v45  ;;  %v6954_v38 = vld [vmem:[%s9409_s5 + $0xb4] ss:$8 sps:$4 sm:$0xff]   ;;  %vm5705_vm13 = vcmask 122880  }
 0x2b8   :  { %vm3157_vm0 = vcmp.gt.f32.partialorder %v6447_v58, 0.0  ;;  %v3173_v42 = vmul.f32 0.2, %v6447_v58  ;;  %5070 = vmatpush1.bf16.msra.mxu1 %v6886_v55  ;;  %v3181_v6 = vsel %vm3149_vm14, %v6445_v41, %v3165_v47  ;;  %v6957_v17 = vld [vmem:[%s9409_s5 + $0xc4] ss:$8 sps:$4 sm:$0xff]  }
 0x2b9   :  { %v3188_v51 = vsel %vm3156_vm15, %v6446_v56, %v3172_v48  ;;  %5071 = vmatprep.subr.bf16.mxu1 %v6894_v31  ;;  %v6960_v41 = vld [vmem:[%s9409_s5 + $0xd4] ss:$8 sps:$4 sm:$0xff]   ;;  %v6958_v43 = vld [vmem:[%s9409_s5 + $0xd0] ss:$8 sps:$4 sm:$0xff]   ;;  %v6963_v55 = vld [vmem:[%s9409_s5 + $0xe4] ss:$8 sps:$4 sm:$0xff]  }
 0x2ba   :  { %v9139_v0 = vpack.c.bf16 %v3188_v51, %v3180_v49  ;;  %v3189_v54 = vsel %vm3157_vm0, %v6447_v58, %v3173_v42  ;;  %v6961_v45 = vld [vmem:[%s9409_s5 + $0xe0] ss:$8 sps:$4 sm:$0xff]   ;;  %v6966_v56 = vld [vmem:[%s9409_s5 + $0xf4] ss:$8 sps:$4 sm:$0xff]   ;;  %v6964_v46 = vld [vmem:[%s9409_s5 + $0xf0] ss:$8 sps:$4 sm:$0xff]  }
 0x2bb   :  { %v3197_v60 = vpack.c.bf16 %v3189_v54, %v3181_v6  ;;  %v6969_v31 = vld [vmem:[%s9409_s5 + $0x104] ss:$8 sps:$4 sm:$0xff]   ;;  %v3454_v47 = vld [vmem:[%s9410_s4] sm:$0xf] }
 0x2bc   :  { %5072 = vmatpush1.bf16.msra.mxu1 %v6892_v44  ;;  %v3459_v58 = vrot.slane %v3454_v47, %v8182_v10  ;;  %v3463_v48 = vrot.slane %v3454_v47, %v8199_v15 }
 0x2bd   :  { %4917 = vmatprep.mubr.bf16.mxu0 %v3197_v60  ;;  %5089 = vmatprep.mubr.bf16.mxu1 %v3197_v60 }
 0x2be   :  { %4918 = vmatmul.mubr.bf16.vlgmr.msra.gmra.mrb[8].mxu0 %v9139_v0  ;;  %5073 = vmatprep.subr.bf16.mxu1 %v6897_v57 }
 0x2bf   :  { %5525 = vmatpush1.bf16.msra.mxu0 %v6919_v61 }
 0x2c0   :  { %5074 = vmatpush1.bf16.msra.mxu1 %v6895_v62  ;;  %5526 = vmatprep.subr.bf16.mxu0 %v6924_v63 }
 0x2c1   :  { %5075 = vmatprep.subr.bf16.mxu1 %v6900_v2 }
 0x2c3   :  { %5527 = vmatpush1.bf16.msra.mxu0 %v6922_v23 }
 0x2c4   :  { %5076 = vmatpush1.bf16.msra.mxu1 %v6898_v4  ;;  %5528 = vmatprep.subr.bf16.mxu0 %v6927_v7 }
 0x2c5   :  { %5077 = vmatprep.subr.bf16.mxu1 %v6903_v8 }
 0x2c7   :  { %5529 = vmatpush1.bf16.msra.mxu0 %v6925_v14 }
 0x2c8   :  { %5078 = vmatpush1.bf16.msra.mxu1 %v6901_v1  ;;  %5530 = vmatprep.subr.bf16.mxu0 %v6930_v9  ;;  %v6967_v1 = vld [vmem:[%s9409_s5 + $0x100] ss:$8 sps:$4 sm:$0xff]   ;;  %v6972_v9 = vld [vmem:[%s9409_s5 + $0x114] ss:$8 sps:$4 sm:$0xff]  }
 0x2c9   :  { %5079 = vmatprep.subr.bf16.mxu1 %v6906_v11  ;;  %v6970_v11 = vld [vmem:[%s9409_s5 + $0x110] ss:$8 sps:$4 sm:$0xff]  }
 0x2cb   :  { %5531 = vmatpush1.bf16.msra.mxu0 %v6928_v28  ;;  %v6975_v28 = vld [vmem:[%s9409_s5 + $0x124] ss:$8 sps:$4 sm:$0xff]  }
 0x2cc   :  { %5080 = vmatpush1.bf16.msra.mxu1 %v6904_v34  ;;  %5532 = vmatprep.subr.bf16.mxu0 %v6933_v3  ;;  %v6973_v34 = vld [vmem:[%s9409_s5 + $0x120] ss:$8 sps:$4 sm:$0xff]   ;;  %v6978_v3 = vld [vmem:[%s9409_s5 + $0x134] ss:$8 sps:$4 sm:$0xff]  }
 0x2cd   :  { %5081 = vmatprep.subr.bf16.mxu1 %v6909_v12  ;;  %v6976_v12 = vld [vmem:[%s9409_s5 + $0x130] ss:$8 sps:$4 sm:$0xff]  }
 0x2cf   :  { %5533 = vmatpush1.bf16.msra.mxu0 %v6931_v13  ;;  %v6981_v13 = vld [vmem:[%s9409_s5 + $0x144] ss:$8 sps:$4 sm:$0xff]  }
 0x2d0   :  { %5082 = vmatpush1.bf16.msra.mxu1 %v6907_v16  ;;  %5534 = vmatprep.subr.bf16.mxu0 %v6936_v18  ;;  %v6979_v16 = vld [vmem:[%s9409_s5 + $0x140] ss:$8 sps:$4 sm:$0xff]   ;;  %v6984_v18 = vld [vmem:[%s9409_s5 + $0x154] ss:$8 sps:$4 sm:$0xff]  }
 0x2d1   :  { %5083 = vmatprep.subr.bf16.mxu1 %v6912_v19  ;;  %v6982_v19 = vld [vmem:[%s9409_s5 + $0x150] ss:$8 sps:$4 sm:$0xff]  }
 0x2d3   :  { %5535 = vmatpush1.bf16.msra.mxu0 %v6934_v20  ;;  %v3467_v20 = vrot.slane %v3454_v47, %v460_v50  ;;  %v6990_v50 = vld [vmem:[%s9409_s5 + $0x174] ss:$8 sps:$4 sm:$0xff]  }
 0x2d4   :  { %5084 = vmatpush1.bf16.msra.mxu1 %v6910_v21  ;;  %5536 = vmatprep.subr.bf16.mxu0 %v6939_v22  ;;  %v6987_v21 = vld [vmem:[%s9409_s5 + $0x164] ss:$8 sps:$4 sm:$0xff]   ;;  %v3471_v22 = vrot.slane %v3454_v47, %v464_v53  ;;  %v6997_v47 = vld [vmem:[%s9409_s5 + $0x1a0] ss:$8 sps:$4 sm:$0xff]  }
 0x2d5   :  { %5085 = vmatprep.subr.bf16.mxu1 %v6915_v24 }
 0x2d7   :  { %5537 = vmatpush1.bf16.msra.mxu0 %v6937_v25  ;;  %v6985_v25 = vld [vmem:[%s9409_s5 + $0x160] ss:$8 sps:$4 sm:$0xff]  }
 0x2d8   :  { %5086 = vmatpush1.bf16.msra.mxu1 %v6913_v26  ;;  %5538 = vmatprep.subr.bf16.mxu0 %v6942_v59 }
 0x2d9   :  { %5087 = vmatprep.subr.bf16.mxu1 %v6918_v27 }
 0x2db   :  { %5539 = vmatpush1.bf16.msra.mxu0 %v6940_v29 }
 0x2dc   :  { %5088 = vmatpush1.bf16.msra.mxu1 %v6916_v30  ;;  %5540 = vmatprep.subr.bf16.mxu0 %v6945_v32 }
 0x2df   :  { %5090 = vmatmul.mubr.bf16.vlgmr.msra.gmra.mrb[12].mxu1 %v9139_v0  ;;  %5541 = vmatpush1.bf16.msra.mxu0 %v6943_v33 }
 0x2e0   :  { %5542 = vmatprep.subr.bf16.mxu0 %v6948_v35 }
 0x2e3   :  { %5543 = vmatpush1.bf16.msra.mxu0 %v6946_v36  ;;  %v6988_v36 = vld [vmem:[%s9409_s5 + $0x170] ss:$8 sps:$4 sm:$0xff]  }
 0x2e4   :  { %5544 = vmatprep.subr.bf16.mxu0 %v6951_v37 }
 0x2e7   :  { %5545 = vmatpush1.bf16.msra.mxu0 %v6949_v52  ;;  %v6993_v52 = vld [vmem:[%s9409_s5 + $0x184] ss:$8 sps:$4 sm:$0xff]  }
 0x2e8   :  { %5546 = vmatprep.subr.bf16.mxu0 %v6954_v38 }
 0x2eb   :  { %5547 = vmatpush1.bf16.msra.mxu0 %v6952_v39 }
 0x2ec   :  { %5548 = vmatprep.subr.bf16.mxu0 %v6957_v17 }
 0x2ef   :  { %5549 = vmatpush1.bf16.msra.mxu0 %v6955_v40 }
 0x2f0   :  { %5550 = vmatprep.subr.bf16.mxu0 %v6960_v41  ;;  %v6991_v41 = vld [vmem:[%s9409_s5 + $0x180] ss:$8 sps:$4 sm:$0xff]  }
 0x2f3   :  { %5551 = vmatpush1.bf16.msra.mxu0 %v6958_v43 }
 0x2f4   :  { %5552 = vmatprep.subr.bf16.mxu0 %v6963_v55 }
 0x2f7   :  { %5553 = vmatpush1.bf16.msra.mxu0 %v6961_v45 }
 0x2f8   :  { %5554 = vmatprep.subr.bf16.mxu0 %v6966_v56  ;;  %v6996_v56 = vld [vmem:[%s9409_s5 + $0x194] ss:$8 sps:$4 sm:$0xff]  }
 0x2fb   :  { %5555 = vmatpush1.bf16.msra.mxu0 %v6964_v46  ;;  %v6994_v46 = vld [vmem:[%s9409_s5 + $0x190] ss:$8 sps:$4 sm:$0xff]  }
 0x2fc   :  { %5567 = vmatprep.subr.bf16.mxu0 %v6969_v31  ;;  %v6999_v31 = vld [vmem:[%s9409_s5 + $0x1a4] ss:$8 sps:$4 sm:$0xff]  }
 0x391   :  { %v4919_v42 = vpop.f32.mrb[8].mxu0 }
 0x392   :  { %v6448_v44 = vadd.f32 %v4919_v42, %v3459_v58  ;;  %v4921_v49 = vpop.f32.mrb[9].mxu0  ;;  %v7005_v42 = vld [vmem:[%s9409_s5 + $0x1c4] ss:$8 sps:$4 sm:$0xff]  }
 0x393   :  { %v6449_v51 = vadd.f32 %v4921_v49, %v3463_v48  ;;  %v4923_v0 = vpop.f32.mrb[10].mxu0  ;;  %v7008_v49 = vld [vmem:[%s9409_s5 + $0x1d4] ss:$8 sps:$4 sm:$0xff]  }
 0x394   :  { %v5108_v6 = vmul.f32 0.2, %v6448_v44  ;;  %v6450_v54 = vadd.f32 %v4923_v0, %v3459_v58  ;;  %v4925_v57 = vpop.f32.mrb[11].mxu0  ;;  %vm5100_vm1 = vcmp.gt.f32.partialorder %v6448_v44, 0.0  ;;  %v7002_v58 = vld [vmem:[%s9409_s5 + $0x1b4] ss:$8 sps:$4 sm:$0xff]  }
 0x395   :  { %v5109_v60 = vmul.f32 0.2, %v6449_v51  ;;  %v6451_v61 = vadd.f32 %v4925_v57, %v3463_v48  ;;  %vm5101_vm2 = vcmp.gt.f32.partialorder %v6449_v51, 0.0  ;;  %v7000_v48 = vld [vmem:[%s9409_s5 + $0x1b0] ss:$8 sps:$4 sm:$0xff]  }
 0x396   :  { %vm5104_vm3 = vcmp.gt.f32.partialorder %v6450_v54, 0.0  ;;  %v5112_v62 = vmul.f32 0.2, %v6450_v54  ;;  %v5116_v2 = vsel %vm5100_vm1, %v6448_v44, %v5108_v6  ;;  %v7003_v44 = vld [vmem:[%s9409_s5 + $0x1c0] ss:$8 sps:$4 sm:$0xff]  }
 0x397   :  { %vm5105_vm4 = vcmp.gt.f32.partialorder %v6451_v61, 0.0  ;;  %v5113_v63 = vmul.f32 0.2, %v6451_v61  ;;  %v5117_v7 = vsel %vm5101_vm2, %v6449_v51, %v5109_v60  ;;  %v7006_v51 = vld [vmem:[%s9409_s5 + $0x1d0] ss:$8 sps:$4 sm:$0xff]  }
 0x398   :  { %v5120_v23 = vsel %vm5104_vm3, %v6450_v54, %v5112_v62  ;;  %v7011_v0 = vld [vmem:[%s9409_s5 + $0x1e4] ss:$8 sps:$4 sm:$0xff]   ;;  %v7009_v6 = vld [vmem:[%s9409_s5 + $0x1e0] ss:$8 sps:$4 sm:$0xff]   ;;  %v7014_v54 = vld [vmem:[%s9409_s5 + $0x1f4] ss:$8 sps:$4 sm:$0xff]  }
 0x399   :  { %v5124_v4 = vpack.c.bf16 %v5120_v23, %v5116_v2  ;;  %v5121_v8 = vsel %vm5105_vm4, %v6451_v61, %v5113_v63  ;;  %v7012_v57 = vld [vmem:[%s9409_s5 + $0x1f0] ss:$8 sps:$4 sm:$0xff]   ;;  %v7021_v60 = vmov 1966171168  }
 0x39a   :  { %v5125_v14 = vpack.c.bf16 %v5121_v8, %v5117_v7  ;;  %v5645_v61 = vunpack.c.l.s4 %v7021_v60  ;;  %v6427_v62 = vld.sshfl [vmem:[%s9411_s7] sm:$0x11 pattern:$0x75316420]  ;;  %v14_v8 = vstv %s9412_s8 }
 0x39b   :  { %v5643_v2 = vcombine.high %v6427_v62, %v6427_v62  ;;  %15 = vst [vmem:[#allocation2] sm:$0x1] %v14_v8 }
 0x39c   :  { %5556 = vmatprep.mubr.bf16.mxu0 %v5125_v14  ;;  %v5646_v63 = vunpack.c.0.s8 %v5645_v61 }
 0x39d   :  { %5557 = vmatmul.mubr.bf16.vlgmr.msra.gmra.mrb[12].mxu0 %v5124_v4 }
 0x39e   :  { %5568 = vmatpush1.bf16.msra.mxu0 %v6967_v1  ;;  %v5649_v23 = vsub.s32 %v5646_v63, %v8170_v5  ;;  %v5192_v1 = vld [vmem:[%s9413_s6] sm:$0x3] }
 0x39f   :  { %5569 = vmatprep.subr.bf16.mxu0 %v6972_v9  ;;  %v5197_v9 = vrot.slane %v5192_v1, %v8182_v10 }
 0x3a0   :  { %v5657_v4 = vrot.slane %v5643_v2, %v5649_v23  ;;  %v5650_v7 = vrot.slane %v6427_v62, %v5649_v23 }
 0x3a2   :  { %5570 = vmatpush1.bf16.msra.mxu0 %v6970_v11  ;;  %5692 = vmatprep.mubr.bf16.mxu1 %v5657_v4  ;;  %v5625_v14 = vld [vmem:[#allocation2] sm:$0x1]  ;;  %v5201_v11 = vrot.slane %v5192_v1, %v8199_v15 }
 0x3a3   :  { %5571 = vmatprep.subr.bf16.mxu0 %v6975_v28  ;;  %5628 = vperm.xlu0 %6534, %v5625_v14  }
 0x3a6   :  { %5572 = vmatpush1.bf16.msra.mxu0 %v6973_v34 }
 0x3a7   :  { %5573 = vmatprep.subr.bf16.mxu0 %v6978_v3 }
 0x3aa   :  { %5574 = vmatpush1.bf16.msra.mxu0 %v6976_v12 }
 0x3ab   :  { %5575 = vmatprep.subr.bf16.mxu0 %v6981_v13 }
 0x3ae   :  { %5576 = vmatpush1.bf16.msra.mxu0 %v6979_v16 }
 0x3af   :  { %5577 = vmatprep.subr.bf16.mxu0 %v6984_v18 }
 0x3b2   :  { %v5091_v24 = vpop.f32.mrb[12].mxu1  ;;  %5578 = vmatpush1.bf16.msra.mxu0 %v6982_v19 }
 0x3b3   :  { %v6452_v26 = vadd.f32 %v5091_v24, %v3467_v20  ;;  %v5093_v59 = vpop.f32.mrb[13].mxu1  ;;  %5579 = vmatprep.subr.bf16.mxu0 %v6987_v21 }
 0x3b4   :  { %v6453_v27 = vadd.f32 %v5093_v59, %v3471_v22  ;;  %v5095_v29 = vpop.f32.mrb[14].mxu1 }
 0x3b5   :  { %v5110_v30 = vmul.f32 0.2, %v6452_v26  ;;  %v6454_v32 = vadd.f32 %v5095_v29, %v3467_v20  ;;  %v5097_v33 = vpop.f32.mrb[15].mxu1  ;;  %vm5102_vm5 = vcmp.gt.f32.partialorder %v6452_v26, 0.0 }
 0x3b6   :  { %v5111_v53 = vmul.f32 0.2, %v6453_v27  ;;  %v6455_v35 = vadd.f32 %v5097_v33, %v3471_v22  ;;  %5580 = vmatpush1.bf16.msra.mxu0 %v6985_v25  ;;  %vm5103_vm6 = vcmp.gt.f32.partialorder %v6453_v27, 0.0 }
 0x3b7   :  { %vm5106_vm7 = vcmp.gt.f32.partialorder %v6454_v32, 0.0  ;;  %v5114_v37 = vmul.f32 0.2, %v6454_v32  ;;  %5581 = vmatprep.subr.bf16.mxu0 %v6990_v50  ;;  %v5118_v39 = vsel %vm5102_vm5, %v6452_v26, %v5110_v30 }
 0x3b8   :  { %vm5107_vm8 = vcmp.gt.f32.partialorder %v6455_v35, 0.0  ;;  %v5115_v38 = vmul.f32 0.2, %v6455_v35  ;;  %v5119_v43 = vsel %vm5103_vm6, %v6453_v27, %v5111_v53 }
 0x3b9   :  { %v5122_v17 = vsel %vm5106_vm7, %v6454_v32, %v5114_v37 }
 0x3ba   :  { %v5126_v40 = vpack.c.bf16 %v5122_v17, %v5118_v39  ;;  %5582 = vmatpush1.bf16.msra.mxu0 %v6988_v36  ;;  %v5123_v55 = vsel %vm5107_vm8, %v6455_v35, %v5115_v38 }
 0x3bb   :  { %5583 = vmatprep.subr.bf16.mxu0 %v6993_v52  ;;  %v5127_v45 = vpack.c.bf16 %v5123_v55, %v5119_v43 }
 0x3bd   :  { %5599 = vmatprep.mubr.bf16.mxu0 %v5127_v45 }
 0x3be   :  { %5584 = vmatpush1.bf16.msra.mxu0 %v6991_v41 }
 0x3bf   :  { %5585 = vmatprep.subr.bf16.mxu0 %v6996_v56 }
 0x3c2   :  { %5586 = vmatpush1.bf16.msra.mxu0 %v6994_v46 }
 0x3c3   :  { %5587 = vmatprep.subr.bf16.mxu0 %v6999_v31 }
 0x3c6   :  { %5588 = vmatpush1.bf16.msra.mxu0 %v6997_v47 }
 0x3c7   :  { %5589 = vmatprep.subr.bf16.mxu0 %v7002_v58 }
 0x3ca   :  { %5590 = vmatpush1.bf16.msra.mxu0 %v7000_v48 }
 0x3cb   :  { %5591 = vmatprep.subr.bf16.mxu0 %v7005_v42 }
 0x3ce   :  { %5592 = vmatpush1.bf16.msra.mxu0 %v7003_v44 }
 0x3cf   :  { %5593 = vmatprep.subr.bf16.mxu0 %v7008_v49 }
 0x3d2   :  { %5594 = vmatpush1.bf16.msra.mxu0 %v7006_v51 }
 0x3d3   :  { %5595 = vmatprep.subr.bf16.mxu0 %v7011_v0 }
 0x3d6   :  { %5596 = vmatpush1.bf16.msra.mxu0 %v7009_v6 }
 0x3d7   :  { %5597 = vmatprep.subr.bf16.mxu0 %v7014_v54 }
 0x3da   :  { %5598 = vmatpush1.bf16.msra.mxu0 %v7012_v57 }
 0x3dd   :  { %5600 = vmatmul.mubr.bf16.vlgmr.msra.gmra.mrb[12].mxu0 %v5126_v40 }
 0x422   :  { %v5629_v27 = vpop.permute.xlu0 %5628 }
 0x423   :  { %v5634_v29 = vrot.slane %v5629_v27, %v8182_v10 }
 0x4b0   :  { %v5601_v28 = vpop.f32.mrb[12].mxu0 }
 0x4b1   :  { %v6456_v5 = vadd.f32 %v5601_v28, %v5197_v9  ;;  %v5603_v34 = vpop.f32.mrb[13].mxu0 }
 0x4b2   :  { %v6457_v3 = vadd.f32 %v5603_v34, %v5201_v11  ;;  %v5605_v12 = vpop.f32.mrb[14].mxu0 }
 0x4b3   :  { %v5614_v13 = vmul.f32 0.2, %v6456_v5  ;;  %v6458_v16 = vadd.f32 %v5605_v12, %v5197_v9  ;;  %v5607_v18 = vpop.f32.mrb[15].mxu0  ;;  %vm5610_vm9 = vcmp.gt.f32.partialorder %v6456_v5, 0.0 }
 0x4b4   :  { %v5615_v19 = vmul.f32 0.2, %v6457_v3  ;;  %v6459_v20 = vadd.f32 %v5607_v18, %v5201_v11  ;;  %vm5611_vm10 = vcmp.gt.f32.partialorder %v6457_v3, 0.0 }
 0x4b5   :  { %vm5612_vm11 = vcmp.gt.f32.partialorder %v6458_v16, 0.0  ;;  %v5616_v21 = vmul.f32 0.2, %v6458_v16  ;;  %v5618_v24 = vsel %vm5610_vm9, %v6456_v5, %v5614_v13 }
 0x4b6   :  { %vm5613_vm12 = vcmp.gt.f32.partialorder %v6459_v20, 0.0  ;;  %v5617_v22 = vmul.f32 0.2, %v6459_v20  ;;  %v5619_v15 = vsel %vm5611_vm10, %v6457_v3, %v5615_v19 }
 0x4b7   :  { %v5620_v25 = vsel %vm5612_vm11, %v6458_v16, %v5616_v21 }
 0x4b8   :  { %v5623_v26 = vpack.c.bf16 %v5620_v25, %v5618_v24  ;;  %v5621_v59 = vsel %vm5613_vm12, %v6459_v20, %v5617_v22 }
 0x4b9   :  { %v5624_v50 = vpack.c.bf16 %v5621_v59, %v5619_v15 }
 0x4bb   :  { %5660 = vmatprep.subr.bf16.mxu1 %v5624_v50 }
 0x4bc   :  { %5661 = vmatpush1.bf16.xpose.msra.mxu1 %v5623_v26 }
 0x4c3   :  { %5693 = vmatmul.mubr.bf16.vlgmr.msra.gmra.mrb[16].mxu1 %v5650_v7 }
 0x596   :  { %v5694_v30 = vpop.f32.mrb[16].mxu1 }
 0x597   :  { %v5695_v32 = vadd.f32 %v5694_v30, %v5634_v29  ;;  %v5696_v33 = vpop.f32.mrb[17].mxu1 }
 0x598   :  { %v5697_v53 = vpop.f32.mrb[18].mxu1 }
 0x599   :  { %v5700_v35 = vsub.f32 0.0, %v5695_v32  ;;  %v5698_v36 = vpop.f32.mrb[19].mxu1 }
 0x59b   :  { %v5701_v37 = vmul.f32 1.442695, %v5700_v35 }
 0x59d   :  { %7015 = vpow2.f32 %v5701_v37 }
 0x5a7   :  { %v7016_v52 = vpop.eup %7015 }
 0x5a8   :  { %v5703_v38 = vadd.f32 1.0, %v7016_v52 }
 0x5aa   :  { %7017 = vrcp.f32 %v5703_v38 }
 0x5b4   :  { %v7018_v39 = vpop.eup %7017 }
 0x5b5   :  { %5706 = vst.msk [vmem:[%s9414_s9] sm:$0x1] %vm5705_vm13, %v7018_v39 }

</bundles_post_ra>
